<compile_context>
chip_gen: v6e
topology: v6e:2x2x1
jax: 0.10.0
libtpu: 0.0.40
codegen_flags: <defaults>
</compile_context>

<pallas_src>
import math

import jax
import jax.numpy as jnp
import numpy as np
from jax.experimental import pallas as pl
from jax.experimental.pallas import tpu as pltpu

# ---- model hyper-parameters (small, consistent with the module) ----
D_MODEL = 32
N_HEADS = 4
FF_UNITS = 64
N_LAYERS = 2
BATCH = 2
SEQ = 8
MAX_LEN = 100
EPS = 1e-5  # PyTorch nn.LayerNorm default


def encoder_kernel(x_ref, pe_ref, wqkv_ref, bq_ref, wo_ref, w1b_ref, w2_ref, vec_ref, o_ref):
    M, D = x_ref.shape                 # (B*S, D)
    S = SEQ
    B = M // S
    H = N_HEADS
    Dh = D // H
    L = N_LAYERS

    # Ones columns: cross-lane sums go through the (idle) MXU instead of the contended XLU.
    one_d = jnp.ones((D, 1), jnp.float32)
    one_s = jnp.ones((S, 1), jnp.float32)
    inv_d = jnp.float32(1.0 / D)

    def ln(v, g, b):
        # Two-pass LayerNorm (matches PyTorch numerics); both row sums on the MXU.
        mu = jnp.dot(v, one_d, preferred_element_type=jnp.float32) * inv_d        # (M, 1)
        c = v - mu
        var = jnp.dot(c * c, one_d, preferred_element_type=jnp.float32) * inv_d   # (M, 1)
        return c * jax.lax.rsqrt(var + EPS) * g + b

    # PositionalEncoding: x * sqrt(d_model) + pe (pe pre-tiled over batch on the host).
    x = x_ref[...] * jnp.float32(math.sqrt(D)) + pe_ref[...]

    for l in range(L):                 # static layer loop (weights stacked on leading axes)
        # ---- self-attention sublayer (pre-norm, residual; dropout == identity) ----
        nq = ln(x, vec_ref[l, 0], vec_ref[l, 1])
        x = x + vec_ref[l, 4]          # bo_eff = bo + bv @ Wo, added once up front

        for h in range(H):             # static per-head loop; all splits done on the host
            idx = l * H + h
            # Per-head projections as plain (16, 32) x (32, 8) MXU dots.
            q_h = jnp.dot(nq, wqkv_ref[3 * idx + 0],
                          preferred_element_type=jnp.float32) + bq_ref[idx]   # scale folded in
            k_h = jnp.dot(nq, wqkv_ref[3 * idx + 1],
                          preferred_element_type=jnp.float32)                 # bk dropped (exact)
            v_h = jnp.dot(nq, wqkv_ref[3 * idx + 2],
                          preferred_element_type=jnp.float32)                 # bv folded into bo_eff
            ctxs = []
            for b in range(B):         # per-batch views: 8-aligned sublane slices (free)
                lo = b * S
                qb, kb, vb = q_h[lo:lo + S], k_h[lo:lo + S], v_h[lo:lo + S]
                s = jax.lax.dot_general(qb, kb, (((1,), (1,)), ((), ())),
                                        preferred_element_type=jnp.float32)   # (S, S)
                p = jnp.exp(s - jnp.max(s, axis=-1, keepdims=True))           # row max stays on XLU
                denom = jnp.dot(p, one_s, preferred_element_type=jnp.float32) # row sum on MXU
                p = p * pl.reciprocal(denom, approx=True)
                ctxs.append(jnp.dot(p, vb, preferred_element_type=jnp.float32))
            ctx = jnp.concatenate(ctxs, axis=0)                               # (M, Dh), aligned concat
            # Accumulate through the per-head row block of W_o directly into the residual.
            x = x + jnp.dot(ctx, wo_ref[idx], preferred_element_type=jnp.float32)

        # ---- feed-forward sublayer (pre-norm, residual) ----
        na = ln(x, vec_ref[l, 2], vec_ref[l, 3])
        w1l = w1b_ref[l]                       # (D+8, F): rows [0:D] = W1, row D = b1 (8-aligned)
        hdn = jnp.maximum(
            jnp.dot(na, w1l[:D], preferred_element_type=jnp.float32) + w1l[D:D + 1], 0.0)
        x = x + jnp.dot(hdn, w2_ref[l], preferred_element_type=jnp.float32) + vec_ref[l, 5]

    # final nn.LayerNorm(d_model) — params are the last slab of vec_d
    o_ref[...] = ln(x, vec_ref[L, 0], vec_ref[L, 1])


def pack_params(params):
    """Host-side packing: per-head Q/K/V and W_o splits, 1/sqrt(Dh) folded into Q,
    K bias dropped (softmax invariance), V bias folded into bo, b1 packed into w1,
    final-LN params appended to vec_d.  8 kernel inputs total."""
    L, D, H, F = N_LAYERS, D_MODEL, N_HEADS, FF_UNITS
    Dh = D // H
    inv_sqrt_dh = jnp.float32(1.0 / math.sqrt(Dh))

    def split_heads(w):                                  # (L, D, D) -> (L, H, D, Dh)
        return w.reshape(L, D, H, Dh).transpose(0, 2, 1, 3)

    wqkv_h = jnp.stack([split_heads(params['wq'] * inv_sqrt_dh),
                        split_heads(params['wk']),
                        split_heads(params['wv'])], axis=2)          # (L, H, 3, D, Dh)
    wqkv_h = wqkv_h.reshape(L * H * 3, D, Dh)

    bq_h = (params['bq'] * inv_sqrt_dh).reshape(L, 1, H, Dh).transpose(0, 2, 1, 3)
    bq_h = bq_h.reshape(L * H, 1, Dh)                                # (L*H, 1, Dh)

    wo_h = params['wo'].reshape(L, H, Dh, D).reshape(L * H, Dh, D)   # per-head rows of W_o

    # V-bias fold: ctx += bv (softmax rows sum to 1) => output bias becomes bo + bv @ Wo.
    bo_eff = params['bo'] + jnp.einsum('lij,ljk->lik', params['bv'], params['wo'])

    # W1 with b1 packed at sublane offset D (padded to D+8 rows so every slice is tile-aligned).
    w1b = jnp.zeros((L, D + 8, F), jnp.float32)
    w1b = w1b.at[:, :D, :].set(params['w1'])
    w1b = w1b.at[:, D:D + 1, :].set(params['b1'])

    # Per-layer vectors, one (1, D) tile each: [ln1_g, ln1_b, ln2_g, ln2_b, bo_eff, b2];
    # final slab (index L): [fn_g, fn_b, 0, 0, 0, 0].
    vec = jnp.zeros((L + 1, 6, 1, D), jnp.float32)
    vec = vec.at[:L, 0].set(params['ln1_g'])
    vec = vec.at[:L, 1].set(params['ln1_b'])
    vec = vec.at[:L, 2].set(params['ln2_g'])
    vec = vec.at[:L, 3].set(params['ln2_b'])
    vec = vec.at[:L, 4].set(bo_eff)
    vec = vec.at[:L, 5].set(params['b2'])
    vec = vec.at[L, 0].set(params['fn_g'])
    vec = vec.at[L, 1].set(params['fn_b'])

    return wqkv_h, bq_h, wo_h, w1b, params['w2'], vec


def encoder_transf_forward(query, pe, params):
    """query: (B, S, D) f32; pe: (S, D) f32; params: dict of stacked layer weights."""
    B, S, D = query.shape
    wqkv_h, bq_h, wo_h, w1b, w2, vec = pack_params(params)
    x2d = query.reshape(B * S, D)            # tokens on the sublane axis, D on lanes
    pe_t = jnp.tile(pe, (B, 1))              # (B*S, D), matches the flattened layout
    args = (x2d, pe_t, wqkv_h, bq_h, wo_h, w1b, w2, vec)
    # Whole-array-resident VMEM refs; no grid (single invocation, no grid-loop overhead).
    # TODO(synk): if the number of sequences grows, add a leading grid over sequence tiles
    # with dimension_semantics=("parallel",) (uses both v7x TensorCores) and budget the tile
    # for v7x's 64 MiB VMEM / v5e's 16 MiB scoped default; at B=2/S=8 (~70 KiB total) the
    # ~0.35 us/step grid overhead would dominate, so stay grid-less here.
    out = pl.pallas_call(
        encoder_kernel,
        out_shape=jax.ShapeDtypeStruct((B * S, D), jnp.float32),
        in_specs=[pl.BlockSpec(memory_space=pltpu.MemorySpace.VMEM) for _ in args],
        out_specs=pl.BlockSpec(memory_space=pltpu.MemorySpace.VMEM),
    )(*args)
    return out.reshape(B, S, D)


# ---------------- pure-JAX reference (same math as the PyTorch module) ----------------
def reference_forward(query, pe, params):
    B, S, D = query.shape
    H, Dh = N_HEADS, D // N_HEADS
    x = query * jnp.float32(math.sqrt(D)) + pe[None, :, :]

    def ln(v, g, b):
        mu = jnp.mean(v, axis=-1, keepdims=True)
        var = jnp.mean((v - mu) ** 2, axis=-1, keepdims=True)
        return (v - mu) * jax.lax.rsqrt(var + EPS) * g + b

    for l in range(N_LAYERS):
        nq = ln(x, params['ln1_g'][l], params['ln1_b'][l])
        q = nq @ params['wq'][l] + params['bq'][l]
        k = nq @ params['wk'][l] + params['bk'][l]
        v = nq @ params['wv'][l] + params['bv'][l]
        heads = []
        for h in range(H):
            sl = slice(h * Dh, (h + 1) * Dh)
            s = jnp.einsum('bqd,bkd->bqk', q[:, :, sl], k[:, :, sl]) / math.sqrt(Dh)
            p = jax.nn.softmax(s, axis=-1)
            heads.append(jnp.einsum('bqk,bkd->bqd', p, v[:, :, sl]))
        ctx = jnp.concatenate(heads, axis=-1)
        x = x + (ctx @ params['wo'][l] + params['bo'][l])
        na = ln(x, params['ln2_g'][l], params['ln2_b'][l])
        hdn = jax.nn.relu(na @ params['w1'][l] + params['b1'][l])
        x = x + (hdn @ params['w2'][l] + params['b2'][l])
    return ln(x, params['fn_g'], params['fn_b'])


def make_positional_encoding(max_len, d_model, seq_len):
    position = np.arange(0, max_len, dtype=np.float32)[:, None]
    angular_speed = np.exp(np.arange(0, d_model, 2, dtype=np.float32)
                           * (-np.log(10000.0) / d_model))
    pe = np.zeros((max_len, d_model), dtype=np.float32)
    pe[:, 0::2] = np.sin(position * angular_speed)
    pe[:, 1::2] = np.cos(position * angular_speed)
    return jnp.asarray(pe[:seq_len])


def make_params(key):
    D, F, L = D_MODEL, FF_UNITS, N_LAYERS
    ks = jax.random.split(key, 12)

    def nrm(k, shape, scale=0.05):
        return scale * jax.random.normal(k, shape, dtype=jnp.float32)

    return {
        # per-layer LayerNorms (PyTorch default init: gamma=1, beta=0)
        'ln1_g': jnp.ones((L, 1, D), jnp.float32),
        'ln1_b': jnp.zeros((L, 1, D), jnp.float32),
        'ln2_g': jnp.ones((L, 1, D), jnp.float32),
        'ln2_b': jnp.zeros((L, 1, D), jnp.float32),
        # multi-head attention projections
        'wq': nrm(ks[0], (L, D, D)), 'bq': nrm(ks[1], (L, 1, D)),
        'wk': nrm(ks[2], (L, D, D)), 'bk': nrm(ks[3], (L, 1, D)),
        'wv': nrm(ks[4], (L, D, D)), 'bv': nrm(ks[5], (L, 1, D)),
        'wo': nrm(ks[6], (L, D, D)), 'bo': nrm(ks[7], (L, 1, D)),
        # feed-forward
        'w1': nrm(ks[8], (L, D, F)), 'b1': nrm(ks[9], (L, 1, F)),
        'w2': nrm(ks[10], (L, F, D)), 'b2': nrm(ks[11], (L, 1, D)),
        # final LayerNorm
        'fn_g': jnp.ones((1, D), jnp.float32),
        'fn_b': jnp.zeros((1, D), jnp.float32),
    }


if __name__ == "__main__":
    key = jax.random.PRNGKey(0)
    k_x, k_p = jax.random.split(key)

    query = jax.random.normal(k_x, (BATCH, SEQ, D_MODEL), dtype=jnp.float32)
    pe = make_positional_encoding(MAX_LEN, D_MODEL, SEQ)
    params = make_params(k_p)

    out = jax.block_until_ready(encoder_transf_forward(query, pe, params))
    ref = jax.block_until_ready(reference_forward(query, pe, params))

    assert out.shape == (BATCH, SEQ, D_MODEL)
    assert bool(jnp.all(jnp.isfinite(out)))
    np.testing.assert_allclose(np.asarray(out), np.asarray(ref), atol=5e-2, rtol=5e-2)

    print("KERNEL_OK")
</pallas_src>

<mosaic_0001>
module attributes {stable_mosaic.version = 11 : i64} {
  func.func @encoder_kernel(%arg0: memref<16x32xf32, #tpu.memory_space<vmem>>, %arg1: memref<16x32xf32, #tpu.memory_space<vmem>>, %arg2: memref<24x32x8xf32, #tpu.memory_space<vmem>>, %arg3: memref<8x1x8xf32, #tpu.memory_space<vmem>>, %arg4: memref<8x8x32xf32, #tpu.memory_space<vmem>>, %arg5: memref<2x40x64xf32, #tpu.memory_space<vmem>>, %arg6: memref<2x64x32xf32, #tpu.memory_space<vmem>>, %arg7: memref<3x6x1x32xf32, #tpu.memory_space<vmem>>, %arg8: memref<16x32xf32, #tpu.memory_space<vmem>>) attributes {dimension_semantics = [], scalar_prefetch = 0 : i64, scratch_operands = 0 : i64, tpu.core_type = #tpu.core_type<tc>} {
    %cst = arith.constant 1.000000e+00 : f32
    %0 = vector.broadcast %cst : f32 to vector<32x1xf32>
    %cst_0 = arith.constant 1.000000e+00 : f32
    %1 = vector.broadcast %cst_0 : f32 to vector<8x1xf32>
    %c0 = arith.constant 0 : index
    %c0_1 = arith.constant 0 : index
    %2 = vector.load %arg0[%c0, %c0_1] : memref<16x32xf32, #tpu.memory_space<vmem>>, vector<16x32xf32>
    %cst_2 = arith.constant 5.65685415 : f32
    %3 = vector.broadcast %cst_2 : f32 to vector<16x32xf32>
    %4 = arith.mulf %2, %3 : vector<16x32xf32>
    %c0_3 = arith.constant 0 : index
    %c0_4 = arith.constant 0 : index
    %5 = vector.load %arg1[%c0_3, %c0_4] : memref<16x32xf32, #tpu.memory_space<vmem>>, vector<16x32xf32>
    %6 = arith.addf %4, %5 : vector<16x32xf32>
    %c0_5 = arith.constant 0 : index
    %c0_6 = arith.constant 0 : index
    %c0_7 = arith.constant 0 : index
    %c0_8 = arith.constant 0 : index
    %7 = vector.load %arg7[%c0_5, %c0_6, %c0_7, %c0_8] : memref<3x6x1x32xf32, #tpu.memory_space<vmem>>, vector<1x1x1x32xf32>
    %8 = vector.shape_cast %7 : vector<1x1x1x32xf32> to vector<1x32xf32>
    %c0_9 = arith.constant 0 : index
    %c1 = arith.constant 1 : index
    %c0_10 = arith.constant 0 : index
    %c0_11 = arith.constant 0 : index
    %9 = vector.load %arg7[%c0_9, %c1, %c0_10, %c0_11] : memref<3x6x1x32xf32, #tpu.memory_space<vmem>>, vector<1x1x1x32xf32>
    %10 = vector.shape_cast %9 : vector<1x1x1x32xf32> to vector<1x32xf32>
    %cst_12 = arith.constant dense<0.000000e+00> : vector<16x1xf32>
    %11 = tpu.matmul %6, %0, %cst_12 {dimension_numbers = #tpu.dot_dimension_numbers<[1], [0], [0], [1], [0, 0, 1, 1], [], []>} : vector<16x32xf32>, vector<32x1xf32>, vector<16x1xf32> -> vector<16x1xf32>
    %cst_13 = arith.constant 3.125000e-02 : f32
    %12 = vector.broadcast %cst_13 : f32 to vector<16x1xf32>
    %13 = arith.mulf %11, %12 : vector<16x1xf32>
    %14 = vector.broadcast %13 : vector<16x1xf32> to vector<16x32xf32>
    %15 = arith.subf %6, %14 : vector<16x32xf32>
    %16 = arith.mulf %15, %15 : vector<16x32xf32>
    %cst_14 = arith.constant dense<0.000000e+00> : vector<16x1xf32>
    %17 = tpu.matmul %16, %0, %cst_14 {dimension_numbers = #tpu.dot_dimension_numbers<[1], [0], [0], [1], [0, 0, 1, 1], [], []>} : vector<16x32xf32>, vector<32x1xf32>, vector<16x1xf32> -> vector<16x1xf32>
    %cst_15 = arith.constant 3.125000e-02 : f32
    %18 = vector.broadcast %cst_15 : f32 to vector<16x1xf32>
    %19 = arith.mulf %17, %18 : vector<16x1xf32>
    %cst_16 = arith.constant 9.99999974E-6 : f32
    %20 = vector.broadcast %cst_16 : f32 to vector<16x1xf32>
    %21 = arith.addf %19, %20 : vector<16x1xf32>
    %22 = math.rsqrt %21 : vector<16x1xf32>
    %23 = vector.broadcast %22 : vector<16x1xf32> to vector<16x32xf32>
    %24 = arith.mulf %15, %23 : vector<16x32xf32>
    %25 = vector.broadcast %8 : vector<1x32xf32> to vector<16x32xf32>
    %26 = arith.mulf %24, %25 : vector<16x32xf32>
    %27 = vector.broadcast %10 : vector<1x32xf32> to vector<16x32xf32>
    %28 = arith.addf %26, %27 : vector<16x32xf32>
    %c0_17 = arith.constant 0 : index
    %c4 = arith.constant 4 : index
    %c0_18 = arith.constant 0 : index
    %c0_19 = arith.constant 0 : index
    %29 = vector.load %arg7[%c0_17, %c4, %c0_18, %c0_19] : memref<3x6x1x32xf32, #tpu.memory_space<vmem>>, vector<1x1x1x32xf32>
    %30 = vector.shape_cast %29 : vector<1x1x1x32xf32> to vector<1x32xf32>
    %31 = vector.broadcast %30 : vector<1x32xf32> to vector<16x32xf32>
    %32 = arith.addf %6, %31 : vector<16x32xf32>
    %c0_20 = arith.constant 0 : index
    %c0_21 = arith.constant 0 : index
    %c0_22 = arith.constant 0 : index
    %33 = vector.load %arg2[%c0_20, %c0_21, %c0_22] : memref<24x32x8xf32, #tpu.memory_space<vmem>>, vector<1x32x8xf32>
    %34 = vector.shape_cast %33 : vector<1x32x8xf32> to vector<32x8xf32>
    %cst_23 = arith.constant dense<0.000000e+00> : vector<16x8xf32>
    %35 = tpu.matmul %28, %34, %cst_23 {dimension_numbers = #tpu.dot_dimension_numbers<[1], [0], [0], [1], [0, 0, 1, 1], [], []>} : vector<16x32xf32>, vector<32x8xf32>, vector<16x8xf32> -> vector<16x8xf32>
    %c0_24 = arith.constant 0 : index
    %c0_25 = arith.constant 0 : index
    %c0_26 = arith.constant 0 : index
    %36 = vector.load %arg3[%c0_24, %c0_25, %c0_26] : memref<8x1x8xf32, #tpu.memory_space<vmem>>, vector<1x1x8xf32>
    %37 = vector.shape_cast %36 : vector<1x1x8xf32> to vector<1x8xf32>
    %38 = vector.broadcast %37 : vector<1x8xf32> to vector<16x8xf32>
    %39 = arith.addf %35, %38 : vector<16x8xf32>
    %c1_27 = arith.constant 1 : index
    %c0_28 = arith.constant 0 : index
    %c0_29 = arith.constant 0 : index
    %40 = vector.load %arg2[%c1_27, %c0_28, %c0_29] : memref<24x32x8xf32, #tpu.memory_space<vmem>>, vector<1x32x8xf32>
    %41 = vector.shape_cast %40 : vector<1x32x8xf32> to vector<32x8xf32>
    %cst_30 = arith.constant dense<0.000000e+00> : vector<16x8xf32>
    %42 = tpu.matmul %28, %41, %cst_30 {dimension_numbers = #tpu.dot_dimension_numbers<[1], [0], [0], [1], [0, 0, 1, 1], [], []>} : vector<16x32xf32>, vector<32x8xf32>, vector<16x8xf32> -> vector<16x8xf32>
    %c2 = arith.constant 2 : index
    %c0_31 = arith.constant 0 : index
    %c0_32 = arith.constant 0 : index
    %43 = vector.load %arg2[%c2, %c0_31, %c0_32] : memref<24x32x8xf32, #tpu.memory_space<vmem>>, vector<1x32x8xf32>
    %44 = vector.shape_cast %43 : vector<1x32x8xf32> to vector<32x8xf32>
    %cst_33 = arith.constant dense<0.000000e+00> : vector<16x8xf32>
    %45 = tpu.matmul %28, %44, %cst_33 {dimension_numbers = #tpu.dot_dimension_numbers<[1], [0], [0], [1], [0, 0, 1, 1], [], []>} : vector<16x32xf32>, vector<32x8xf32>, vector<16x8xf32> -> vector<16x8xf32>
    %46 = vector.extract_strided_slice %39 {offsets = [0, 0], sizes = [8, 8], strides = [1, 1]} : vector<16x8xf32> to vector<8x8xf32>
    %47 = vector.extract_strided_slice %42 {offsets = [0, 0], sizes = [8, 8], strides = [1, 1]} : vector<16x8xf32> to vector<8x8xf32>
    %48 = vector.extract_strided_slice %45 {offsets = [0, 0], sizes = [8, 8], strides = [1, 1]} : vector<16x8xf32> to vector<8x8xf32>
    %cst_34 = arith.constant dense<0.000000e+00> : vector<8x8xf32>
    %49 = tpu.matmul %46, %47, %cst_34 {dimension_numbers = #tpu.dot_dimension_numbers<[1], [1], [0], [0], [0, 0, 1, 0], [], []>} : vector<8x8xf32>, vector<8x8xf32>, vector<8x8xf32> -> vector<8x8xf32>
    %cst_35 = arith.constant dense<0xFF800000> : vector<8xf32>
    %50 = vector.multi_reduction <maximumf>, %49, %cst_35 [1] : vector<8x8xf32> to vector<8xf32>
    %51 = vector.shape_cast %50 : vector<8xf32> to vector<8x1xf32>
    %52 = vector.broadcast %51 : vector<8x1xf32> to vector<8x8xf32>
    %53 = arith.subf %49, %52 : vector<8x8xf32>
    %54 = math.exp %53 : vector<8x8xf32>
    %cst_36 = arith.constant dense<0.000000e+00> : vector<8x1xf32>
    %55 = tpu.matmul %54, %1, %cst_36 {dimension_numbers = #tpu.dot_dimension_numbers<[1], [0], [0], [1], [0, 0, 1, 1], [], []>} : vector<8x8xf32>, vector<8x1xf32>, vector<8x1xf32> -> vector<8x1xf32>
    %56 = tpu.reciprocal %55 {approx = true} : vector<8x1xf32> -> vector<8x1xf32>
    %57 = vector.broadcast %56 : vector<8x1xf32> to vector<8x8xf32>
    %58 = arith.mulf %54, %57 : vector<8x8xf32>
    %cst_37 = arith.constant dense<0.000000e+00> : vector<8x8xf32>
    %59 = tpu.matmul %58, %48, %cst_37 {dimension_numbers = #tpu.dot_dimension_numbers<[1], [0], [0], [1], [0, 0, 1, 1], [], []>} : vector<8x8xf32>, vector<8x8xf32>, vector<8x8xf32> -> vector<8x8xf32>
    %60 = vector.extract_strided_slice %39 {offsets = [8, 0], sizes = [8, 8], strides = [1, 1]} : vector<16x8xf32> to vector<8x8xf32>
    %61 = vector.extract_strided_slice %42 {offsets = [8, 0], sizes = [8, 8], strides = [1, 1]} : vector<16x8xf32> to vector<8x8xf32>
    %62 = vector.extract_strided_slice %45 {offsets = [8, 0], sizes = [8, 8], strides = [1, 1]} : vector<16x8xf32> to vector<8x8xf32>
    %cst_38 = arith.constant dense<0.000000e+00> : vector<8x8xf32>
    %63 = tpu.matmul %60, %61, %cst_38 {dimension_numbers = #tpu.dot_dimension_numbers<[1], [1], [0], [0], [0, 0, 1, 0], [], []>} : vector<8x8xf32>, vector<8x8xf32>, vector<8x8xf32> -> vector<8x8xf32>
    %cst_39 = arith.constant dense<0xFF800000> : vector<8xf32>
    %64 = vector.multi_reduction <maximumf>, %63, %cst_39 [1] : vector<8x8xf32> to vector<8xf32>
    %65 = vector.shape_cast %64 : vector<8xf32> to vector<8x1xf32>
    %66 = vector.broadcast %65 : vector<8x1xf32> to vector<8x8xf32>
    %67 = arith.subf %63, %66 : vector<8x8xf32>
    %68 = math.exp %67 : vector<8x8xf32>
    %cst_40 = arith.constant dense<0.000000e+00> : vector<8x1xf32>
    %69 = tpu.matmul %68, %1, %cst_40 {dimension_numbers = #tpu.dot_dimension_numbers<[1], [0], [0], [1], [0, 0, 1, 1], [], []>} : vector<8x8xf32>, vector<8x1xf32>, vector<8x1xf32> -> vector<8x1xf32>
    %70 = tpu.reciprocal %69 {approx = true} : vector<8x1xf32> -> vector<8x1xf32>
    %71 = vector.broadcast %70 : vector<8x1xf32> to vector<8x8xf32>
    %72 = arith.mulf %68, %71 : vector<8x8xf32>
    %cst_41 = arith.constant dense<0.000000e+00> : vector<8x8xf32>
    %73 = tpu.matmul %72, %62, %cst_41 {dimension_numbers = #tpu.dot_dimension_numbers<[1], [0], [0], [1], [0, 0, 1, 1], [], []>} : vector<8x8xf32>, vector<8x8xf32>, vector<8x8xf32> -> vector<8x8xf32>
    %74 = tpu.concatenate %59, %73 in 0 : vector<8x8xf32>, vector<8x8xf32> -> vector<16x8xf32>
    %c0_42 = arith.constant 0 : index
    %c0_43 = arith.constant 0 : index
    %c0_44 = arith.constant 0 : index
    %75 = vector.load %arg4[%c0_42, %c0_43, %c0_44] : memref<8x8x32xf32, #tpu.memory_space<vmem>>, vector<1x8x32xf32>
    %76 = vector.shape_cast %75 : vector<1x8x32xf32> to vector<8x32xf32>
    %cst_45 = arith.constant dense<0.000000e+00> : vector<16x32xf32>
    %77 = tpu.matmul %74, %76, %cst_45 {dimension_numbers = #tpu.dot_dimension_numbers<[1], [0], [0], [1], [0, 0, 1, 1], [], []>} : vector<16x8xf32>, vector<8x32xf32>, vector<16x32xf32> -> vector<16x32xf32>
    %78 = arith.addf %32, %77 : vector<16x32xf32>
    %c3 = arith.constant 3 : index
    %c0_46 = arith.constant 0 : index
    %c0_47 = arith.constant 0 : index
    %79 = vector.load %arg2[%c3, %c0_46, %c0_47] : memref<24x32x8xf32, #tpu.memory_space<vmem>>, vector<1x32x8xf32>
    %80 = vector.shape_cast %79 : vector<1x32x8xf32> to vector<32x8xf32>
    %cst_48 = arith.constant dense<0.000000e+00> : vector<16x8xf32>
    %81 = tpu.matmul %28, %80, %cst_48 {dimension_numbers = #tpu.dot_dimension_numbers<[1], [0], [0], [1], [0, 0, 1, 1], [], []>} : vector<16x32xf32>, vector<32x8xf32>, vector<16x8xf32> -> vector<16x8xf32>
    %c1_49 = arith.constant 1 : index
    %c0_50 = arith.constant 0 : index
    %c0_51 = arith.constant 0 : index
    %82 = vector.load %arg3[%c1_49, %c0_50, %c0_51] : memref<8x1x8xf32, #tpu.memory_space<vmem>>, vector<1x1x8xf32>
    %83 = vector.shape_cast %82 : vector<1x1x8xf32> to vector<1x8xf32>
    %84 = vector.broadcast %83 : vector<1x8xf32> to vector<16x8xf32>
    %85 = arith.addf %81, %84 : vector<16x8xf32>
    %c4_52 = arith.constant 4 : index
    %c0_53 = arith.constant 0 : index
    %c0_54 = arith.constant 0 : index
    %86 = vector.load %arg2[%c4_52, %c0_53, %c0_54] : memref<24x32x8xf32, #tpu.memory_space<vmem>>, vector<1x32x8xf32>
    %87 = vector.shape_cast %86 : vector<1x32x8xf32> to vector<32x8xf32>
    %cst_55 = arith.constant dense<0.000000e+00> : vector<16x8xf32>
    %88 = tpu.matmul %28, %87, %cst_55 {dimension_numbers = #tpu.dot_dimension_numbers<[1], [0], [0], [1], [0, 0, 1, 1], [], []>} : vector<16x32xf32>, vector<32x8xf32>, vector<16x8xf32> -> vector<16x8xf32>
    %c5 = arith.constant 5 : index
    %c0_56 = arith.constant 0 : index
    %c0_57 = arith.constant 0 : index
    %89 = vector.load %arg2[%c5, %c0_56, %c0_57] : memref<24x32x8xf32, #tpu.memory_space<vmem>>, vector<1x32x8xf32>
    %90 = vector.shape_cast %89 : vector<1x32x8xf32> to vector<32x8xf32>
    %cst_58 = arith.constant dense<0.000000e+00> : vector<16x8xf32>
    %91 = tpu.matmul %28, %90, %cst_58 {dimension_numbers = #tpu.dot_dimension_numbers<[1], [0], [0], [1], [0, 0, 1, 1], [], []>} : vector<16x32xf32>, vector<32x8xf32>, vector<16x8xf32> -> vector<16x8xf32>
    %92 = vector.extract_strided_slice %85 {offsets = [0, 0], sizes = [8, 8], strides = [1, 1]} : vector<16x8xf32> to vector<8x8xf32>
    %93 = vector.extract_strided_slice %88 {offsets = [0, 0], sizes = [8, 8], strides = [1, 1]} : vector<16x8xf32> to vector<8x8xf32>
    %94 = vector.extract_strided_slice %91 {offsets = [0, 0], sizes = [8, 8], strides = [1, 1]} : vector<16x8xf32> to vector<8x8xf32>
    %cst_59 = arith.constant dense<0.000000e+00> : vector<8x8xf32>
    %95 = tpu.matmul %92, %93, %cst_59 {dimension_numbers = #tpu.dot_dimension_numbers<[1], [1], [0], [0], [0, 0, 1, 0], [], []>} : vector<8x8xf32>, vector<8x8xf32>, vector<8x8xf32> -> vector<8x8xf32>
    %cst_60 = arith.constant dense<0xFF800000> : vector<8xf32>
    %96 = vector.multi_reduction <maximumf>, %95, %cst_60 [1] : vector<8x8xf32> to vector<8xf32>
    %97 = vector.shape_cast %96 : vector<8xf32> to vector<8x1xf32>
    %98 = vector.broadcast %97 : vector<8x1xf32> to vector<8x8xf32>
    %99 = arith.subf %95, %98 : vector<8x8xf32>
    %100 = math.exp %99 : vector<8x8xf32>
    %cst_61 = arith.constant dense<0.000000e+00> : vector<8x1xf32>
    %101 = tpu.matmul %100, %1, %cst_61 {dimension_numbers = #tpu.dot_dimension_numbers<[1], [0], [0], [1], [0, 0, 1, 1], [], []>} : vector<8x8xf32>, vector<8x1xf32>, vector<8x1xf32> -> vector<8x1xf32>
    %102 = tpu.reciprocal %101 {approx = true} : vector<8x1xf32> -> vector<8x1xf32>
    %103 = vector.broadcast %102 : vector<8x1xf32> to vector<8x8xf32>
    %104 = arith.mulf %100, %103 : vector<8x8xf32>
    %cst_62 = arith.constant dense<0.000000e+00> : vector<8x8xf32>
    %105 = tpu.matmul %104, %94, %cst_62 {dimension_numbers = #tpu.dot_dimension_numbers<[1], [0], [0], [1], [0, 0, 1, 1], [], []>} : vector<8x8xf32>, vector<8x8xf32>, vector<8x8xf32> -> vector<8x8xf32>
    %106 = vector.extract_strided_slice %85 {offsets = [8, 0], sizes = [8, 8], strides = [1, 1]} : vector<16x8xf32> to vector<8x8xf32>
    %107 = vector.extract_strided_slice %88 {offsets = [8, 0], sizes = [8, 8], strides = [1, 1]} : vector<16x8xf32> to vector<8x8xf32>
    %108 = vector.extract_strided_slice %91 {offsets = [8, 0], sizes = [8, 8], strides = [1, 1]} : vector<16x8xf32> to vector<8x8xf32>
    %cst_63 = arith.constant dense<0.000000e+00> : vector<8x8xf32>
    %109 = tpu.matmul %106, %107, %cst_63 {dimension_numbers = #tpu.dot_dimension_numbers<[1], [1], [0], [0], [0, 0, 1, 0], [], []>} : vector<8x8xf32>, vector<8x8xf32>, vector<8x8xf32> -> vector<8x8xf32>
    %cst_64 = arith.constant dense<0xFF800000> : vector<8xf32>
    %110 = vector.multi_reduction <maximumf>, %109, %cst_64 [1] : vector<8x8xf32> to vector<8xf32>
    %111 = vector.shape_cast %110 : vector<8xf32> to vector<8x1xf32>
    %112 = vector.broadcast %111 : vector<8x1xf32> to vector<8x8xf32>
    %113 = arith.subf %109, %112 : vector<8x8xf32>
    %114 = math.exp %113 : vector<8x8xf32>
    %cst_65 = arith.constant dense<0.000000e+00> : vector<8x1xf32>
    %115 = tpu.matmul %114, %1, %cst_65 {dimension_numbers = #tpu.dot_dimension_numbers<[1], [0], [0], [1], [0, 0, 1, 1], [], []>} : vector<8x8xf32>, vector<8x1xf32>, vector<8x1xf32> -> vector<8x1xf32>
    %116 = tpu.reciprocal %115 {approx = true} : vector<8x1xf32> -> vector<8x1xf32>
    %117 = vector.broadcast %116 : vector<8x1xf32> to vector<8x8xf32>
    %118 = arith.mulf %114, %117 : vector<8x8xf32>
    %cst_66 = arith.constant dense<0.000000e+00> : vector<8x8xf32>
    %119 = tpu.matmul %118, %108, %cst_66 {dimension_numbers = #tpu.dot_dimension_numbers<[1], [0], [0], [1], [0, 0, 1, 1], [], []>} : vector<8x8xf32>, vector<8x8xf32>, vector<8x8xf32> -> vector<8x8xf32>
    %120 = tpu.concatenate %105, %119 in 0 : vector<8x8xf32>, vector<8x8xf32> -> vector<16x8xf32>
    %c1_67 = arith.constant 1 : index
    %c0_68 = arith.constant 0 : index
    %c0_69 = arith.constant 0 : index
    %121 = vector.load %arg4[%c1_67, %c0_68, %c0_69] : memref<8x8x32xf32, #tpu.memory_space<vmem>>, vector<1x8x32xf32>
    %122 = vector.shape_cast %121 : vector<1x8x32xf32> to vector<8x32xf32>
    %cst_70 = arith.constant dense<0.000000e+00> : vector<16x32xf32>
    %123 = tpu.matmul %120, %122, %cst_70 {dimension_numbers = #tpu.dot_dimension_numbers<[1], [0], [0], [1], [0, 0, 1, 1], [], []>} : vector<16x8xf32>, vector<8x32xf32>, vector<16x32xf32> -> vector<16x32xf32>
    %124 = arith.addf %78, %123 : vector<16x32xf32>
    %c6 = arith.constant 6 : index
    %c0_71 = arith.constant 0 : index
    %c0_72 = arith.constant 0 : index
    %125 = vector.load %arg2[%c6, %c0_71, %c0_72] : memref<24x32x8xf32, #tpu.memory_space<vmem>>, vector<1x32x8xf32>
    %126 = vector.shape_cast %125 : vector<1x32x8xf32> to vector<32x8xf32>
    %cst_73 = arith.constant dense<0.000000e+00> : vector<16x8xf32>
    %127 = tpu.matmul %28, %126, %cst_73 {dimension_numbers = #tpu.dot_dimension_numbers<[1], [0], [0], [1], [0, 0, 1, 1], [], []>} : vector<16x32xf32>, vector<32x8xf32>, vector<16x8xf32> -> vector<16x8xf32>
    %c2_74 = arith.constant 2 : index
    %c0_75 = arith.constant 0 : index
    %c0_76 = arith.constant 0 : index
    %128 = vector.load %arg3[%c2_74, %c0_75, %c0_76] : memref<8x1x8xf32, #tpu.memory_space<vmem>>, vector<1x1x8xf32>
    %129 = vector.shape_cast %128 : vector<1x1x8xf32> to vector<1x8xf32>
    %130 = vector.broadcast %129 : vector<1x8xf32> to vector<16x8xf32>
    %131 = arith.addf %127, %130 : vector<16x8xf32>
    %c7 = arith.constant 7 : index
    %c0_77 = arith.constant 0 : index
    %c0_78 = arith.constant 0 : index
    %132 = vector.load %arg2[%c7, %c0_77, %c0_78] : memref<24x32x8xf32, #tpu.memory_space<vmem>>, vector<1x32x8xf32>
    %133 = vector.shape_cast %132 : vector<1x32x8xf32> to vector<32x8xf32>
    %cst_79 = arith.constant dense<0.000000e+00> : vector<16x8xf32>
    %134 = tpu.matmul %28, %133, %cst_79 {dimension_numbers = #tpu.dot_dimension_numbers<[1], [0], [0], [1], [0, 0, 1, 1], [], []>} : vector<16x32xf32>, vector<32x8xf32>, vector<16x8xf32> -> vector<16x8xf32>
    %c8 = arith.constant 8 : index
    %c0_80 = arith.constant 0 : index
    %c0_81 = arith.constant 0 : index
    %135 = vector.load %arg2[%c8, %c0_80, %c0_81] : memref<24x32x8xf32, #tpu.memory_space<vmem>>, vector<1x32x8xf32>
    %136 = vector.shape_cast %135 : vector<1x32x8xf32> to vector<32x8xf32>
    %cst_82 = arith.constant dense<0.000000e+00> : vector<16x8xf32>
    %137 = tpu.matmul %28, %136, %cst_82 {dimension_numbers = #tpu.dot_dimension_numbers<[1], [0], [0], [1], [0, 0, 1, 1], [], []>} : vector<16x32xf32>, vector<32x8xf32>, vector<16x8xf32> -> vector<16x8xf32>
    %138 = vector.extract_strided_slice %131 {offsets = [0, 0], sizes = [8, 8], strides = [1, 1]} : vector<16x8xf32> to vector<8x8xf32>
    %139 = vector.extract_strided_slice %134 {offsets = [0, 0], sizes = [8, 8], strides = [1, 1]} : vector<16x8xf32> to vector<8x8xf32>
    %140 = vector.extract_strided_slice %137 {offsets = [0, 0], sizes = [8, 8], strides = [1, 1]} : vector<16x8xf32> to vector<8x8xf32>
    %cst_83 = arith.constant dense<0.000000e+00> : vector<8x8xf32>
    %141 = tpu.matmul %138, %139, %cst_83 {dimension_numbers = #tpu.dot_dimension_numbers<[1], [1], [0], [0], [0, 0, 1, 0], [], []>} : vector<8x8xf32>, vector<8x8xf32>, vector<8x8xf32> -> vector<8x8xf32>
    %cst_84 = arith.constant dense<0xFF800000> : vector<8xf32>
    %142 = vector.multi_reduction <maximumf>, %141, %cst_84 [1] : vector<8x8xf32> to vector<8xf32>
    %143 = vector.shape_cast %142 : vector<8xf32> to vector<8x1xf32>
    %144 = vector.broadcast %143 : vector<8x1xf32> to vector<8x8xf32>
    %145 = arith.subf %141, %144 : vector<8x8xf32>
    %146 = math.exp %145 : vector<8x8xf32>
    %cst_85 = arith.constant dense<0.000000e+00> : vector<8x1xf32>
    %147 = tpu.matmul %146, %1, %cst_85 {dimension_numbers = #tpu.dot_dimension_numbers<[1], [0], [0], [1], [0, 0, 1, 1], [], []>} : vector<8x8xf32>, vector<8x1xf32>, vector<8x1xf32> -> vector<8x1xf32>
    %148 = tpu.reciprocal %147 {approx = true} : vector<8x1xf32> -> vector<8x1xf32>
    %149 = vector.broadcast %148 : vector<8x1xf32> to vector<8x8xf32>
    %150 = arith.mulf %146, %149 : vector<8x8xf32>
    %cst_86 = arith.constant dense<0.000000e+00> : vector<8x8xf32>
    %151 = tpu.matmul %150, %140, %cst_86 {dimension_numbers = #tpu.dot_dimension_numbers<[1], [0], [0], [1], [0, 0, 1, 1], [], []>} : vector<8x8xf32>, vector<8x8xf32>, vector<8x8xf32> -> vector<8x8xf32>
    %152 = vector.extract_strided_slice %131 {offsets = [8, 0], sizes = [8, 8], strides = [1, 1]} : vector<16x8xf32> to vector<8x8xf32>
    %153 = vector.extract_strided_slice %134 {offsets = [8, 0], sizes = [8, 8], strides = [1, 1]} : vector<16x8xf32> to vector<8x8xf32>
    %154 = vector.extract_strided_slice %137 {offsets = [8, 0], sizes = [8, 8], strides = [1, 1]} : vector<16x8xf32> to vector<8x8xf32>
    %cst_87 = arith.constant dense<0.000000e+00> : vector<8x8xf32>
    %155 = tpu.matmul %152, %153, %cst_87 {dimension_numbers = #tpu.dot_dimension_numbers<[1], [1], [0], [0], [0, 0, 1, 0], [], []>} : vector<8x8xf32>, vector<8x8xf32>, vector<8x8xf32> -> vector<8x8xf32>
    %cst_88 = arith.constant dense<0xFF800000> : vector<8xf32>
    %156 = vector.multi_reduction <maximumf>, %155, %cst_88 [1] : vector<8x8xf32> to vector<8xf32>
    %157 = vector.shape_cast %156 : vector<8xf32> to vector<8x1xf32>
    %158 = vector.broadcast %157 : vector<8x1xf32> to vector<8x8xf32>
    %159 = arith.subf %155, %158 : vector<8x8xf32>
    %160 = math.exp %159 : vector<8x8xf32>
    %cst_89 = arith.constant dense<0.000000e+00> : vector<8x1xf32>
    %161 = tpu.matmul %160, %1, %cst_89 {dimension_numbers = #tpu.dot_dimension_numbers<[1], [0], [0], [1], [0, 0, 1, 1], [], []>} : vector<8x8xf32>, vector<8x1xf32>, vector<8x1xf32> -> vector<8x1xf32>
    %162 = tpu.reciprocal %161 {approx = true} : vector<8x1xf32> -> vector<8x1xf32>
    %163 = vector.broadcast %162 : vector<8x1xf32> to vector<8x8xf32>
    %164 = arith.mulf %160, %163 : vector<8x8xf32>
    %cst_90 = arith.constant dense<0.000000e+00> : vector<8x8xf32>
    %165 = tpu.matmul %164, %154, %cst_90 {dimension_numbers = #tpu.dot_dimension_numbers<[1], [0], [0], [1], [0, 0, 1, 1], [], []>} : vector<8x8xf32>, vector<8x8xf32>, vector<8x8xf32> -> vector<8x8xf32>
    %166 = tpu.concatenate %151, %165 in 0 : vector<8x8xf32>, vector<8x8xf32> -> vector<16x8xf32>
    %c2_91 = arith.constant 2 : index
    %c0_92 = arith.constant 0 : index
    %c0_93 = arith.constant 0 : index
    %167 = vector.load %arg4[%c2_91, %c0_92, %c0_93] : memref<8x8x32xf32, #tpu.memory_space<vmem>>, vector<1x8x32xf32>
    %168 = vector.shape_cast %167 : vector<1x8x32xf32> to vector<8x32xf32>
    %cst_94 = arith.constant dense<0.000000e+00> : vector<16x32xf32>
    %169 = tpu.matmul %166, %168, %cst_94 {dimension_numbers = #tpu.dot_dimension_numbers<[1], [0], [0], [1], [0, 0, 1, 1], [], []>} : vector<16x8xf32>, vector<8x32xf32>, vector<16x32xf32> -> vector<16x32xf32>
    %170 = arith.addf %124, %169 : vector<16x32xf32>
    %c9 = arith.constant 9 : index
    %c0_95 = arith.constant 0 : index
    %c0_96 = arith.constant 0 : index
    %171 = vector.load %arg2[%c9, %c0_95, %c0_96] : memref<24x32x8xf32, #tpu.memory_space<vmem>>, vector<1x32x8xf32>
    %172 = vector.shape_cast %171 : vector<1x32x8xf32> to vector<32x8xf32>
    %cst_97 = arith.constant dense<0.000000e+00> : vector<16x8xf32>
    %173 = tpu.matmul %28, %172, %cst_97 {dimension_numbers = #tpu.dot_dimension_numbers<[1], [0], [0], [1], [0, 0, 1, 1], [], []>} : vector<16x32xf32>, vector<32x8xf32>, vector<16x8xf32> -> vector<16x8xf32>
    %c3_98 = arith.constant 3 : index
    %c0_99 = arith.constant 0 : index
    %c0_100 = arith.constant 0 : index
    %174 = vector.load %arg3[%c3_98, %c0_99, %c0_100] : memref<8x1x8xf32, #tpu.memory_space<vmem>>, vector<1x1x8xf32>
    %175 = vector.shape_cast %174 : vector<1x1x8xf32> to vector<1x8xf32>
    %176 = vector.broadcast %175 : vector<1x8xf32> to vector<16x8xf32>
    %177 = arith.addf %173, %176 : vector<16x8xf32>
    %c10 = arith.constant 10 : index
    %c0_101 = arith.constant 0 : index
    %c0_102 = arith.constant 0 : index
    %178 = vector.load %arg2[%c10, %c0_101, %c0_102] : memref<24x32x8xf32, #tpu.memory_space<vmem>>, vector<1x32x8xf32>
    %179 = vector.shape_cast %178 : vector<1x32x8xf32> to vector<32x8xf32>
    %cst_103 = arith.constant dense<0.000000e+00> : vector<16x8xf32>
    %180 = tpu.matmul %28, %179, %cst_103 {dimension_numbers = #tpu.dot_dimension_numbers<[1], [0], [0], [1], [0, 0, 1, 1], [], []>} : vector<16x32xf32>, vector<32x8xf32>, vector<16x8xf32> -> vector<16x8xf32>
    %c11 = arith.constant 11 : index
    %c0_104 = arith.constant 0 : index
    %c0_105 = arith.constant 0 : index
    %181 = vector.load %arg2[%c11, %c0_104, %c0_105] : memref<24x32x8xf32, #tpu.memory_space<vmem>>, vector<1x32x8xf32>
    %182 = vector.shape_cast %181 : vector<1x32x8xf32> to vector<32x8xf32>
    %cst_106 = arith.constant dense<0.000000e+00> : vector<16x8xf32>
    %183 = tpu.matmul %28, %182, %cst_106 {dimension_numbers = #tpu.dot_dimension_numbers<[1], [0], [0], [1], [0, 0, 1, 1], [], []>} : vector<16x32xf32>, vector<32x8xf32>, vector<16x8xf32> -> vector<16x8xf32>
    %184 = vector.extract_strided_slice %177 {offsets = [0, 0], sizes = [8, 8], strides = [1, 1]} : vector<16x8xf32> to vector<8x8xf32>
    %185 = vector.extract_strided_slice %180 {offsets = [0, 0], sizes = [8, 8], strides = [1, 1]} : vector<16x8xf32> to vector<8x8xf32>
    %186 = vector.extract_strided_slice %183 {offsets = [0, 0], sizes = [8, 8], strides = [1, 1]} : vector<16x8xf32> to vector<8x8xf32>
    %cst_107 = arith.constant dense<0.000000e+00> : vector<8x8xf32>
    %187 = tpu.matmul %184, %185, %cst_107 {dimension_numbers = #tpu.dot_dimension_numbers<[1], [1], [0], [0], [0, 0, 1, 0], [], []>} : vector<8x8xf32>, vector<8x8xf32>, vector<8x8xf32> -> vector<8x8xf32>
    %cst_108 = arith.constant dense<0xFF800000> : vector<8xf32>
    %188 = vector.multi_reduction <maximumf>, %187, %cst_108 [1] : vector<8x8xf32> to vector<8xf32>
    %189 = vector.shape_cast %188 : vector<8xf32> to vector<8x1xf32>
    %190 = vector.broadcast %189 : vector<8x1xf32> to vector<8x8xf32>
    %191 = arith.subf %187, %190 : vector<8x8xf32>
    %192 = math.exp %191 : vector<8x8xf32>
    %cst_109 = arith.constant dense<0.000000e+00> : vector<8x1xf32>
    %193 = tpu.matmul %192, %1, %cst_109 {dimension_numbers = #tpu.dot_dimension_numbers<[1], [0], [0], [1], [0, 0, 1, 1], [], []>} : vector<8x8xf32>, vector<8x1xf32>, vector<8x1xf32> -> vector<8x1xf32>
    %194 = tpu.reciprocal %193 {approx = true} : vector<8x1xf32> -> vector<8x1xf32>
    %195 = vector.broadcast %194 : vector<8x1xf32> to vector<8x8xf32>
    %196 = arith.mulf %192, %195 : vector<8x8xf32>
    %cst_110 = arith.constant dense<0.000000e+00> : vector<8x8xf32>
    %197 = tpu.matmul %196, %186, %cst_110 {dimension_numbers = #tpu.dot_dimension_numbers<[1], [0], [0], [1], [0, 0, 1, 1], [], []>} : vector<8x8xf32>, vector<8x8xf32>, vector<8x8xf32> -> vector<8x8xf32>
    %198 = vector.extract_strided_slice %177 {offsets = [8, 0], sizes = [8, 8], strides = [1, 1]} : vector<16x8xf32> to vector<8x8xf32>
    %199 = vector.extract_strided_slice %180 {offsets = [8, 0], sizes = [8, 8], strides = [1, 1]} : vector<16x8xf32> to vector<8x8xf32>
    %200 = vector.extract_strided_slice %183 {offsets = [8, 0], sizes = [8, 8], strides = [1, 1]} : vector<16x8xf32> to vector<8x8xf32>
    %cst_111 = arith.constant dense<0.000000e+00> : vector<8x8xf32>
    %201 = tpu.matmul %198, %199, %cst_111 {dimension_numbers = #tpu.dot_dimension_numbers<[1], [1], [0], [0], [0, 0, 1, 0], [], []>} : vector<8x8xf32>, vector<8x8xf32>, vector<8x8xf32> -> vector<8x8xf32>
    %cst_112 = arith.constant dense<0xFF800000> : vector<8xf32>
    %202 = vector.multi_reduction <maximumf>, %201, %cst_112 [1] : vector<8x8xf32> to vector<8xf32>
    %203 = vector.shape_cast %202 : vector<8xf32> to vector<8x1xf32>
    %204 = vector.broadcast %203 : vector<8x1xf32> to vector<8x8xf32>
    %205 = arith.subf %201, %204 : vector<8x8xf32>
    %206 = math.exp %205 : vector<8x8xf32>
    %cst_113 = arith.constant dense<0.000000e+00> : vector<8x1xf32>
    %207 = tpu.matmul %206, %1, %cst_113 {dimension_numbers = #tpu.dot_dimension_numbers<[1], [0], [0], [1], [0, 0, 1, 1], [], []>} : vector<8x8xf32>, vector<8x1xf32>, vector<8x1xf32> -> vector<8x1xf32>
    %208 = tpu.reciprocal %207 {approx = true} : vector<8x1xf32> -> vector<8x1xf32>
    %209 = vector.broadcast %208 : vector<8x1xf32> to vector<8x8xf32>
    %210 = arith.mulf %206, %209 : vector<8x8xf32>
    %cst_114 = arith.constant dense<0.000000e+00> : vector<8x8xf32>
    %211 = tpu.matmul %210, %200, %cst_114 {dimension_numbers = #tpu.dot_dimension_numbers<[1], [0], [0], [1], [0, 0, 1, 1], [], []>} : vector<8x8xf32>, vector<8x8xf32>, vector<8x8xf32> -> vector<8x8xf32>
    %212 = tpu.concatenate %197, %211 in 0 : vector<8x8xf32>, vector<8x8xf32> -> vector<16x8xf32>
    %c3_115 = arith.constant 3 : index
    %c0_116 = arith.constant 0 : index
    %c0_117 = arith.constant 0 : index
    %213 = vector.load %arg4[%c3_115, %c0_116, %c0_117] : memref<8x8x32xf32, #tpu.memory_space<vmem>>, vector<1x8x32xf32>
    %214 = vector.shape_cast %213 : vector<1x8x32xf32> to vector<8x32xf32>
    %cst_118 = arith.constant dense<0.000000e+00> : vector<16x32xf32>
    %215 = tpu.matmul %212, %214, %cst_118 {dimension_numbers = #tpu.dot_dimension_numbers<[1], [0], [0], [1], [0, 0, 1, 1], [], []>} : vector<16x8xf32>, vector<8x32xf32>, vector<16x32xf32> -> vector<16x32xf32>
    %216 = arith.addf %170, %215 : vector<16x32xf32>
    %c0_119 = arith.constant 0 : index
    %c2_120 = arith.constant 2 : index
    %c0_121 = arith.constant 0 : index
    %c0_122 = arith.constant 0 : index
    %217 = vector.load %arg7[%c0_119, %c2_120, %c0_121, %c0_122] : memref<3x6x1x32xf32, #tpu.memory_space<vmem>>, vector<1x1x1x32xf32>
    %218 = vector.shape_cast %217 : vector<1x1x1x32xf32> to vector<1x32xf32>
    %c0_123 = arith.constant 0 : index
    %c3_124 = arith.constant 3 : index
    %c0_125 = arith.constant 0 : index
    %c0_126 = arith.constant 0 : index
    %219 = vector.load %arg7[%c0_123, %c3_124, %c0_125, %c0_126] : memref<3x6x1x32xf32, #tpu.memory_space<vmem>>, vector<1x1x1x32xf32>
    %220 = vector.shape_cast %219 : vector<1x1x1x32xf32> to vector<1x32xf32>
    %cst_127 = arith.constant dense<0.000000e+00> : vector<16x1xf32>
    %221 = tpu.matmul %216, %0, %cst_127 {dimension_numbers = #tpu.dot_dimension_numbers<[1], [0], [0], [1], [0, 0, 1, 1], [], []>} : vector<16x32xf32>, vector<32x1xf32>, vector<16x1xf32> -> vector<16x1xf32>
    %cst_128 = arith.constant 3.125000e-02 : f32
    %222 = vector.broadcast %cst_128 : f32 to vector<16x1xf32>
    %223 = arith.mulf %221, %222 : vector<16x1xf32>
    %224 = vector.broadcast %223 : vector<16x1xf32> to vector<16x32xf32>
    %225 = arith.subf %216, %224 : vector<16x32xf32>
    %226 = arith.mulf %225, %225 : vector<16x32xf32>
    %cst_129 = arith.constant dense<0.000000e+00> : vector<16x1xf32>
    %227 = tpu.matmul %226, %0, %cst_129 {dimension_numbers = #tpu.dot_dimension_numbers<[1], [0], [0], [1], [0, 0, 1, 1], [], []>} : vector<16x32xf32>, vector<32x1xf32>, vector<16x1xf32> -> vector<16x1xf32>
    %cst_130 = arith.constant 3.125000e-02 : f32
    %228 = vector.broadcast %cst_130 : f32 to vector<16x1xf32>
    %229 = arith.mulf %227, %228 : vector<16x1xf32>
    %cst_131 = arith.constant 9.99999974E-6 : f32
    %230 = vector.broadcast %cst_131 : f32 to vector<16x1xf32>
    %231 = arith.addf %229, %230 : vector<16x1xf32>
    %232 = math.rsqrt %231 : vector<16x1xf32>
    %233 = vector.broadcast %232 : vector<16x1xf32> to vector<16x32xf32>
    %234 = arith.mulf %225, %233 : vector<16x32xf32>
    %235 = vector.broadcast %218 : vector<1x32xf32> to vector<16x32xf32>
    %236 = arith.mulf %234, %235 : vector<16x32xf32>
    %237 = vector.broadcast %220 : vector<1x32xf32> to vector<16x32xf32>
    %238 = arith.addf %236, %237 : vector<16x32xf32>
    %c0_132 = arith.constant 0 : index
    %c0_133 = arith.constant 0 : index
    %c0_134 = arith.constant 0 : index
    %239 = vector.load %arg5[%c0_132, %c0_133, %c0_134] : memref<2x40x64xf32, #tpu.memory_space<vmem>>, vector<1x40x64xf32>
    %240 = vector.shape_cast %239 : vector<1x40x64xf32> to vector<40x64xf32>
    %241 = vector.extract_strided_slice %240 {offsets = [0, 0], sizes = [32, 64], strides = [1, 1]} : vector<40x64xf32> to vector<32x64xf32>
    %cst_135 = arith.constant dense<0.000000e+00> : vector<16x64xf32>
    %242 = tpu.matmul %238, %241, %cst_135 {dimension_numbers = #tpu.dot_dimension_numbers<[1], [0], [0], [1], [0, 0, 1, 1], [], []>} : vector<16x32xf32>, vector<32x64xf32>, vector<16x64xf32> -> vector<16x64xf32>
    %243 = vector.extract_strided_slice %240 {offsets = [32, 0], sizes = [1, 64], strides = [1, 1]} : vector<40x64xf32> to vector<1x64xf32>
    %244 = vector.broadcast %243 : vector<1x64xf32> to vector<16x64xf32>
    %245 = arith.addf %242, %244 : vector<16x64xf32>
    %cst_136 = arith.constant 0.000000e+00 : f32
    %246 = vector.broadcast %cst_136 : f32 to vector<16x64xf32>
    %247 = arith.maximumf %245, %246 : vector<16x64xf32>
    %c0_137 = arith.constant 0 : index
    %c0_138 = arith.constant 0 : index
    %c0_139 = arith.constant 0 : index
    %248 = vector.load %arg6[%c0_137, %c0_138, %c0_139] : memref<2x64x32xf32, #tpu.memory_space<vmem>>, vector<1x64x32xf32>
    %249 = vector.shape_cast %248 : vector<1x64x32xf32> to vector<64x32xf32>
    %cst_140 = arith.constant dense<0.000000e+00> : vector<16x32xf32>
    %250 = tpu.matmul %247, %249, %cst_140 {dimension_numbers = #tpu.dot_dimension_numbers<[1], [0], [0], [1], [0, 0, 1, 1], [], []>} : vector<16x64xf32>, vector<64x32xf32>, vector<16x32xf32> -> vector<16x32xf32>
    %251 = arith.addf %216, %250 : vector<16x32xf32>
    %c0_141 = arith.constant 0 : index
    %c5_142 = arith.constant 5 : index
    %c0_143 = arith.constant 0 : index
    %c0_144 = arith.constant 0 : index
    %252 = vector.load %arg7[%c0_141, %c5_142, %c0_143, %c0_144] : memref<3x6x1x32xf32, #tpu.memory_space<vmem>>, vector<1x1x1x32xf32>
    %253 = vector.shape_cast %252 : vector<1x1x1x32xf32> to vector<1x32xf32>
    %254 = vector.broadcast %253 : vector<1x32xf32> to vector<16x32xf32>
    %255 = arith.addf %251, %254 : vector<16x32xf32>
    %c1_145 = arith.constant 1 : index
    %c0_146 = arith.constant 0 : index
    %c0_147 = arith.constant 0 : index
    %c0_148 = arith.constant 0 : index
    %256 = vector.load %arg7[%c1_145, %c0_146, %c0_147, %c0_148] : memref<3x6x1x32xf32, #tpu.memory_space<vmem>>, vector<1x1x1x32xf32>
    %257 = vector.shape_cast %256 : vector<1x1x1x32xf32> to vector<1x32xf32>
    %c1_149 = arith.constant 1 : index
    %c1_150 = arith.constant 1 : index
    %c0_151 = arith.constant 0 : index
    %c0_152 = arith.constant 0 : index
    %258 = vector.load %arg7[%c1_149, %c1_150, %c0_151, %c0_152] : memref<3x6x1x32xf32, #tpu.memory_space<vmem>>, vector<1x1x1x32xf32>
    %259 = vector.shape_cast %258 : vector<1x1x1x32xf32> to vector<1x32xf32>
    %cst_153 = arith.constant dense<0.000000e+00> : vector<16x1xf32>
    %260 = tpu.matmul %255, %0, %cst_153 {dimension_numbers = #tpu.dot_dimension_numbers<[1], [0], [0], [1], [0, 0, 1, 1], [], []>} : vector<16x32xf32>, vector<32x1xf32>, vector<16x1xf32> -> vector<16x1xf32>
    %cst_154 = arith.constant 3.125000e-02 : f32
    %261 = vector.broadcast %cst_154 : f32 to vector<16x1xf32>
    %262 = arith.mulf %260, %261 : vector<16x1xf32>
    %263 = vector.broadcast %262 : vector<16x1xf32> to vector<16x32xf32>
    %264 = arith.subf %255, %263 : vector<16x32xf32>
    %265 = arith.mulf %264, %264 : vector<16x32xf32>
    %cst_155 = arith.constant dense<0.000000e+00> : vector<16x1xf32>
    %266 = tpu.matmul %265, %0, %cst_155 {dimension_numbers = #tpu.dot_dimension_numbers<[1], [0], [0], [1], [0, 0, 1, 1], [], []>} : vector<16x32xf32>, vector<32x1xf32>, vector<16x1xf32> -> vector<16x1xf32>
    %cst_156 = arith.constant 3.125000e-02 : f32
    %267 = vector.broadcast %cst_156 : f32 to vector<16x1xf32>
    %268 = arith.mulf %266, %267 : vector<16x1xf32>
    %cst_157 = arith.constant 9.99999974E-6 : f32
    %269 = vector.broadcast %cst_157 : f32 to vector<16x1xf32>
    %270 = arith.addf %268, %269 : vector<16x1xf32>
    %271 = math.rsqrt %270 : vector<16x1xf32>
    %272 = vector.broadcast %271 : vector<16x1xf32> to vector<16x32xf32>
    %273 = arith.mulf %264, %272 : vector<16x32xf32>
    %274 = vector.broadcast %257 : vector<1x32xf32> to vector<16x32xf32>
    %275 = arith.mulf %273, %274 : vector<16x32xf32>
    %276 = vector.broadcast %259 : vector<1x32xf32> to vector<16x32xf32>
    %277 = arith.addf %275, %276 : vector<16x32xf32>
    %c1_158 = arith.constant 1 : index
    %c4_159 = arith.constant 4 : index
    %c0_160 = arith.constant 0 : index
    %c0_161 = arith.constant 0 : index
    %278 = vector.load %arg7[%c1_158, %c4_159, %c0_160, %c0_161] : memref<3x6x1x32xf32, #tpu.memory_space<vmem>>, vector<1x1x1x32xf32>
    %279 = vector.shape_cast %278 : vector<1x1x1x32xf32> to vector<1x32xf32>
    %280 = vector.broadcast %279 : vector<1x32xf32> to vector<16x32xf32>
    %281 = arith.addf %255, %280 : vector<16x32xf32>
    %c12 = arith.constant 12 : index
    %c0_162 = arith.constant 0 : index
    %c0_163 = arith.constant 0 : index
    %282 = vector.load %arg2[%c12, %c0_162, %c0_163] : memref<24x32x8xf32, #tpu.memory_space<vmem>>, vector<1x32x8xf32>
    %283 = vector.shape_cast %282 : vector<1x32x8xf32> to vector<32x8xf32>
    %cst_164 = arith.constant dense<0.000000e+00> : vector<16x8xf32>
    %284 = tpu.matmul %277, %283, %cst_164 {dimension_numbers = #tpu.dot_dimension_numbers<[1], [0], [0], [1], [0, 0, 1, 1], [], []>} : vector<16x32xf32>, vector<32x8xf32>, vector<16x8xf32> -> vector<16x8xf32>
    %c4_165 = arith.constant 4 : index
    %c0_166 = arith.constant 0 : index
    %c0_167 = arith.constant 0 : index
    %285 = vector.load %arg3[%c4_165, %c0_166, %c0_167] : memref<8x1x8xf32, #tpu.memory_space<vmem>>, vector<1x1x8xf32>
    %286 = vector.shape_cast %285 : vector<1x1x8xf32> to vector<1x8xf32>
    %287 = vector.broadcast %286 : vector<1x8xf32> to vector<16x8xf32>
    %288 = arith.addf %284, %287 : vector<16x8xf32>
    %c13 = arith.constant 13 : index
    %c0_168 = arith.constant 0 : index
    %c0_169 = arith.constant 0 : index
    %289 = vector.load %arg2[%c13, %c0_168, %c0_169] : memref<24x32x8xf32, #tpu.memory_space<vmem>>, vector<1x32x8xf32>
    %290 = vector.shape_cast %289 : vector<1x32x8xf32> to vector<32x8xf32>
    %cst_170 = arith.constant dense<0.000000e+00> : vector<16x8xf32>
    %291 = tpu.matmul %277, %290, %cst_170 {dimension_numbers = #tpu.dot_dimension_numbers<[1], [0], [0], [1], [0, 0, 1, 1], [], []>} : vector<16x32xf32>, vector<32x8xf32>, vector<16x8xf32> -> vector<16x8xf32>
    %c14 = arith.constant 14 : index
    %c0_171 = arith.constant 0 : index
    %c0_172 = arith.constant 0 : index
    %292 = vector.load %arg2[%c14, %c0_171, %c0_172] : memref<24x32x8xf32, #tpu.memory_space<vmem>>, vector<1x32x8xf32>
    %293 = vector.shape_cast %292 : vector<1x32x8xf32> to vector<32x8xf32>
    %cst_173 = arith.constant dense<0.000000e+00> : vector<16x8xf32>
    %294 = tpu.matmul %277, %293, %cst_173 {dimension_numbers = #tpu.dot_dimension_numbers<[1], [0], [0], [1], [0, 0, 1, 1], [], []>} : vector<16x32xf32>, vector<32x8xf32>, vector<16x8xf32> -> vector<16x8xf32>
    %295 = vector.extract_strided_slice %288 {offsets = [0, 0], sizes = [8, 8], strides = [1, 1]} : vector<16x8xf32> to vector<8x8xf32>
    %296 = vector.extract_strided_slice %291 {offsets = [0, 0], sizes = [8, 8], strides = [1, 1]} : vector<16x8xf32> to vector<8x8xf32>
    %297 = vector.extract_strided_slice %294 {offsets = [0, 0], sizes = [8, 8], strides = [1, 1]} : vector<16x8xf32> to vector<8x8xf32>
    %cst_174 = arith.constant dense<0.000000e+00> : vector<8x8xf32>
    %298 = tpu.matmul %295, %296, %cst_174 {dimension_numbers = #tpu.dot_dimension_numbers<[1], [1], [0], [0], [0, 0, 1, 0], [], []>} : vector<8x8xf32>, vector<8x8xf32>, vector<8x8xf32> -> vector<8x8xf32>
    %cst_175 = arith.constant dense<0xFF800000> : vector<8xf32>
    %299 = vector.multi_reduction <maximumf>, %298, %cst_175 [1] : vector<8x8xf32> to vector<8xf32>
    %300 = vector.shape_cast %299 : vector<8xf32> to vector<8x1xf32>
    %301 = vector.broadcast %300 : vector<8x1xf32> to vector<8x8xf32>
    %302 = arith.subf %298, %301 : vector<8x8xf32>
    %303 = math.exp %302 : vector<8x8xf32>
    %cst_176 = arith.constant dense<0.000000e+00> : vector<8x1xf32>
    %304 = tpu.matmul %303, %1, %cst_176 {dimension_numbers = #tpu.dot_dimension_numbers<[1], [0], [0], [1], [0, 0, 1, 1], [], []>} : vector<8x8xf32>, vector<8x1xf32>, vector<8x1xf32> -> vector<8x1xf32>
    %305 = tpu.reciprocal %304 {approx = true} : vector<8x1xf32> -> vector<8x1xf32>
    %306 = vector.broadcast %305 : vector<8x1xf32> to vector<8x8xf32>
    %307 = arith.mulf %303, %306 : vector<8x8xf32>
    %cst_177 = arith.constant dense<0.000000e+00> : vector<8x8xf32>
    %308 = tpu.matmul %307, %297, %cst_177 {dimension_numbers = #tpu.dot_dimension_numbers<[1], [0], [0], [1], [0, 0, 1, 1], [], []>} : vector<8x8xf32>, vector<8x8xf32>, vector<8x8xf32> -> vector<8x8xf32>
    %309 = vector.extract_strided_slice %288 {offsets = [8, 0], sizes = [8, 8], strides = [1, 1]} : vector<16x8xf32> to vector<8x8xf32>
    %310 = vector.extract_strided_slice %291 {offsets = [8, 0], sizes = [8, 8], strides = [1, 1]} : vector<16x8xf32> to vector<8x8xf32>
    %311 = vector.extract_strided_slice %294 {offsets = [8, 0], sizes = [8, 8], strides = [1, 1]} : vector<16x8xf32> to vector<8x8xf32>
    %cst_178 = arith.constant dense<0.000000e+00> : vector<8x8xf32>
    %312 = tpu.matmul %309, %310, %cst_178 {dimension_numbers = #tpu.dot_dimension_numbers<[1], [1], [0], [0], [0, 0, 1, 0], [], []>} : vector<8x8xf32>, vector<8x8xf32>, vector<8x8xf32> -> vector<8x8xf32>
    %cst_179 = arith.constant dense<0xFF800000> : vector<8xf32>
    %313 = vector.multi_reduction <maximumf>, %312, %cst_179 [1] : vector<8x8xf32> to vector<8xf32>
    %314 = vector.shape_cast %313 : vector<8xf32> to vector<8x1xf32>
    %315 = vector.broadcast %314 : vector<8x1xf32> to vector<8x8xf32>
    %316 = arith.subf %312, %315 : vector<8x8xf32>
    %317 = math.exp %316 : vector<8x8xf32>
    %cst_180 = arith.constant dense<0.000000e+00> : vector<8x1xf32>
    %318 = tpu.matmul %317, %1, %cst_180 {dimension_numbers = #tpu.dot_dimension_numbers<[1], [0], [0], [1], [0, 0, 1, 1], [], []>} : vector<8x8xf32>, vector<8x1xf32>, vector<8x1xf32> -> vector<8x1xf32>
    %319 = tpu.reciprocal %318 {approx = true} : vector<8x1xf32> -> vector<8x1xf32>
    %320 = vector.broadcast %319 : vector<8x1xf32> to vector<8x8xf32>
    %321 = arith.mulf %317, %320 : vector<8x8xf32>
    %cst_181 = arith.constant dense<0.000000e+00> : vector<8x8xf32>
    %322 = tpu.matmul %321, %311, %cst_181 {dimension_numbers = #tpu.dot_dimension_numbers<[1], [0], [0], [1], [0, 0, 1, 1], [], []>} : vector<8x8xf32>, vector<8x8xf32>, vector<8x8xf32> -> vector<8x8xf32>
    %323 = tpu.concatenate %308, %322 in 0 : vector<8x8xf32>, vector<8x8xf32> -> vector<16x8xf32>
    %c4_182 = arith.constant 4 : index
    %c0_183 = arith.constant 0 : index
    %c0_184 = arith.constant 0 : index
    %324 = vector.load %arg4[%c4_182, %c0_183, %c0_184] : memref<8x8x32xf32, #tpu.memory_space<vmem>>, vector<1x8x32xf32>
    %325 = vector.shape_cast %324 : vector<1x8x32xf32> to vector<8x32xf32>
    %cst_185 = arith.constant dense<0.000000e+00> : vector<16x32xf32>
    %326 = tpu.matmul %323, %325, %cst_185 {dimension_numbers = #tpu.dot_dimension_numbers<[1], [0], [0], [1], [0, 0, 1, 1], [], []>} : vector<16x8xf32>, vector<8x32xf32>, vector<16x32xf32> -> vector<16x32xf32>
    %327 = arith.addf %281, %326 : vector<16x32xf32>
    %c15 = arith.constant 15 : index
    %c0_186 = arith.constant 0 : index
    %c0_187 = arith.constant 0 : index
    %328 = vector.load %arg2[%c15, %c0_186, %c0_187] : memref<24x32x8xf32, #tpu.memory_space<vmem>>, vector<1x32x8xf32>
    %329 = vector.shape_cast %328 : vector<1x32x8xf32> to vector<32x8xf32>
    %cst_188 = arith.constant dense<0.000000e+00> : vector<16x8xf32>
    %330 = tpu.matmul %277, %329, %cst_188 {dimension_numbers = #tpu.dot_dimension_numbers<[1], [0], [0], [1], [0, 0, 1, 1], [], []>} : vector<16x32xf32>, vector<32x8xf32>, vector<16x8xf32> -> vector<16x8xf32>
    %c5_189 = arith.constant 5 : index
    %c0_190 = arith.constant 0 : index
    %c0_191 = arith.constant 0 : index
    %331 = vector.load %arg3[%c5_189, %c0_190, %c0_191] : memref<8x1x8xf32, #tpu.memory_space<vmem>>, vector<1x1x8xf32>
    %332 = vector.shape_cast %331 : vector<1x1x8xf32> to vector<1x8xf32>
    %333 = vector.broadcast %332 : vector<1x8xf32> to vector<16x8xf32>
    %334 = arith.addf %330, %333 : vector<16x8xf32>
    %c16 = arith.constant 16 : index
    %c0_192 = arith.constant 0 : index
    %c0_193 = arith.constant 0 : index
    %335 = vector.load %arg2[%c16, %c0_192, %c0_193] : memref<24x32x8xf32, #tpu.memory_space<vmem>>, vector<1x32x8xf32>
    %336 = vector.shape_cast %335 : vector<1x32x8xf32> to vector<32x8xf32>
    %cst_194 = arith.constant dense<0.000000e+00> : vector<16x8xf32>
    %337 = tpu.matmul %277, %336, %cst_194 {dimension_numbers = #tpu.dot_dimension_numbers<[1], [0], [0], [1], [0, 0, 1, 1], [], []>} : vector<16x32xf32>, vector<32x8xf32>, vector<16x8xf32> -> vector<16x8xf32>
    %c17 = arith.constant 17 : index
    %c0_195 = arith.constant 0 : index
    %c0_196 = arith.constant 0 : index
    %338 = vector.load %arg2[%c17, %c0_195, %c0_196] : memref<24x32x8xf32, #tpu.memory_space<vmem>>, vector<1x32x8xf32>
    %339 = vector.shape_cast %338 : vector<1x32x8xf32> to vector<32x8xf32>
    %cst_197 = arith.constant dense<0.000000e+00> : vector<16x8xf32>
    %340 = tpu.matmul %277, %339, %cst_197 {dimension_numbers = #tpu.dot_dimension_numbers<[1], [0], [0], [1], [0, 0, 1, 1], [], []>} : vector<16x32xf32>, vector<32x8xf32>, vector<16x8xf32> -> vector<16x8xf32>
    %341 = vector.extract_strided_slice %334 {offsets = [0, 0], sizes = [8, 8], strides = [1, 1]} : vector<16x8xf32> to vector<8x8xf32>
    %342 = vector.extract_strided_slice %337 {offsets = [0, 0], sizes = [8, 8], strides = [1, 1]} : vector<16x8xf32> to vector<8x8xf32>
    %343 = vector.extract_strided_slice %340 {offsets = [0, 0], sizes = [8, 8], strides = [1, 1]} : vector<16x8xf32> to vector<8x8xf32>
    %cst_198 = arith.constant dense<0.000000e+00> : vector<8x8xf32>
    %344 = tpu.matmul %341, %342, %cst_198 {dimension_numbers = #tpu.dot_dimension_numbers<[1], [1], [0], [0], [0, 0, 1, 0], [], []>} : vector<8x8xf32>, vector<8x8xf32>, vector<8x8xf32> -> vector<8x8xf32>
    %cst_199 = arith.constant dense<0xFF800000> : vector<8xf32>
    %345 = vector.multi_reduction <maximumf>, %344, %cst_199 [1] : vector<8x8xf32> to vector<8xf32>
    %346 = vector.shape_cast %345 : vector<8xf32> to vector<8x1xf32>
    %347 = vector.broadcast %346 : vector<8x1xf32> to vector<8x8xf32>
    %348 = arith.subf %344, %347 : vector<8x8xf32>
    %349 = math.exp %348 : vector<8x8xf32>
    %cst_200 = arith.constant dense<0.000000e+00> : vector<8x1xf32>
    %350 = tpu.matmul %349, %1, %cst_200 {dimension_numbers = #tpu.dot_dimension_numbers<[1], [0], [0], [1], [0, 0, 1, 1], [], []>} : vector<8x8xf32>, vector<8x1xf32>, vector<8x1xf32> -> vector<8x1xf32>
    %351 = tpu.reciprocal %350 {approx = true} : vector<8x1xf32> -> vector<8x1xf32>
    %352 = vector.broadcast %351 : vector<8x1xf32> to vector<8x8xf32>
    %353 = arith.mulf %349, %352 : vector<8x8xf32>
    %cst_201 = arith.constant dense<0.000000e+00> : vector<8x8xf32>
    %354 = tpu.matmul %353, %343, %cst_201 {dimension_numbers = #tpu.dot_dimension_numbers<[1], [0], [0], [1], [0, 0, 1, 1], [], []>} : vector<8x8xf32>, vector<8x8xf32>, vector<8x8xf32> -> vector<8x8xf32>
    %355 = vector.extract_strided_slice %334 {offsets = [8, 0], sizes = [8, 8], strides = [1, 1]} : vector<16x8xf32> to vector<8x8xf32>
    %356 = vector.extract_strided_slice %337 {offsets = [8, 0], sizes = [8, 8], strides = [1, 1]} : vector<16x8xf32> to vector<8x8xf32>
    %357 = vector.extract_strided_slice %340 {offsets = [8, 0], sizes = [8, 8], strides = [1, 1]} : vector<16x8xf32> to vector<8x8xf32>
    %cst_202 = arith.constant dense<0.000000e+00> : vector<8x8xf32>
    %358 = tpu.matmul %355, %356, %cst_202 {dimension_numbers = #tpu.dot_dimension_numbers<[1], [1], [0], [0], [0, 0, 1, 0], [], []>} : vector<8x8xf32>, vector<8x8xf32>, vector<8x8xf32> -> vector<8x8xf32>
    %cst_203 = arith.constant dense<0xFF800000> : vector<8xf32>
    %359 = vector.multi_reduction <maximumf>, %358, %cst_203 [1] : vector<8x8xf32> to vector<8xf32>
    %360 = vector.shape_cast %359 : vector<8xf32> to vector<8x1xf32>
    %361 = vector.broadcast %360 : vector<8x1xf32> to vector<8x8xf32>
    %362 = arith.subf %358, %361 : vector<8x8xf32>
    %363 = math.exp %362 : vector<8x8xf32>
    %cst_204 = arith.constant dense<0.000000e+00> : vector<8x1xf32>
    %364 = tpu.matmul %363, %1, %cst_204 {dimension_numbers = #tpu.dot_dimension_numbers<[1], [0], [0], [1], [0, 0, 1, 1], [], []>} : vector<8x8xf32>, vector<8x1xf32>, vector<8x1xf32> -> vector<8x1xf32>
    %365 = tpu.reciprocal %364 {approx = true} : vector<8x1xf32> -> vector<8x1xf32>
    %366 = vector.broadcast %365 : vector<8x1xf32> to vector<8x8xf32>
    %367 = arith.mulf %363, %366 : vector<8x8xf32>
    %cst_205 = arith.constant dense<0.000000e+00> : vector<8x8xf32>
    %368 = tpu.matmul %367, %357, %cst_205 {dimension_numbers = #tpu.dot_dimension_numbers<[1], [0], [0], [1], [0, 0, 1, 1], [], []>} : vector<8x8xf32>, vector<8x8xf32>, vector<8x8xf32> -> vector<8x8xf32>
    %369 = tpu.concatenate %354, %368 in 0 : vector<8x8xf32>, vector<8x8xf32> -> vector<16x8xf32>
    %c5_206 = arith.constant 5 : index
    %c0_207 = arith.constant 0 : index
    %c0_208 = arith.constant 0 : index
    %370 = vector.load %arg4[%c5_206, %c0_207, %c0_208] : memref<8x8x32xf32, #tpu.memory_space<vmem>>, vector<1x8x32xf32>
    %371 = vector.shape_cast %370 : vector<1x8x32xf32> to vector<8x32xf32>
    %cst_209 = arith.constant dense<0.000000e+00> : vector<16x32xf32>
    %372 = tpu.matmul %369, %371, %cst_209 {dimension_numbers = #tpu.dot_dimension_numbers<[1], [0], [0], [1], [0, 0, 1, 1], [], []>} : vector<16x8xf32>, vector<8x32xf32>, vector<16x32xf32> -> vector<16x32xf32>
    %373 = arith.addf %327, %372 : vector<16x32xf32>
    %c18 = arith.constant 18 : index
    %c0_210 = arith.constant 0 : index
    %c0_211 = arith.constant 0 : index
    %374 = vector.load %arg2[%c18, %c0_210, %c0_211] : memref<24x32x8xf32, #tpu.memory_space<vmem>>, vector<1x32x8xf32>
    %375 = vector.shape_cast %374 : vector<1x32x8xf32> to vector<32x8xf32>
    %cst_212 = arith.constant dense<0.000000e+00> : vector<16x8xf32>
    %376 = tpu.matmul %277, %375, %cst_212 {dimension_numbers = #tpu.dot_dimension_numbers<[1], [0], [0], [1], [0, 0, 1, 1], [], []>} : vector<16x32xf32>, vector<32x8xf32>, vector<16x8xf32> -> vector<16x8xf32>
    %c6_213 = arith.constant 6 : index
    %c0_214 = arith.constant 0 : index
    %c0_215 = arith.constant 0 : index
    %377 = vector.load %arg3[%c6_213, %c0_214, %c0_215] : memref<8x1x8xf32, #tpu.memory_space<vmem>>, vector<1x1x8xf32>
    %378 = vector.shape_cast %377 : vector<1x1x8xf32> to vector<1x8xf32>
    %379 = vector.broadcast %378 : vector<1x8xf32> to vector<16x8xf32>
    %380 = arith.addf %376, %379 : vector<16x8xf32>
    %c19 = arith.constant 19 : index
    %c0_216 = arith.constant 0 : index
    %c0_217 = arith.constant 0 : index
    %381 = vector.load %arg2[%c19, %c0_216, %c0_217] : memref<24x32x8xf32, #tpu.memory_space<vmem>>, vector<1x32x8xf32>
    %382 = vector.shape_cast %381 : vector<1x32x8xf32> to vector<32x8xf32>
    %cst_218 = arith.constant dense<0.000000e+00> : vector<16x8xf32>
    %383 = tpu.matmul %277, %382, %cst_218 {dimension_numbers = #tpu.dot_dimension_numbers<[1], [0], [0], [1], [0, 0, 1, 1], [], []>} : vector<16x32xf32>, vector<32x8xf32>, vector<16x8xf32> -> vector<16x8xf32>
    %c20 = arith.constant 20 : index
    %c0_219 = arith.constant 0 : index
    %c0_220 = arith.constant 0 : index
    %384 = vector.load %arg2[%c20, %c0_219, %c0_220] : memref<24x32x8xf32, #tpu.memory_space<vmem>>, vector<1x32x8xf32>
    %385 = vector.shape_cast %384 : vector<1x32x8xf32> to vector<32x8xf32>
    %cst_221 = arith.constant dense<0.000000e+00> : vector<16x8xf32>
    %386 = tpu.matmul %277, %385, %cst_221 {dimension_numbers = #tpu.dot_dimension_numbers<[1], [0], [0], [1], [0, 0, 1, 1], [], []>} : vector<16x32xf32>, vector<32x8xf32>, vector<16x8xf32> -> vector<16x8xf32>
    %387 = vector.extract_strided_slice %380 {offsets = [0, 0], sizes = [8, 8], strides = [1, 1]} : vector<16x8xf32> to vector<8x8xf32>
    %388 = vector.extract_strided_slice %383 {offsets = [0, 0], sizes = [8, 8], strides = [1, 1]} : vector<16x8xf32> to vector<8x8xf32>
    %389 = vector.extract_strided_slice %386 {offsets = [0, 0], sizes = [8, 8], strides = [1, 1]} : vector<16x8xf32> to vector<8x8xf32>
    %cst_222 = arith.constant dense<0.000000e+00> : vector<8x8xf32>
    %390 = tpu.matmul %387, %388, %cst_222 {dimension_numbers = #tpu.dot_dimension_numbers<[1], [1], [0], [0], [0, 0, 1, 0], [], []>} : vector<8x8xf32>, vector<8x8xf32>, vector<8x8xf32> -> vector<8x8xf32>
    %cst_223 = arith.constant dense<0xFF800000> : vector<8xf32>
    %391 = vector.multi_reduction <maximumf>, %390, %cst_223 [1] : vector<8x8xf32> to vector<8xf32>
    %392 = vector.shape_cast %391 : vector<8xf32> to vector<8x1xf32>
    %393 = vector.broadcast %392 : vector<8x1xf32> to vector<8x8xf32>
    %394 = arith.subf %390, %393 : vector<8x8xf32>
    %395 = math.exp %394 : vector<8x8xf32>
    %cst_224 = arith.constant dense<0.000000e+00> : vector<8x1xf32>
    %396 = tpu.matmul %395, %1, %cst_224 {dimension_numbers = #tpu.dot_dimension_numbers<[1], [0], [0], [1], [0, 0, 1, 1], [], []>} : vector<8x8xf32>, vector<8x1xf32>, vector<8x1xf32> -> vector<8x1xf32>
    %397 = tpu.reciprocal %396 {approx = true} : vector<8x1xf32> -> vector<8x1xf32>
    %398 = vector.broadcast %397 : vector<8x1xf32> to vector<8x8xf32>
    %399 = arith.mulf %395, %398 : vector<8x8xf32>
    %cst_225 = arith.constant dense<0.000000e+00> : vector<8x8xf32>
    %400 = tpu.matmul %399, %389, %cst_225 {dimension_numbers = #tpu.dot_dimension_numbers<[1], [0], [0], [1], [0, 0, 1, 1], [], []>} : vector<8x8xf32>, vector<8x8xf32>, vector<8x8xf32> -> vector<8x8xf32>
    %401 = vector.extract_strided_slice %380 {offsets = [8, 0], sizes = [8, 8], strides = [1, 1]} : vector<16x8xf32> to vector<8x8xf32>
    %402 = vector.extract_strided_slice %383 {offsets = [8, 0], sizes = [8, 8], strides = [1, 1]} : vector<16x8xf32> to vector<8x8xf32>
    %403 = vector.extract_strided_slice %386 {offsets = [8, 0], sizes = [8, 8], strides = [1, 1]} : vector<16x8xf32> to vector<8x8xf32>
    %cst_226 = arith.constant dense<0.000000e+00> : vector<8x8xf32>
    %404 = tpu.matmul %401, %402, %cst_226 {dimension_numbers = #tpu.dot_dimension_numbers<[1], [1], [0], [0], [0, 0, 1, 0], [], []>} : vector<8x8xf32>, vector<8x8xf32>, vector<8x8xf32> -> vector<8x8xf32>
    %cst_227 = arith.constant dense<0xFF800000> : vector<8xf32>
    %405 = vector.multi_reduction <maximumf>, %404, %cst_227 [1] : vector<8x8xf32> to vector<8xf32>
    %406 = vector.shape_cast %405 : vector<8xf32> to vector<8x1xf32>
    %407 = vector.broadcast %406 : vector<8x1xf32> to vector<8x8xf32>
    %408 = arith.subf %404, %407 : vector<8x8xf32>
    %409 = math.exp %408 : vector<8x8xf32>
    %cst_228 = arith.constant dense<0.000000e+00> : vector<8x1xf32>
    %410 = tpu.matmul %409, %1, %cst_228 {dimension_numbers = #tpu.dot_dimension_numbers<[1], [0], [0], [1], [0, 0, 1, 1], [], []>} : vector<8x8xf32>, vector<8x1xf32>, vector<8x1xf32> -> vector<8x1xf32>
    %411 = tpu.reciprocal %410 {approx = true} : vector<8x1xf32> -> vector<8x1xf32>
    %412 = vector.broadcast %411 : vector<8x1xf32> to vector<8x8xf32>
    %413 = arith.mulf %409, %412 : vector<8x8xf32>
    %cst_229 = arith.constant dense<0.000000e+00> : vector<8x8xf32>
    %414 = tpu.matmul %413, %403, %cst_229 {dimension_numbers = #tpu.dot_dimension_numbers<[1], [0], [0], [1], [0, 0, 1, 1], [], []>} : vector<8x8xf32>, vector<8x8xf32>, vector<8x8xf32> -> vector<8x8xf32>
    %415 = tpu.concatenate %400, %414 in 0 : vector<8x8xf32>, vector<8x8xf32> -> vector<16x8xf32>
    %c6_230 = arith.constant 6 : index
    %c0_231 = arith.constant 0 : index
    %c0_232 = arith.constant 0 : index
    %416 = vector.load %arg4[%c6_230, %c0_231, %c0_232] : memref<8x8x32xf32, #tpu.memory_space<vmem>>, vector<1x8x32xf32>
    %417 = vector.shape_cast %416 : vector<1x8x32xf32> to vector<8x32xf32>
    %cst_233 = arith.constant dense<0.000000e+00> : vector<16x32xf32>
    %418 = tpu.matmul %415, %417, %cst_233 {dimension_numbers = #tpu.dot_dimension_numbers<[1], [0], [0], [1], [0, 0, 1, 1], [], []>} : vector<16x8xf32>, vector<8x32xf32>, vector<16x32xf32> -> vector<16x32xf32>
    %419 = arith.addf %373, %418 : vector<16x32xf32>
    %c21 = arith.constant 21 : index
    %c0_234 = arith.constant 0 : index
    %c0_235 = arith.constant 0 : index
    %420 = vector.load %arg2[%c21, %c0_234, %c0_235] : memref<24x32x8xf32, #tpu.memory_space<vmem>>, vector<1x32x8xf32>
    %421 = vector.shape_cast %420 : vector<1x32x8xf32> to vector<32x8xf32>
    %cst_236 = arith.constant dense<0.000000e+00> : vector<16x8xf32>
    %422 = tpu.matmul %277, %421, %cst_236 {dimension_numbers = #tpu.dot_dimension_numbers<[1], [0], [0], [1], [0, 0, 1, 1], [], []>} : vector<16x32xf32>, vector<32x8xf32>, vector<16x8xf32> -> vector<16x8xf32>
    %c7_237 = arith.constant 7 : index
    %c0_238 = arith.constant 0 : index
    %c0_239 = arith.constant 0 : index
    %423 = vector.load %arg3[%c7_237, %c0_238, %c0_239] : memref<8x1x8xf32, #tpu.memory_space<vmem>>, vector<1x1x8xf32>
    %424 = vector.shape_cast %423 : vector<1x1x8xf32> to vector<1x8xf32>
    %425 = vector.broadcast %424 : vector<1x8xf32> to vector<16x8xf32>
    %426 = arith.addf %422, %425 : vector<16x8xf32>
    %c22 = arith.constant 22 : index
    %c0_240 = arith.constant 0 : index
    %c0_241 = arith.constant 0 : index
    %427 = vector.load %arg2[%c22, %c0_240, %c0_241] : memref<24x32x8xf32, #tpu.memory_space<vmem>>, vector<1x32x8xf32>
    %428 = vector.shape_cast %427 : vector<1x32x8xf32> to vector<32x8xf32>
    %cst_242 = arith.constant dense<0.000000e+00> : vector<16x8xf32>
    %429 = tpu.matmul %277, %428, %cst_242 {dimension_numbers = #tpu.dot_dimension_numbers<[1], [0], [0], [1], [0, 0, 1, 1], [], []>} : vector<16x32xf32>, vector<32x8xf32>, vector<16x8xf32> -> vector<16x8xf32>
    %c23 = arith.constant 23 : index
    %c0_243 = arith.constant 0 : index
    %c0_244 = arith.constant 0 : index
    %430 = vector.load %arg2[%c23, %c0_243, %c0_244] : memref<24x32x8xf32, #tpu.memory_space<vmem>>, vector<1x32x8xf32>
    %431 = vector.shape_cast %430 : vector<1x32x8xf32> to vector<32x8xf32>
    %cst_245 = arith.constant dense<0.000000e+00> : vector<16x8xf32>
    %432 = tpu.matmul %277, %431, %cst_245 {dimension_numbers = #tpu.dot_dimension_numbers<[1], [0], [0], [1], [0, 0, 1, 1], [], []>} : vector<16x32xf32>, vector<32x8xf32>, vector<16x8xf32> -> vector<16x8xf32>
    %433 = vector.extract_strided_slice %426 {offsets = [0, 0], sizes = [8, 8], strides = [1, 1]} : vector<16x8xf32> to vector<8x8xf32>
    %434 = vector.extract_strided_slice %429 {offsets = [0, 0], sizes = [8, 8], strides = [1, 1]} : vector<16x8xf32> to vector<8x8xf32>
    %435 = vector.extract_strided_slice %432 {offsets = [0, 0], sizes = [8, 8], strides = [1, 1]} : vector<16x8xf32> to vector<8x8xf32>
    %cst_246 = arith.constant dense<0.000000e+00> : vector<8x8xf32>
    %436 = tpu.matmul %433, %434, %cst_246 {dimension_numbers = #tpu.dot_dimension_numbers<[1], [1], [0], [0], [0, 0, 1, 0], [], []>} : vector<8x8xf32>, vector<8x8xf32>, vector<8x8xf32> -> vector<8x8xf32>
    %cst_247 = arith.constant dense<0xFF800000> : vector<8xf32>
    %437 = vector.multi_reduction <maximumf>, %436, %cst_247 [1] : vector<8x8xf32> to vector<8xf32>
    %438 = vector.shape_cast %437 : vector<8xf32> to vector<8x1xf32>
    %439 = vector.broadcast %438 : vector<8x1xf32> to vector<8x8xf32>
    %440 = arith.subf %436, %439 : vector<8x8xf32>
    %441 = math.exp %440 : vector<8x8xf32>
    %cst_248 = arith.constant dense<0.000000e+00> : vector<8x1xf32>
    %442 = tpu.matmul %441, %1, %cst_248 {dimension_numbers = #tpu.dot_dimension_numbers<[1], [0], [0], [1], [0, 0, 1, 1], [], []>} : vector<8x8xf32>, vector<8x1xf32>, vector<8x1xf32> -> vector<8x1xf32>
    %443 = tpu.reciprocal %442 {approx = true} : vector<8x1xf32> -> vector<8x1xf32>
    %444 = vector.broadcast %443 : vector<8x1xf32> to vector<8x8xf32>
    %445 = arith.mulf %441, %444 : vector<8x8xf32>
    %cst_249 = arith.constant dense<0.000000e+00> : vector<8x8xf32>
    %446 = tpu.matmul %445, %435, %cst_249 {dimension_numbers = #tpu.dot_dimension_numbers<[1], [0], [0], [1], [0, 0, 1, 1], [], []>} : vector<8x8xf32>, vector<8x8xf32>, vector<8x8xf32> -> vector<8x8xf32>
    %447 = vector.extract_strided_slice %426 {offsets = [8, 0], sizes = [8, 8], strides = [1, 1]} : vector<16x8xf32> to vector<8x8xf32>
    %448 = vector.extract_strided_slice %429 {offsets = [8, 0], sizes = [8, 8], strides = [1, 1]} : vector<16x8xf32> to vector<8x8xf32>
    %449 = vector.extract_strided_slice %432 {offsets = [8, 0], sizes = [8, 8], strides = [1, 1]} : vector<16x8xf32> to vector<8x8xf32>
    %cst_250 = arith.constant dense<0.000000e+00> : vector<8x8xf32>
    %450 = tpu.matmul %447, %448, %cst_250 {dimension_numbers = #tpu.dot_dimension_numbers<[1], [1], [0], [0], [0, 0, 1, 0], [], []>} : vector<8x8xf32>, vector<8x8xf32>, vector<8x8xf32> -> vector<8x8xf32>
    %cst_251 = arith.constant dense<0xFF800000> : vector<8xf32>
    %451 = vector.multi_reduction <maximumf>, %450, %cst_251 [1] : vector<8x8xf32> to vector<8xf32>
    %452 = vector.shape_cast %451 : vector<8xf32> to vector<8x1xf32>
    %453 = vector.broadcast %452 : vector<8x1xf32> to vector<8x8xf32>
    %454 = arith.subf %450, %453 : vector<8x8xf32>
    %455 = math.exp %454 : vector<8x8xf32>
    %cst_252 = arith.constant dense<0.000000e+00> : vector<8x1xf32>
    %456 = tpu.matmul %455, %1, %cst_252 {dimension_numbers = #tpu.dot_dimension_numbers<[1], [0], [0], [1], [0, 0, 1, 1], [], []>} : vector<8x8xf32>, vector<8x1xf32>, vector<8x1xf32> -> vector<8x1xf32>
    %457 = tpu.reciprocal %456 {approx = true} : vector<8x1xf32> -> vector<8x1xf32>
    %458 = vector.broadcast %457 : vector<8x1xf32> to vector<8x8xf32>
    %459 = arith.mulf %455, %458 : vector<8x8xf32>
    %cst_253 = arith.constant dense<0.000000e+00> : vector<8x8xf32>
    %460 = tpu.matmul %459, %449, %cst_253 {dimension_numbers = #tpu.dot_dimension_numbers<[1], [0], [0], [1], [0, 0, 1, 1], [], []>} : vector<8x8xf32>, vector<8x8xf32>, vector<8x8xf32> -> vector<8x8xf32>
    %461 = tpu.concatenate %446, %460 in 0 : vector<8x8xf32>, vector<8x8xf32> -> vector<16x8xf32>
    %c7_254 = arith.constant 7 : index
    %c0_255 = arith.constant 0 : index
    %c0_256 = arith.constant 0 : index
    %462 = vector.load %arg4[%c7_254, %c0_255, %c0_256] : memref<8x8x32xf32, #tpu.memory_space<vmem>>, vector<1x8x32xf32>
    %463 = vector.shape_cast %462 : vector<1x8x32xf32> to vector<8x32xf32>
    %cst_257 = arith.constant dense<0.000000e+00> : vector<16x32xf32>
    %464 = tpu.matmul %461, %463, %cst_257 {dimension_numbers = #tpu.dot_dimension_numbers<[1], [0], [0], [1], [0, 0, 1, 1], [], []>} : vector<16x8xf32>, vector<8x32xf32>, vector<16x32xf32> -> vector<16x32xf32>
    %465 = arith.addf %419, %464 : vector<16x32xf32>
    %c1_258 = arith.constant 1 : index
    %c2_259 = arith.constant 2 : index
    %c0_260 = arith.constant 0 : index
    %c0_261 = arith.constant 0 : index
    %466 = vector.load %arg7[%c1_258, %c2_259, %c0_260, %c0_261] : memref<3x6x1x32xf32, #tpu.memory_space<vmem>>, vector<1x1x1x32xf32>
    %467 = vector.shape_cast %466 : vector<1x1x1x32xf32> to vector<1x32xf32>
    %c1_262 = arith.constant 1 : index
    %c3_263 = arith.constant 3 : index
    %c0_264 = arith.constant 0 : index
    %c0_265 = arith.constant 0 : index
    %468 = vector.load %arg7[%c1_262, %c3_263, %c0_264, %c0_265] : memref<3x6x1x32xf32, #tpu.memory_space<vmem>>, vector<1x1x1x32xf32>
    %469 = vector.shape_cast %468 : vector<1x1x1x32xf32> to vector<1x32xf32>
    %cst_266 = arith.constant dense<0.000000e+00> : vector<16x1xf32>
    %470 = tpu.matmul %465, %0, %cst_266 {dimension_numbers = #tpu.dot_dimension_numbers<[1], [0], [0], [1], [0, 0, 1, 1], [], []>} : vector<16x32xf32>, vector<32x1xf32>, vector<16x1xf32> -> vector<16x1xf32>
    %cst_267 = arith.constant 3.125000e-02 : f32
    %471 = vector.broadcast %cst_267 : f32 to vector<16x1xf32>
    %472 = arith.mulf %470, %471 : vector<16x1xf32>
    %473 = vector.broadcast %472 : vector<16x1xf32> to vector<16x32xf32>
    %474 = arith.subf %465, %473 : vector<16x32xf32>
    %475 = arith.mulf %474, %474 : vector<16x32xf32>
    %cst_268 = arith.constant dense<0.000000e+00> : vector<16x1xf32>
    %476 = tpu.matmul %475, %0, %cst_268 {dimension_numbers = #tpu.dot_dimension_numbers<[1], [0], [0], [1], [0, 0, 1, 1], [], []>} : vector<16x32xf32>, vector<32x1xf32>, vector<16x1xf32> -> vector<16x1xf32>
    %cst_269 = arith.constant 3.125000e-02 : f32
    %477 = vector.broadcast %cst_269 : f32 to vector<16x1xf32>
    %478 = arith.mulf %476, %477 : vector<16x1xf32>
    %cst_270 = arith.constant 9.99999974E-6 : f32
    %479 = vector.broadcast %cst_270 : f32 to vector<16x1xf32>
    %480 = arith.addf %478, %479 : vector<16x1xf32>
    %481 = math.rsqrt %480 : vector<16x1xf32>
    %482 = vector.broadcast %481 : vector<16x1xf32> to vector<16x32xf32>
    %483 = arith.mulf %474, %482 : vector<16x32xf32>
    %484 = vector.broadcast %467 : vector<1x32xf32> to vector<16x32xf32>
    %485 = arith.mulf %483, %484 : vector<16x32xf32>
    %486 = vector.broadcast %469 : vector<1x32xf32> to vector<16x32xf32>
    %487 = arith.addf %485, %486 : vector<16x32xf32>
    %c1_271 = arith.constant 1 : index
    %c0_272 = arith.constant 0 : index
    %c0_273 = arith.constant 0 : index
    %488 = vector.load %arg5[%c1_271, %c0_272, %c0_273] : memref<2x40x64xf32, #tpu.memory_space<vmem>>, vector<1x40x64xf32>
    %489 = vector.shape_cast %488 : vector<1x40x64xf32> to vector<40x64xf32>
    %490 = vector.extract_strided_slice %489 {offsets = [0, 0], sizes = [32, 64], strides = [1, 1]} : vector<40x64xf32> to vector<32x64xf32>
    %cst_274 = arith.constant dense<0.000000e+00> : vector<16x64xf32>
    %491 = tpu.matmul %487, %490, %cst_274 {dimension_numbers = #tpu.dot_dimension_numbers<[1], [0], [0], [1], [0, 0, 1, 1], [], []>} : vector<16x32xf32>, vector<32x64xf32>, vector<16x64xf32> -> vector<16x64xf32>
    %492 = vector.extract_strided_slice %489 {offsets = [32, 0], sizes = [1, 64], strides = [1, 1]} : vector<40x64xf32> to vector<1x64xf32>
    %493 = vector.broadcast %492 : vector<1x64xf32> to vector<16x64xf32>
    %494 = arith.addf %491, %493 : vector<16x64xf32>
    %cst_275 = arith.constant 0.000000e+00 : f32
    %495 = vector.broadcast %cst_275 : f32 to vector<16x64xf32>
    %496 = arith.maximumf %494, %495 : vector<16x64xf32>
    %c1_276 = arith.constant 1 : index
    %c0_277 = arith.constant 0 : index
    %c0_278 = arith.constant 0 : index
    %497 = vector.load %arg6[%c1_276, %c0_277, %c0_278] : memref<2x64x32xf32, #tpu.memory_space<vmem>>, vector<1x64x32xf32>
    %498 = vector.shape_cast %497 : vector<1x64x32xf32> to vector<64x32xf32>
    %cst_279 = arith.constant dense<0.000000e+00> : vector<16x32xf32>
    %499 = tpu.matmul %496, %498, %cst_279 {dimension_numbers = #tpu.dot_dimension_numbers<[1], [0], [0], [1], [0, 0, 1, 1], [], []>} : vector<16x64xf32>, vector<64x32xf32>, vector<16x32xf32> -> vector<16x32xf32>
    %500 = arith.addf %465, %499 : vector<16x32xf32>
    %c1_280 = arith.constant 1 : index
    %c5_281 = arith.constant 5 : index
    %c0_282 = arith.constant 0 : index
    %c0_283 = arith.constant 0 : index
    %501 = vector.load %arg7[%c1_280, %c5_281, %c0_282, %c0_283] : memref<3x6x1x32xf32, #tpu.memory_space<vmem>>, vector<1x1x1x32xf32>
    %502 = vector.shape_cast %501 : vector<1x1x1x32xf32> to vector<1x32xf32>
    %503 = vector.broadcast %502 : vector<1x32xf32> to vector<16x32xf32>
    %504 = arith.addf %500, %503 : vector<16x32xf32>
    %c2_284 = arith.constant 2 : index
    %c0_285 = arith.constant 0 : index
    %c0_286 = arith.constant 0 : index
    %c0_287 = arith.constant 0 : index
    %505 = vector.load %arg7[%c2_284, %c0_285, %c0_286, %c0_287] : memref<3x6x1x32xf32, #tpu.memory_space<vmem>>, vector<1x1x1x32xf32>
    %506 = vector.shape_cast %505 : vector<1x1x1x32xf32> to vector<1x32xf32>
    %c2_288 = arith.constant 2 : index
    %c1_289 = arith.constant 1 : index
    %c0_290 = arith.constant 0 : index
    %c0_291 = arith.constant 0 : index
    %507 = vector.load %arg7[%c2_288, %c1_289, %c0_290, %c0_291] : memref<3x6x1x32xf32, #tpu.memory_space<vmem>>, vector<1x1x1x32xf32>
    %508 = vector.shape_cast %507 : vector<1x1x1x32xf32> to vector<1x32xf32>
    %cst_292 = arith.constant dense<0.000000e+00> : vector<16x1xf32>
    %509 = tpu.matmul %504, %0, %cst_292 {dimension_numbers = #tpu.dot_dimension_numbers<[1], [0], [0], [1], [0, 0, 1, 1], [], []>} : vector<16x32xf32>, vector<32x1xf32>, vector<16x1xf32> -> vector<16x1xf32>
    %cst_293 = arith.constant 3.125000e-02 : f32
    %510 = vector.broadcast %cst_293 : f32 to vector<16x1xf32>
    %511 = arith.mulf %509, %510 : vector<16x1xf32>
    %512 = vector.broadcast %511 : vector<16x1xf32> to vector<16x32xf32>
    %513 = arith.subf %504, %512 : vector<16x32xf32>
    %514 = arith.mulf %513, %513 : vector<16x32xf32>
    %cst_294 = arith.constant dense<0.000000e+00> : vector<16x1xf32>
    %515 = tpu.matmul %514, %0, %cst_294 {dimension_numbers = #tpu.dot_dimension_numbers<[1], [0], [0], [1], [0, 0, 1, 1], [], []>} : vector<16x32xf32>, vector<32x1xf32>, vector<16x1xf32> -> vector<16x1xf32>
    %cst_295 = arith.constant 3.125000e-02 : f32
    %516 = vector.broadcast %cst_295 : f32 to vector<16x1xf32>
    %517 = arith.mulf %515, %516 : vector<16x1xf32>
    %cst_296 = arith.constant 9.99999974E-6 : f32
    %518 = vector.broadcast %cst_296 : f32 to vector<16x1xf32>
    %519 = arith.addf %517, %518 : vector<16x1xf32>
    %520 = math.rsqrt %519 : vector<16x1xf32>
    %521 = vector.broadcast %520 : vector<16x1xf32> to vector<16x32xf32>
    %522 = arith.mulf %513, %521 : vector<16x32xf32>
    %523 = vector.broadcast %506 : vector<1x32xf32> to vector<16x32xf32>
    %524 = arith.mulf %522, %523 : vector<16x32xf32>
    %525 = vector.broadcast %508 : vector<1x32xf32> to vector<16x32xf32>
    %526 = arith.addf %524, %525 : vector<16x32xf32>
    %c0_297 = arith.constant 0 : index
    %c0_298 = arith.constant 0 : index
    %527 = vector.load %arg8[%c0_297, %c0_298] : memref<16x32xf32, #tpu.memory_space<vmem>>, vector<16x32xf32>
    tpu.vector_store %arg8[%c0_297, %c0_298], %526 {strides = array<i32>} : memref<16x32xf32, #tpu.memory_space<vmem>>, vector<16x32xf32>,
    return
  }
}

</mosaic_0001>

<bundles_post_ra>
// kernel: tpu_custom_call.1
= control target key start
LH: loop header
LB: loop body
LE: loop exit
PB: predicated region body
PF: predicated region fallthrough
CT: control target
= control target key end

     0   :  { %v9474_v3 = vmov 1.0   ;;  %vm41_vm0 = vcmask 261120   ;;  %s10550_s0 = inlined_call_operand.vmem [shape: f32[16,32], index: 0, kind: input, shape index: {}]   ;;  %s10551_s1 = inlined_call_operand.vmem [shape: f32[16,32], index: 1, kind: input, shape index: {}]   ;;  %s10552_s2 = inlined_call_operand.vmem [shape: f32[24,32,8], index: 2, kind: input, shape index: {}]   ;;  %s10553_s3 = inlined_call_operand.vmem [shape: f32[8,1,8], index: 3, kind: input, shape index: {}]   ;;  %s10554_s4 = inlined_call_operand.vmem [shape: f32[8,8,32], index: 4, kind: input, shape index: {}]   ;;  %s10555_s5 = inlined_call_operand.vmem [shape: f32[2,40,64], index: 5, kind: input, shape index: {}]   ;;  %s10556_s6 = inlined_call_operand.vmem [shape: f32[2,64,32], index: 6, kind: input, shape index: {}]   ;;  %s10557_s7 = inlined_call_operand.vmem [shape: f32[3,6,1,32], index: 7, kind: input, shape index: {}]   ;;  %s10558_s8 = inlined_call_operand.hbm [shape: f32[16,32], index: 8, kind: output, shape index: {}]  }
   0x1   :  { %v30_v0 = vld [vmem:[%s10550_s0] sm:$0xff]  ;;  %v31_v2 = vld [vmem:[%s10550_s0 + $0x8] sm:$0xff]  ;;  %8645 = vmatprep.subr.mxu0 %v9474_v3  ;;  %8656 = vmatprep.subr.mxu1 %v9474_v3 }
   0x2   :  { %v34_v1 = vld [vmem:[%s10551_s1] sm:$0xff]  ;;  %v32_v4 = vmul.f32 5.656854, %v30_v0  ;;  %v33_v5 = vmul.f32 5.656854, %v31_v2  ;;  %8646 = vmatpush3.msra.mxu0 %v9474_v3  ;;  %v35_v6 = vld [vmem:[%s10551_s1 + $0x8] sm:$0xff]  ;;  %8657 = vmatpush3.msra.mxu1 %v9474_v3 }
   0x3   :  { %13 = vsyncpa [#allocation3], 0  ;;  %8647 = vmatprep.subr.mxu0 %v9474_v3  ;;  %8658 = vmatprep.subr.mxu1 %v9474_v3  ;;  %v9475_v9 = vmov 0   ;;  %v267_v26 = vld [vmem:[%s10552_s2 + $0x18] sm:$0xff]  ;;  %v266_v28 = vld [vmem:[%s10552_s2 + $0x10] sm:$0xff]  ;;  %v9476_v50 = vmov 0.0  }
   0x4   :  { %v9543_v7 = vadd.f32 %v34_v1, %v32_v4  ;;  %8648 = vmatpush3.msra.mxu0 %v9474_v3  ;;  %8659 = vmatpush3.msra.mxu1 %v9474_v3  ;;  %v9551_v8 = vadd.f32 %v35_v6, %v33_v5  ;;  %v7994_v27 = vld [vmem:[%s10552_s2 + $0x38] sm:$0xff]  ;;  %v7993_v30 = vld [vmem:[%s10552_s2 + $0x30] sm:$0xff]  ;;  %v265_v31 = vld [vmem:[%s10552_s2 + $0x8] sm:$0xff]  ;;  %vm9477_vm1 = vmmov 0   ;;  %vm516_vm2 = vcmask 64512   ;;  %s9478_s19 = smov [#allocation2]  }
   0x5   :  { %8649 = vmatprep.subr.mxu0 %v9474_v3  ;;  %8660 = vmatprep.subr.mxu1 %v9474_v3  ;;  %v7992_v32 = vld [vmem:[%s10552_s2 + $0x28] sm:$0xff]  ;;  %v264_v33 = vld [vmem:[%s10552_s2] sm:$0xff]  ;;  %v8000_v36 = vld [vmem:[%s10552_s2 + $0x58] sm:$0xff]  ;;  %vm3796_vm3 = vcmask 523264   ;;  %s7968_s20 = sshll.u32 %s9478_s19, 4  ;;  %s7969_s20 = int_to_ptr.vmem [resolvable:$true] %s7968_s20 }
   0x6   :  { %8653 = vmatprep.mubr.msk.f32.mxu0 %vm41_vm0, %v9543_v7  ;;  %8650 = vmatpush3.msra.mxu0 %v9474_v3  ;;  %v7991_v35 = vld [vmem:[%s10552_s2 + $0x20] sm:$0xff]  ;;  %v7999_v47 = vld [vmem:[%s10552_s2 + $0x50] sm:$0xff]  ;;  %v7998_v48 = vld [vmem:[%s10552_s2 + $0x48] sm:$0xff]  ;;  %s9452_s21 = scalar_lea.vmem %s7969_s20, 256  ;;  %p9457_p1 = scmp.lt.s32.totalorder %s7969_s20, %s7969_s20 }
   0x7   :  { %8651 = vmatprep.subr.mxu0 %v9474_v3  ;;  %8661 = vmatpush3.msra.mxu1 %v9474_v3  ;;  %v7984_v37 = vld [vmem:[%s10557_s7] ss:$0 sm:$0xff]  ;;  %v7985_v40 = vld [vmem:[%s10557_s7 + $0x1] ss:$0 sm:$0xff]  ;;  %p9453_p0 = scmp.ne.s32.totalorder %s7969_s20, %s9452_s21  ;;  %p9458_p2 = scmp.lt.s32.totalorder %s9452_s21, %s9452_s21 }
   0x8   :  { %8652 = vmatpush3.msra.mxu0 %v9474_v3  ;;  %8662 = vmatprep.subr.mxu1 %v9474_v3  ;;  %v7997_v49 = vld [vmem:[%s10552_s2 + $0x40] sm:$0xff] }
   0x9   :  { %8654 = vmatmul.mubr.msk.f32.vlgmr.msra.gmra.mxu0 %vm41_vm0, %v9551_v8  ;;  %8663 = vmatpush3.msra.mxu1 %v9474_v3  ;;  %v7988_v51 = vld [vmem:[%s10553_s3] ss:$0 sm:$0xff]  ;;  %p9459_p3 = por %p9458_p2, %p9457_p1 }
   0xa   :  { %9366 = vset.pattern.permute.xlu0 %v9475_v9  ;;  %9367 = vset.pattern.permute.xlu1 %v9475_v9 }
   0xb   :  { %8667 = vmatprep.subr.mxu0 %v267_v26  ;;  %8678 = vmatprep.subr.mxu1 %v7994_v27  ;;  %p9460_p4 = pnand %p9459_p3, %p9453_p0 }
   0xc   :  { %8668 = vmatpush3.msra.mxu0 %v267_v26 }
   0xd   :  { %8669 = vmatprep.subr.mxu0 %v266_v28 }
   0xe   :  { %8670 = vmatpush3.msra.mxu0 %v266_v28  ;;  %v8014_v28 = vld [vmem:[%s10552_s2 + $0x68] sm:$0xff] }
   0xf   :  { %8671 = vmatprep.subr.mxu0 %v265_v31 }
  0x10   :  { %8672 = vmatpush3.msra.mxu0 %v265_v31  ;;  %v8029_v31 = vld [vmem:[%s10552_s2 + $0xb0] sm:$0xff] }
  0x11   :  { %8673 = vmatprep.subr.mxu0 %v264_v33 }
  0x12   :  { %8674 = vmatpush3.msra.mxu0 %v264_v33  ;;  %v8027_v33 = vld [vmem:[%s10552_s2 + $0xa0] sm:$0xff] }
  0x13   :  { %8689 = vmatprep.subr.mxu0 %v8000_v36 }
  0xc9   :  { %v8655_v10 = vpop.f32.mrf.mxu0 }
  0xca   :  { %v124_v13 = vmul.f32 0.03125, %v8655_v10 }
  0xcb   :  { %v114_v11 = vpop.f32.mrf.mxu0 }
  0xcc   :  { %v123_v12 = vmul.f32 0.03125, %v114_v11 }
  0xce   :  { %127 = vperm.xlu0 %9366, %v123_v12  }
  0xd2   :  { %132 = vperm.xlu0 %9366, %v124_v13  }
 0x149   :  { %v128_v14 = vpop.permute.xlu0 %127 }
 0x14a   :  { %v135_v15 = vsub.f32 %v9543_v7, %v128_v14 }
 0x14c   :  { %v137_v16 = vmul.f32 %v135_v15, %v135_v15 }
 0x14d   :  { %v133_v17 = vpop.permute.xlu0 %132 }
 0x14e   :  { %v136_v18 = vsub.f32 %v9551_v8, %v133_v17  ;;  %8664 = vmatprep.mubr.msk.f32.mxu1 %vm41_vm0, %v137_v16 }
 0x150   :  { %v138_v19 = vmul.f32 %v136_v18, %v136_v18 }
 0x152   :  { %8665 = vmatmul.mubr.msk.f32.vlgmr.msra.gmra.mxu1 %vm41_vm0, %v138_v19 }
 0x153   :  { %8679 = vmatpush3.msra.mxu1 %v7994_v27  ;;  %v8015_v27 = vld [vmem:[%s10552_s2 + $0x70] sm:$0xff] }
 0x154   :  { %8680 = vmatprep.subr.mxu1 %v7993_v30 }
 0x155   :  { %8681 = vmatpush3.msra.mxu1 %v7993_v30  ;;  %v8030_v30 = vld [vmem:[%s10552_s2 + $0xb8] sm:$0xff] }
 0x156   :  { %8682 = vmatprep.subr.mxu1 %v7992_v32 }
 0x157   :  { %8683 = vmatpush3.msra.mxu1 %v7992_v32  ;;  %v8028_v32 = vld [vmem:[%s10552_s2 + $0xa8] sm:$0xff] }
 0x158   :  { %8684 = vmatprep.subr.mxu1 %v7991_v35 }
 0x159   :  { %8685 = vmatpush3.msra.mxu1 %v7991_v35 }
 0x15a   :  { %8700 = vmatprep.subr.mxu1 %v9476_v50 }
 0x212   :  { %v8666_v20 = vpop.f32.mrf.mxu1 }
 0x213   :  { %v221_v22 = vmul.f32 0.03125, %v8666_v20 }
 0x214   :  { %v211_v21 = vpop.f32.mrf.mxu1 }
 0x215   :  { %v220_v23 = vmul.f32 0.03125, %v211_v21  ;;  %v223_v25 = vadd.f32 1e-05, %v221_v22  ;;  %v8016_v22 = vld [vmem:[%s10552_s2 + $0x78] sm:$0xff] }
 0x217   :  { %v222_v24 = vadd.f32 1e-05, %v220_v23 }
 0x219   :  { %9368 = vrsqrt.f32 %v222_v24  ;;  %v987_v24 = vld [vmem:[%s10554_s4] sm:$0xff] }
 0x21a   :  { %9370 = vrsqrt.f32 %v223_v25 }
 0x226   :  { %v9369_v29 = vpop.eup %9368 }
 0x227   :  { %228 = vperm.xlu1 %9367, %v9369_v29   ;;  %v9371_v34 = vpop.eup %9370  ;;  %v8013_v29 = vld [vmem:[%s10552_s2 + $0x60] sm:$0xff] }
 0x22b   :  { %233 = vperm.xlu1 %9367, %v9371_v34   ;;  %v8024_v34 = vld [vmem:[%s10552_s2 + $0x98] sm:$0xff] }
 0x2a2   :  { %v229_v38 = vpop.permute.xlu1 %228 }
 0x2a3   :  { %v236_v39 = vmul.f32 %v229_v38, %v135_v15  ;;  %v8022_v38 = vld [vmem:[%s10552_s2 + $0x88] sm:$0xff] }
 0x2a5   :  { %v244_v41 = vmul.f32 %v7984_v37, %v236_v39  ;;  %v8021_v39 = vld [vmem:[%s10552_s2 + $0x80] sm:$0xff] }
 0x2a6   :  { %v234_v42 = vpop.permute.xlu1 %233 }
 0x2a7   :  { %v9599_v43 = vadd.f32 %v7985_v40, %v244_v41  ;;  %v237_v44 = vmul.f32 %v234_v42, %v136_v18 }
 0x2a9   :  { %v245_v45 = vmul.f32 %v7984_v37, %v237_v44  ;;  %8675 = vmatprep.mubr.msk.f32.mxu0 %vm41_vm0, %v9599_v43  ;;  %8686 = vmatprep.mubr.msk.f32.mxu1 %vm41_vm0, %v9599_v43 }
 0x2ab   :  { %v9605_v46 = vadd.f32 %v7985_v40, %v245_v45  ;;  %v8018_v40 = vld [vmem:[%s10553_s3 + $0x1] ss:$0 sm:$0xff] }
 0x2ad   :  { %8676 = vmatmul.mubr.msk.f32.vlgmr.msra.gmra.mxu0 %vm41_vm0, %v9605_v46  ;;  %8687 = vmatmul.mubr.msk.f32.vlgmr.msra.gmra.mxu1 %vm41_vm0, %v9605_v46 }
 0x2ae   :  { %8690 = vmatpush3.msra.mxu0 %v8000_v36  ;;  %8697 = vmatprep.mubr.msk.f32.mxu0 %vm41_vm0, %v9599_v43  ;;  %v8023_v36 = vld [vmem:[%s10552_s2 + $0x90] sm:$0xff] }
 0x2af   :  { %8691 = vmatprep.subr.mxu0 %v7999_v47  ;;  %8702 = vmatprep.mubr.msk.f32.mxu1 %vm9477_vm1, %v9476_v50 }
 0x2b0   :  { %8692 = vmatpush3.msra.mxu0 %v7999_v47 }
 0x2b1   :  { %8693 = vmatprep.subr.mxu0 %v7998_v48 }
 0x2b2   :  { %8694 = vmatpush3.msra.mxu0 %v7998_v48 }
 0x2b3   :  { %8695 = vmatprep.subr.mxu0 %v7997_v49 }
 0x2b4   :  { %8696 = vmatpush3.msra.mxu0 %v7997_v49 }
 0x2b5   :  { %8698 = vmatmul.mubr.msk.f32.vlgmr.msra.gmra.mxu0 %vm41_vm0, %v9605_v46  ;;  %8720 = vmatprep.subr.mxu0 %v9476_v50 }
 0x2b6   :  { %8721 = vmatpush3.msra.mxu0 %v9474_v3  ;;  %8722 = vmatprep.mubr.msk.f32.mxu0 %vm9477_vm1, %v9476_v50 }
 0x2b7   :  { %8730 = vmatprep.subr.mxu0 %v987_v24 }
 0x36d   :  { %v8677_v52 = vpop.f32.mrf.mxu0  ;;  %v8688_v53 = vpop.f32.mrf.mxu1 }
 0x36e   :  { %v353_v54 = vadd.f32 %v8677_v52, %v7988_v51 }
 0x36f   :  { %v347_v55 = vpop.f32.mrf.mxu0  ;;  %v427_v56 = vpop.f32.mrf.mxu1 }
 0x370   :  { %v348_v57 = vadd.f32 %v7988_v51, %v347_v55  ;;  %8701 = vmatpush3.xpose.msk.msra.mxu1 %vm516_vm2, %v427_v56 }
 0x371   :  { %8705 = vmatprep.subr.mxu1 %v9476_v50 }
 0x373   :  { %8703 = vmatmul.mubr.msk.f32.vlgmr.msra.gmra.mxu1 %vm516_vm2, %v348_v57 }
 0x374   :  { %8706 = vmatpush3.msra.mxu1 %v9474_v3  ;;  %8707 = vmatprep.mubr.msk.f32.mxu1 %vm9477_vm1, %v9476_v50 }
 0x375   :  { %8710 = vmatprep.subr.mxu1 %v9476_v50  ;;  %v8699_v0 = vpop.f32.mrf.mxu0 }
 0x377   :  { %v507_v2 = vpop.f32.mrf.mxu0 }
 0x433   :  { %v589_v58 = vpop.f32.mrf.mxu1 }
 0x434   :  { %v593_v59 = vsel %vm516_vm2, %v589_v58, -inf }
 0x435   :  { %594 = vmax.xlane.f32.xlu0 %v593_v59  ;;  %v8704_v60 = vpop.f32.mrf.mxu1 }
 0x4be   :  { %v595_v61 = vpop.xlane.xlu0 %594 }
 0x4bf   :  { %v596_v62 = vsub.f32 %v589_v58, %v595_v61 }
 0x4c1   :  { %v597_v63 = vmul.f32 1.442695, %v596_v62 }
 0x4c3   :  { %9372 = vpow2.f32 %v597_v63 }
 0x4d0   :  { %v9373_v1 = vpop.eup %9372 }
 0x4d1   :  { %8708 = vmatmul.mubr.msk.f32.vlgmr.msra.gmra.mxu1 %vm516_vm2, %v9373_v1 }
 0x4d2   :  { %8711 = vmatpush3.msra.mxu1 %v507_v2  ;;  %8712 = vmatprep.mubr.msk.f32.mxu1 %vm9477_vm1, %v9476_v50 }
 0x4d3   :  { %8715 = vmatprep.subr.mxu1 %v9476_v50 }
 0x591   :  { %v668_v4 = vpop.f32.mrf.mxu1 }
 0x592   :  { %9374 = vrcp.f32 %v668_v4 }
 0x593   :  { %v8709_v5 = vpop.f32.mrf.mxu1 }
 0x59f   :  { %v9375_v6 = vpop.eup %9374 }
 0x5a0   :  { %675 = vperm.xlu1 %9367, %v9375_v6  }
 0x61b   :  { %v676_v9 = vpop.permute.xlu1 %675 }
 0x61c   :  { %v678_v10 = vmul.f32 %v9373_v1, %v676_v9 }
 0x61e   :  { %8713 = vmatmul.mubr.msk.f32.vlgmr.msra.gmra.mxu1 %vm516_vm2, %v678_v10 }
 0x61f   :  { %8716 = vmatpush3.xpose.msk.msra.mxu1 %vm516_vm2, %v8688_v53  ;;  %8717 = vmatprep.mubr.msk.f32.mxu1 %vm9477_vm1, %v9476_v50 }
 0x620   :  { %8725 = vmatprep.subr.mxu1 %v9476_v50 }
 0x622   :  { %8718 = vmatmul.mubr.msk.f32.vlgmr.msra.gmra.mxu1 %vm516_vm2, %v353_v54 }
 0x623   :  { %8726 = vmatpush3.msra.mxu1 %v8699_v0  ;;  %8727 = vmatprep.mubr.msk.f32.mxu1 %vm9477_vm1, %v9476_v50 }
 0x624   :  { %8735 = vmatprep.subr.mxu1 %v8016_v22 }
 0x6de   :  { %v748_v11 = vpop.f32.mrf.mxu1 }
 0x6e0   :  { %v8714_v12 = vpop.f32.mrf.mxu1 }
 0x6e2   :  { %v824_v13 = vpop.f32.mrf.mxu1 }
 0x6e3   :  { %v828_v14 = vsel %vm516_vm2, %v824_v13, -inf }
 0x6e4   :  { %829 = vmax.xlane.f32.xlu1 %v828_v14  ;;  %v8719_v15 = vpop.f32.mrf.mxu1 }
 0x76d   :  { %v830_v16 = vpop.xlane.xlu1 %829 }
 0x76e   :  { %v831_v17 = vsub.f32 %v824_v13, %v830_v16  ;;  %v8047_v16 = vld [vmem:[%s10552_s2 + $0xd8] sm:$0xff] }
 0x770   :  { %v832_v18 = vmul.f32 1.442695, %v831_v17 }
 0x772   :  { %9376 = vpow2.f32 %v832_v18  ;;  %v8041_v18 = vld [vmem:[%s10554_s4 + $0x8] sm:$0xff] }
 0x77f   :  { %v9377_v19 = vpop.eup %9376 }
 0x780   :  { %8723 = vmatmul.mubr.msk.f32.vlgmr.msra.gmra.mxu0 %vm516_vm2, %v9377_v19 }
 0x781   :  { %8732 = vmatprep.mubr.msk.f32.mxu0 %vm516_vm2, %v748_v11  ;;  %8731 = vmatpush3.msra.mxu0 %v987_v24  ;;  %v8061_v24 = vld [vmem:[%s10552_s2 + $0x118] sm:$0xff] }
 0x782   :  { %8746 = vmatprep.subr.mxu0 %v8024_v34 }
 0x840   :  { %v903_v20 = vpop.f32.mrf.mxu0 }
 0x841   :  { %9378 = vrcp.f32 %v903_v20 }
 0x842   :  { %v8724_v21 = vpop.f32.mrf.mxu0 }
 0x843   :  { %v8046_v21 = vld [vmem:[%s10552_s2 + $0xd0] sm:$0xff] }
 0x84e   :  { %v9379_v23 = vpop.eup %9378 }
 0x84f   :  { %910 = vperm.xlu0 %9366, %v9379_v23   ;;  %v8044_v23 = vld [vmem:[%s10552_s2 + $0xc0] sm:$0xff] }
 0x8ca   :  { %v911_v25 = vpop.permute.xlu0 %910 }
 0x8cb   :  { %v913_v26 = vmul.f32 %v9377_v19, %v911_v25  ;;  %v8060_v25 = vld [vmem:[%s10552_s2 + $0x110] sm:$0xff] }
 0x8cd   :  { %8728 = vmatmul.mubr.msk.f32.vlgmr.msra.gmra.mxu1 %vm516_vm2, %v913_v26  ;;  %v8059_v26 = vld [vmem:[%s10552_s2 + $0x108] sm:$0xff] }
 0x8ce   :  { %8736 = vmatpush3.msra.mxu1 %v8016_v22  ;;  %8743 = vmatprep.mubr.msk.f32.mxu1 %vm41_vm0, %v9599_v43  ;;  %v8045_v22 = vld [vmem:[%s10552_s2 + $0xc8] sm:$0xff] }
 0x8cf   :  { %8737 = vmatprep.subr.mxu1 %v8015_v27 }
 0x8d0   :  { %8738 = vmatpush3.msra.mxu1 %v8015_v27  ;;  %v8058_v27 = vld [vmem:[%s10552_s2 + $0x100] sm:$0xff] }
 0x8d1   :  { %8739 = vmatprep.subr.mxu1 %v8014_v28 }
 0x8d2   :  { %8740 = vmatpush3.msra.mxu1 %v8014_v28  ;;  %v8055_v28 = vld [vmem:[%s10552_s2 + $0xf8] sm:$0xff] }
 0x8d3   :  { %8741 = vmatprep.subr.mxu1 %v8013_v29 }
 0x8d4   :  { %8742 = vmatpush3.msra.mxu1 %v8013_v29 }
 0x8d5   :  { %8744 = vmatmul.mubr.msk.f32.vlgmr.msra.gmra.mxu1 %vm41_vm0, %v9605_v46  ;;  %8757 = vmatprep.subr.mxu1 %v8030_v30 }
 0x8d6   :  { %8758 = vmatpush3.msra.mxu1 %v8030_v30  ;;  %8765 = vmatprep.mubr.msk.f32.mxu1 %vm41_vm0, %v9599_v43  ;;  %v8054_v30 = vld [vmem:[%s10552_s2 + $0xf0] sm:$0xff] }
 0x8d7   :  { %8759 = vmatprep.subr.mxu1 %v8029_v31 }
 0x8d8   :  { %8760 = vmatpush3.msra.mxu1 %v8029_v31 }
 0x8d9   :  { %8761 = vmatprep.subr.mxu1 %v8028_v32 }
 0x8da   :  { %8762 = vmatpush3.msra.mxu1 %v8028_v32  ;;  %v8053_v32 = vld [vmem:[%s10552_s2 + $0xe8] sm:$0xff] }
 0x8db   :  { %8763 = vmatprep.subr.mxu1 %v8027_v33 }
 0x8dc   :  { %8764 = vmatpush3.msra.mxu1 %v8027_v33  ;;  %v8052_v33 = vld [vmem:[%s10552_s2 + $0xe0] sm:$0xff] }
 0x8dd   :  { %8766 = vmatmul.mubr.msk.f32.vlgmr.msra.gmra.mxu1 %vm41_vm0, %v9605_v46  ;;  %8778 = vmatprep.subr.mxu1 %v9476_v50 }
 0x8de   :  { %8780 = vmatprep.mubr.msk.f32.mxu1 %vm9477_vm1, %v9476_v50 }
 0x98d   :  { %v983_v35 = vpop.f32.mrf.mxu1 }
 0x98e   :  { %8733 = vmatmul.mubr.msk.f32.vlgmr.msra.gmra.mxu0 %vm516_vm2, %v983_v35 }
 0x98f   :  { %8747 = vmatpush3.msra.mxu0 %v8024_v34  ;;  %v8729_v37 = vpop.f32.mrf.mxu1  ;;  %8754 = vmatprep.mubr.msk.f32.mxu0 %vm41_vm0, %v9599_v43  ;;  %v8049_v34 = vld [vmem:[%s10553_s3 + $0x2] ss:$0 sm:$0xff] }
 0x990   :  { %8748 = vmatprep.subr.mxu0 %v8023_v36 }
 0x991   :  { %8749 = vmatpush3.msra.mxu0 %v8023_v36 }
 0x992   :  { %8750 = vmatprep.subr.mxu0 %v8022_v38 }
 0x993   :  { %8751 = vmatpush3.msra.mxu0 %v8022_v38 }
 0x994   :  { %8752 = vmatprep.subr.mxu0 %v8021_v39 }
 0x995   :  { %v8745_v41 = vpop.f32.mrf.mxu1  ;;  %8753 = vmatpush3.msra.mxu0 %v8021_v39 }
 0x996   :  { %v1156_v42 = vadd.f32 %v8745_v41, %v8018_v40  ;;  %8755 = vmatmul.mubr.msk.f32.vlgmr.msra.gmra.mxu0 %vm41_vm0, %v9605_v46  ;;  %8768 = vmatprep.subr.mxu0 %v9476_v50 }
 0x997   :  { %8770 = vmatprep.mubr.msk.f32.mxu0 %vm9477_vm1, %v9476_v50  ;;  %v1150_v44 = vpop.f32.mrf.mxu1 }
 0x998   :  { %v1151_v53 = vadd.f32 %v8018_v40, %v1150_v44  ;;  %v7987_v40 = vld [vmem:[%s10557_s7 + $0x4] ss:$0 sm:$0xff] }
 0x999   :  { %v263_v41 = vadd.f32 %v7987_v40, %v9551_v8 }
 0x99d   :  { %v8767_v45 = vpop.f32.mrf.mxu1 }
 0x99f   :  { %v1310_v47 = vpop.f32.mrf.mxu1 }
 0x9a0   :  { %8779 = vmatpush3.msra.mxu1 %v1310_v47 }
 0x9a1   :  { %8788 = vmatprep.subr.mxu1 %v9476_v50 }
 0xa4e   :  { %v9720_v48 = vpop.f32.mrf.mxu0 }
 0xa4f   :  { %v1070_v44 = vadd.f32 %v9720_v48, %v263_v41 }
 0xa50   :  { %v9722_v49 = vpop.f32.mrf.mxu0 }
 0xa56   :  { %v8756_v51 = vpop.f32.mrf.mxu0 }
 0xa58   :  { %v1230_v52 = vpop.f32.mrf.mxu0 }
 0xa59   :  { %8769 = vmatpush3.xpose.msk.msra.mxu0 %vm516_vm2, %v1230_v52 }
 0xa5a   :  { %8773 = vmatprep.subr.mxu0 %v9476_v50 }
 0xa5c   :  { %8771 = vmatmul.mubr.msk.f32.vlgmr.msra.gmra.mxu0 %vm516_vm2, %v1151_v53 }
 0xa5d   :  { %8774 = vmatpush3.msra.mxu0 %v9474_v3  ;;  %8775 = vmatprep.mubr.msk.f32.mxu0 %vm9477_vm1, %v9476_v50 }
 0xa5e   :  { %8783 = vmatprep.subr.mxu0 %v9476_v50 }
 0xb1c   :  { %v1391_v54 = vpop.f32.mrf.mxu0 }
 0xb1d   :  { %v1395_v55 = vsel %vm516_vm2, %v1391_v54, -inf }
 0xb1e   :  { %1396 = vmax.xlane.f32.xlu1 %v1395_v55  ;;  %v8772_v56 = vpop.f32.mrf.mxu0 }
 0xba7   :  { %v1397_v57 = vpop.xlane.xlu1 %1396 }
 0xba8   :  { %v1398_v58 = vsub.f32 %v1391_v54, %v1397_v57 }
 0xbaa   :  { %v1399_v59 = vmul.f32 1.442695, %v1398_v58 }
 0xbac   :  { %9380 = vpow2.f32 %v1399_v59 }
 0xbb9   :  { %v9381_v60 = vpop.eup %9380 }
 0xbba   :  { %8776 = vmatmul.mubr.msk.f32.vlgmr.msra.gmra.mxu0 %vm516_vm2, %v9381_v60 }
 0xbbb   :  { %8784 = vmatpush3.xpose.msk.msra.mxu0 %vm516_vm2, %v8756_v51  ;;  %8785 = vmatprep.mubr.msk.f32.mxu0 %vm9477_vm1, %v9476_v50 }
 0xbbc   :  { %8793 = vmatprep.subr.mxu0 %v9476_v50 }
 0xbbe   :  { %8786 = vmatmul.mubr.msk.f32.vlgmr.msra.gmra.mxu0 %vm516_vm2, %v1156_v42  ;;  %v262_v42 = vadd.f32 %v7987_v40, %v9543_v7 }
 0xbbf   :  { %8794 = vmatpush3.msra.mxu0 %v8767_v45  ;;  %8795 = vmatprep.mubr.msk.f32.mxu0 %vm9477_vm1, %v9476_v50 }
 0xbc0   :  { %8803 = vmatprep.subr.mxu0 %v8047_v16  ;;  %v1069_v47 = vadd.f32 %v9722_v49, %v262_v42 }
 0xc7a   :  { %v1470_v61 = vpop.f32.mrf.mxu0 }
 0xc7b   :  { %9382 = vrcp.f32 %v1470_v61 }
 0xc7c   :  { %v8777_v62 = vpop.f32.mrf.mxu0 }
 0xc7e   :  { %v1626_v63 = vpop.f32.mrf.mxu0 }
 0xc7f   :  { %v1630_v0 = vsel %vm516_vm2, %v1626_v63, -inf }
 0xc80   :  { %1631 = vmax.xlane.f32.xlu1 %v1630_v0  ;;  %v8787_v1 = vpop.f32.mrf.mxu0 }
 0xc88   :  { %v9383_v2 = vpop.eup %9382 }
 0xc91   :  { %1477 = vperm.xlu1 %9367, %v9383_v2  }
 0xd09   :  { %v1632_v4 = vpop.xlane.xlu1 %1631 }
 0xd0a   :  { %v1633_v5 = vsub.f32 %v1626_v63, %v1632_v4 }
 0xd0c   :  { %v1634_v6 = vmul.f32 1.442695, %v1633_v5 }
 0xd0d   :  { %v1478_v9 = vpop.permute.xlu1 %1477 }
 0xd0e   :  { %9384 = vpow2.f32 %v1634_v6  ;;  %v1480_v10 = vmul.f32 %v9381_v60, %v1478_v9 }
 0xd10   :  { %8781 = vmatmul.mubr.msk.f32.vlgmr.msra.gmra.mxu1 %vm516_vm2, %v1480_v10 }
 0xd11   :  { %8789 = vmatpush3.msra.mxu1 %v9474_v3  ;;  %8790 = vmatprep.mubr.msk.f32.mxu1 %vm9477_vm1, %v9476_v50 }
 0xd12   :  { %8798 = vmatprep.subr.mxu1 %v8041_v18 }
 0xd1b   :  { %v9385_v11 = vpop.eup %9384 }
 0xd1c   :  { %8791 = vmatmul.mubr.msk.f32.vlgmr.msra.gmra.mxu1 %vm516_vm2, %v9385_v11 }
 0xd1d   :  { %8799 = vmatpush3.msra.mxu1 %v8041_v18 }
 0xd1e   :  { %8814 = vmatprep.subr.mxu1 %v8055_v28 }
 0xdd0   :  { %v1550_v12 = vpop.f32.mrf.mxu1 }
 0xdd1   :  { %8800 = vmatprep.mubr.msk.f32.mxu1 %vm516_vm2, %v1550_v12 }
 0xdd2   :  { %v8782_v13 = vpop.f32.mrf.mxu1 }
 0xddc   :  { %v1705_v14 = vpop.f32.mrf.mxu1 }
 0xddd   :  { %9386 = vrcp.f32 %v1705_v14 }
 0xdde   :  { %v8792_v15 = vpop.f32.mrf.mxu1 }
 0xddf   :  { %v8078_v15 = vld [vmem:[%s10552_s2 + $0x138] sm:$0xff] }
 0xdea   :  { %v9387_v17 = vpop.eup %9386 }
 0xdeb   :  { %1712 = vperm.xlu0 %9366, %v9387_v17   ;;  %v8072_v17 = vld [vmem:[%s10554_s4 + $0x10] sm:$0xff] }
 0xe66   :  { %v1713_v19 = vpop.permute.xlu0 %1712 }
 0xe67   :  { %v1715_v20 = vmul.f32 %v9385_v11, %v1713_v19 }
 0xe69   :  { %8796 = vmatmul.mubr.msk.f32.vlgmr.msra.gmra.mxu0 %vm516_vm2, %v1715_v20  ;;  %v8077_v20 = vld [vmem:[%s10552_s2 + $0x130] sm:$0xff] }
 0xe6a   :  { %8804 = vmatpush3.msra.mxu0 %v8047_v16  ;;  %8811 = vmatprep.mubr.msk.f32.mxu0 %vm41_vm0, %v9599_v43 }
 0xe6b   :  { %8805 = vmatprep.subr.mxu0 %v8046_v21 }
 0xe6c   :  { %8806 = vmatpush3.msra.mxu0 %v8046_v21  ;;  %v8076_v21 = vld [vmem:[%s10552_s2 + $0x128] sm:$0xff] }
 0xe6d   :  { %8807 = vmatprep.subr.mxu0 %v8045_v22 }
 0xe6e   :  { %8808 = vmatpush3.msra.mxu0 %v8045_v22  ;;  %v8075_v22 = vld [vmem:[%s10552_s2 + $0x120] sm:$0xff] }
 0xe6f   :  { %8809 = vmatprep.subr.mxu0 %v8044_v23 }
 0xe70   :  { %8810 = vmatpush3.msra.mxu0 %v8044_v23  ;;  %v8092_v23 = vld [vmem:[%s10552_s2 + $0x178] sm:$0xff] }
 0xe71   :  { %8812 = vmatmul.mubr.msk.f32.vlgmr.msra.gmra.mxu0 %vm41_vm0, %v9605_v46  ;;  %8825 = vmatprep.subr.mxu0 %v8061_v24 }
 0xe72   :  { %8826 = vmatpush3.msra.mxu0 %v8061_v24  ;;  %8833 = vmatprep.mubr.msk.f32.mxu0 %vm41_vm0, %v9599_v43  ;;  %v8091_v24 = vld [vmem:[%s10552_s2 + $0x170] sm:$0xff] }
 0xe73   :  { %8827 = vmatprep.subr.mxu0 %v8060_v25 }
 0xe74   :  { %8828 = vmatpush3.msra.mxu0 %v8060_v25  ;;  %v8090_v25 = vld [vmem:[%s10552_s2 + $0x168] sm:$0xff] }
 0xe75   :  { %8829 = vmatprep.subr.mxu0 %v8059_v26 }
 0xe76   :  { %8830 = vmatpush3.msra.mxu0 %v8059_v26  ;;  %v8089_v26 = vld [vmem:[%s10552_s2 + $0x160] sm:$0xff] }
 0xe77   :  { %8831 = vmatprep.subr.mxu0 %v8058_v27 }
 0xe78   :  { %8832 = vmatpush3.msra.mxu0 %v8058_v27  ;;  %v8086_v27 = vld [vmem:[%s10552_s2 + $0x158] sm:$0xff] }
 0xe79   :  { %8834 = vmatmul.mubr.msk.f32.vlgmr.msra.gmra.mxu0 %vm41_vm0, %v9605_v46  ;;  %8846 = vmatprep.subr.mxu0 %v9476_v50 }
 0xe7a   :  { %8848 = vmatprep.mubr.msk.f32.mxu0 %vm9477_vm1, %v9476_v50 }
 0xf29   :  { %v1785_v29 = vpop.f32.mrf.mxu0 }
 0xf2a   :  { %8801 = vmatmul.mubr.msk.f32.vlgmr.msra.gmra.mxu1 %vm516_vm2, %v1785_v29  ;;  %v8085_v29 = vld [vmem:[%s10552_s2 + $0x150] sm:$0xff] }
 0xf2b   :  { %8815 = vmatpush3.msra.mxu1 %v8055_v28  ;;  %v8797_v31 = vpop.f32.mrf.mxu0  ;;  %8822 = vmatprep.mubr.msk.f32.mxu1 %vm41_vm0, %v9599_v43 }
 0xf2c   :  { %8816 = vmatprep.subr.mxu1 %v8054_v30  ;;  %v8084_v31 = vld [vmem:[%s10552_s2 + $0x148] sm:$0xff] }
 0xf2d   :  { %8817 = vmatpush3.msra.mxu1 %v8054_v30 }
 0xf2e   :  { %8818 = vmatprep.subr.mxu1 %v8053_v32 }
 0xf2f   :  { %8819 = vmatpush3.msra.mxu1 %v8053_v32  ;;  %v8083_v32 = vld [vmem:[%s10552_s2 + $0x140] sm:$0xff] }
 0xf30   :  { %8820 = vmatprep.subr.mxu1 %v8052_v33 }
 0xf31   :  { %v8813_v35 = vpop.f32.mrf.mxu0  ;;  %8821 = vmatpush3.msra.mxu1 %v8052_v33  ;;  %v8080_v33 = vld [vmem:[%s10553_s3 + $0x3] ss:$0 sm:$0xff] }
 0xf32   :  { %v1959_v36 = vadd.f32 %v8813_v35, %v8049_v34  ;;  %8823 = vmatmul.mubr.msk.f32.vlgmr.msra.gmra.mxu1 %vm41_vm0, %v9605_v46  ;;  %8836 = vmatprep.subr.mxu1 %v9476_v50 }
 0xf33   :  { %8838 = vmatprep.mubr.msk.f32.mxu1 %vm9477_vm1, %v9476_v50  ;;  %v1953_v37 = vpop.f32.mrf.mxu0 }
 0xf34   :  { %v1954_v56 = vadd.f32 %v8049_v34, %v1953_v37 }
 0xf39   :  { %v8835_v38 = vpop.f32.mrf.mxu0 }
 0xf3b   :  { %v2113_v39 = vpop.f32.mrf.mxu0 }
 0xf3c   :  { %8847 = vmatpush3.msra.mxu0 %v2113_v39 }
 0xf3d   :  { %8856 = vmatprep.subr.mxu0 %v9476_v50 }
 0xfea   :  { %v8802_v45 = vpop.f32.mrf.mxu1 }
 0xfeb   :  { %v9817_v51 = vadd.f32 %v8802_v45, %v1070_v44 }
 0xfec   :  { %v1863_v52 = vpop.f32.mrf.mxu1 }
 0xfed   :  { %v9819_v53 = vadd.f32 %v1863_v52, %v1069_v47 }
 0xff2   :  { %v8824_v54 = vpop.f32.mrf.mxu1 }
 0xff4   :  { %v2033_v55 = vpop.f32.mrf.mxu1 }
 0xff5   :  { %8837 = vmatpush3.xpose.msk.msra.mxu1 %vm516_vm2, %v2033_v55 }
 0xff6   :  { %8841 = vmatprep.subr.mxu1 %v9476_v50 }
 0xff8   :  { %8839 = vmatmul.mubr.msk.f32.vlgmr.msra.gmra.mxu1 %vm516_vm2, %v1954_v56 }
 0xff9   :  { %8842 = vmatpush3.msra.mxu1 %v9474_v3  ;;  %8843 = vmatprep.mubr.msk.f32.mxu1 %vm9477_vm1, %v9476_v50 }
 0xffa   :  { %8851 = vmatprep.subr.mxu1 %v9476_v50 }
0x10b8   :  { %v2194_v7 = vpop.f32.mrf.mxu1 }
0x10b9   :  { %v2198_v8 = vsel %vm516_vm2, %v2194_v7, -inf }
0x10ba   :  { %2199 = vmax.xlane.f32.xlu0 %v2198_v8  ;;  %v8840_v48 = vpop.f32.mrf.mxu1 }
0x1143   :  { %v2200_v49 = vpop.xlane.xlu0 %2199 }
0x1144   :  { %v2201_v57 = vsub.f32 %v2194_v7, %v2200_v49 }
0x1146   :  { %v2202_v58 = vmul.f32 1.442695, %v2201_v57 }
0x1148   :  { %9388 = vpow2.f32 %v2202_v58 }
0x1155   :  { %v9389_v59 = vpop.eup %9388 }
0x1156   :  { %8844 = vmatmul.mubr.msk.f32.vlgmr.msra.gmra.mxu1 %vm516_vm2, %v9389_v59 }
0x1157   :  { %8852 = vmatpush3.xpose.msk.msra.mxu1 %vm516_vm2, %v8824_v54  ;;  %8853 = vmatprep.mubr.msk.f32.mxu1 %vm9477_vm1, %v9476_v50 }
0x1158   :  { %8861 = vmatprep.subr.mxu1 %v9476_v50 }
0x115a   :  { %8854 = vmatmul.mubr.msk.f32.vlgmr.msra.gmra.mxu1 %vm516_vm2, %v1959_v36 }
0x115b   :  { %8862 = vmatpush3.msra.mxu1 %v8835_v38  ;;  %8863 = vmatprep.mubr.msk.f32.mxu1 %vm9477_vm1, %v9476_v50 }
0x115c   :  { %8871 = vmatprep.subr.mxu1 %v8078_v15 }
0x1216   :  { %v2273_v60 = vpop.f32.mrf.mxu1 }
0x1217   :  { %9390 = vrcp.f32 %v2273_v60 }
0x1218   :  { %v8845_v61 = vpop.f32.mrf.mxu1 }
0x121a   :  { %v2429_v62 = vpop.f32.mrf.mxu1 }
0x121b   :  { %v2433_v63 = vsel %vm516_vm2, %v2429_v62, -inf }
0x121c   :  { %2434 = vmax.xlane.f32.xlu1 %v2433_v63  ;;  %v8855_v0 = vpop.f32.mrf.mxu1 }
0x1224   :  { %v9391_v1 = vpop.eup %9390 }
0x1225   :  { %2280 = vperm.xlu0 %9366, %v9391_v1  }
0x12a0   :  { %v2281_v2 = vpop.permute.xlu0 %2280 }
0x12a1   :  { %v2283_v4 = vmul.f32 %v9389_v59, %v2281_v2 }
0x12a3   :  { %8849 = vmatmul.mubr.msk.f32.vlgmr.msra.gmra.mxu0 %vm516_vm2, %v2283_v4 }
0x12a4   :  { %8857 = vmatpush3.msra.mxu0 %v9474_v3  ;;  %8858 = vmatprep.mubr.msk.f32.mxu0 %vm9477_vm1, %v9476_v50 }
0x12a5   :  { %v2435_v5 = vpop.xlane.xlu1 %2434  ;;  %8866 = vmatprep.subr.mxu0 %v8072_v17 }
0x12a6   :  { %v2436_v6 = vsub.f32 %v2429_v62, %v2435_v5  ;;  %v8103_v5 = vld [vmem:[%s10554_s4 + $0x18] sm:$0xff] }
0x12a8   :  { %v2437_v9 = vmul.f32 1.442695, %v2436_v6 }
0x12aa   :  { %9392 = vpow2.f32 %v2437_v9 }
0x12b7   :  { %v9393_v10 = vpop.eup %9392 }
0x12b8   :  { %8859 = vmatmul.mubr.msk.f32.vlgmr.msra.gmra.mxu0 %vm516_vm2, %v9393_v10 }
0x12b9   :  { %8867 = vmatpush3.msra.mxu0 %v8072_v17 }
0x12ba   :  { %8882 = vmatprep.subr.mxu0 %v8086_v27 }
0x1363   :  { %v2353_v11 = vpop.f32.mrf.mxu0 }
0x1364   :  { %8868 = vmatprep.mubr.msk.f32.mxu0 %vm516_vm2, %v2353_v11 }
0x1365   :  { %v8850_v12 = vpop.f32.mrf.mxu0 }
0x1378   :  { %v2508_v13 = vpop.f32.mrf.mxu0 }
0x1379   :  { %9394 = vrcp.f32 %v2508_v13 }
0x137a   :  { %v8860_v14 = vpop.f32.mrf.mxu0 }
0x1386   :  { %v9395_v16 = vpop.eup %9394 }
0x1387   :  { %2515 = vperm.xlu1 %9367, %v9395_v16  }
0x1402   :  { %v2516_v18 = vpop.permute.xlu1 %2515 }
0x1403   :  { %v2518_v19 = vmul.f32 %v9393_v10, %v2516_v18 }
0x1405   :  { %8864 = vmatmul.mubr.msk.f32.vlgmr.msra.gmra.mxu1 %vm516_vm2, %v2518_v19 }
0x1406   :  { %8872 = vmatpush3.msra.mxu1 %v8078_v15  ;;  %8879 = vmatprep.mubr.msk.f32.mxu1 %vm41_vm0, %v9599_v43 }
0x1407   :  { %8873 = vmatprep.subr.mxu1 %v8077_v20 }
0x1408   :  { %8874 = vmatpush3.msra.mxu1 %v8077_v20 }
0x1409   :  { %8875 = vmatprep.subr.mxu1 %v8076_v21 }
0x140a   :  { %8876 = vmatpush3.msra.mxu1 %v8076_v21 }
0x140b   :  { %8877 = vmatprep.subr.mxu1 %v8075_v22 }
0x140c   :  { %8878 = vmatpush3.msra.mxu1 %v8075_v22 }
0x140d   :  { %8880 = vmatmul.mubr.msk.f32.vlgmr.msra.gmra.mxu1 %vm41_vm0, %v9605_v46  ;;  %8893 = vmatprep.subr.mxu1 %v8092_v23 }
0x140e   :  { %8894 = vmatpush3.msra.mxu1 %v8092_v23  ;;  %8901 = vmatprep.mubr.msk.f32.mxu1 %vm41_vm0, %v9599_v43 }
0x140f   :  { %8895 = vmatprep.subr.mxu1 %v8091_v24 }
0x1410   :  { %8896 = vmatpush3.msra.mxu1 %v8091_v24 }
0x1411   :  { %8897 = vmatprep.subr.mxu1 %v8090_v25 }
0x1412   :  { %8898 = vmatpush3.msra.mxu1 %v8090_v25 }
0x1413   :  { %8899 = vmatprep.subr.mxu1 %v8089_v26 }
0x1414   :  { %8900 = vmatpush3.msra.mxu1 %v8089_v26 }
0x1415   :  { %8902 = vmatmul.mubr.msk.f32.vlgmr.msra.gmra.mxu1 %vm41_vm0, %v9605_v46  ;;  %8914 = vmatprep.subr.mxu1 %v9476_v50 }
0x1416   :  { %8916 = vmatprep.mubr.msk.f32.mxu1 %vm9477_vm1, %v9476_v50 }
0x14c5   :  { %v2588_v28 = vpop.f32.mrf.mxu1 }
0x14c6   :  { %8869 = vmatmul.mubr.msk.f32.vlgmr.msra.gmra.mxu0 %vm516_vm2, %v2588_v28 }
0x14c7   :  { %8883 = vmatpush3.msra.mxu0 %v8086_v27  ;;  %v8865_v30 = vpop.f32.mrf.mxu1  ;;  %8890 = vmatprep.mubr.msk.f32.mxu0 %vm41_vm0, %v9599_v43 }
0x14c8   :  { %8884 = vmatprep.subr.mxu0 %v8085_v29 }
0x14c9   :  { %8885 = vmatpush3.msra.mxu0 %v8085_v29 }
0x14ca   :  { %8886 = vmatprep.subr.mxu0 %v8084_v31 }
0x14cb   :  { %8887 = vmatpush3.msra.mxu0 %v8084_v31 }
0x14cc   :  { %8888 = vmatprep.subr.mxu0 %v8083_v32 }
0x14cd   :  { %v8881_v34 = vpop.f32.mrf.mxu1  ;;  %8889 = vmatpush3.msra.mxu0 %v8083_v32 }
0x14ce   :  { %v2762_v43 = vadd.f32 %v8881_v34, %v8080_v33  ;;  %8891 = vmatmul.mubr.msk.f32.vlgmr.msra.gmra.mxu0 %vm41_vm0, %v9605_v46  ;;  %8904 = vmatprep.subr.mxu0 %v9476_v50 }
0x14cf   :  { %8906 = vmatprep.mubr.msk.f32.mxu0 %vm9477_vm1, %v9476_v50  ;;  %v2756_v35 = vpop.f32.mrf.mxu1 }
0x14d0   :  { %v2757_v44 = vadd.f32 %v8080_v33, %v2756_v35  ;;  %v3699_v33 = vld [vmem:[%s10555_s5 + $0x18] sm:$0xff] }
0x14d5   :  { %v8903_v36 = vpop.f32.mrf.mxu1 }
0x14d7   :  { %v2916_v37 = vpop.f32.mrf.mxu1 }
0x14d8   :  { %8915 = vmatpush3.msra.mxu1 %v2916_v37  ;;  %v3696_v37 = vld [vmem:[%s10555_s5] sm:$0xff] }
0x14d9   :  { %8924 = vmatprep.subr.mxu1 %v9476_v50 }
0x1586   :  { %v8870_v38 = vpop.f32.mrf.mxu0 }
0x1587   :  { %v9908_v39 = vadd.f32 %v8870_v38, %v9817_v51  ;;  %v3795_v38 = vld [vmem:[%s10556_s6 + $0x38] sm:$0xff] }
0x1588   :  { %v2666_v40 = vpop.f32.mrf.mxu0 }
0x1589   :  { %v9911_v41 = vadd.f32 %v2666_v40, %v9819_v53  ;;  %v3793_v40 = vld [vmem:[%s10556_s6 + $0x28] sm:$0xff] }
0x158e   :  { %v8892_v46 = vpop.f32.mrf.mxu0 }
0x1590   :  { %v2836_v42 = vpop.f32.mrf.mxu0 }
0x1591   :  { %8905 = vmatpush3.xpose.msk.msra.mxu0 %vm516_vm2, %v2836_v42  ;;  %v8112_v42 = vld [vmem:[%s10557_s7 + $0x2] ss:$0 sm:$0xff] }
0x1592   :  { %8909 = vmatprep.subr.mxu0 %v9476_v50 }
0x1594   :  { %8907 = vmatmul.mubr.msk.f32.vlgmr.msra.gmra.mxu0 %vm516_vm2, %v2757_v44 }
0x1595   :  { %8910 = vmatpush3.msra.mxu0 %v9474_v3  ;;  %8911 = vmatprep.mubr.msk.f32.mxu0 %vm9477_vm1, %v9476_v50 }
0x1596   :  { %8919 = vmatprep.subr.mxu0 %v9476_v50 }
0x1654   :  { %v2997_v45 = vpop.f32.mrf.mxu0 }
0x1655   :  { %v3001_v47 = vsel %vm516_vm2, %v2997_v45, -inf }
0x1656   :  { %3002 = vmax.xlane.f32.xlu0 %v3001_v47  ;;  %v8908_v51 = vpop.f32.mrf.mxu0 }
0x16df   :  { %v3003_v52 = vpop.xlane.xlu0 %3002 }
0x16e0   :  { %v3004_v53 = vsub.f32 %v2997_v45, %v3003_v52  ;;  %v8113_v52 = vld [vmem:[%s10557_s7 + $0x3] ss:$0 sm:$0xff] }
0x16e2   :  { %v3005_v54 = vmul.f32 1.442695, %v3004_v53 }
0x16e4   :  { %9396 = vpow2.f32 %v3005_v54 }
0x16f1   :  { %v9397_v55 = vpop.eup %9396 }
0x16f2   :  { %8912 = vmatmul.mubr.msk.f32.vlgmr.msra.gmra.mxu0 %vm516_vm2, %v9397_v55 }
0x16f3   :  { %8920 = vmatpush3.xpose.msk.msra.mxu0 %vm516_vm2, %v8892_v46  ;;  %8921 = vmatprep.mubr.msk.f32.mxu0 %vm9477_vm1, %v9476_v50 }
0x16f4   :  { %8929 = vmatprep.subr.mxu0 %v9476_v50 }
0x16f6   :  { %8922 = vmatmul.mubr.msk.f32.vlgmr.msra.gmra.mxu0 %vm516_vm2, %v2762_v43  ;;  %v3698_v43 = vld [vmem:[%s10555_s5 + $0x10] sm:$0xff] }
0x16f7   :  { %8930 = vmatpush3.msra.mxu0 %v8903_v36  ;;  %8931 = vmatprep.mubr.msk.f32.mxu0 %vm9477_vm1, %v9476_v50  ;;  %v3697_v36 = vld [vmem:[%s10555_s5 + $0x8] sm:$0xff] }
0x16f8   :  { %8939 = vmatprep.subr.mxu0 %v9474_v3 }
0x17b2   :  { %v3076_v56 = vpop.f32.mrf.mxu0 }
0x17b3   :  { %9398 = vrcp.f32 %v3076_v56  ;;  %v3791_v56 = vld [vmem:[%s10556_s6 + $0x18] sm:$0xff] }
0x17b4   :  { %v8913_v7 = vpop.f32.mrf.mxu0 }
0x17b5   :  { %v3790_v7 = vld [vmem:[%s10556_s6 + $0x10] sm:$0xff] }
0x17b6   :  { %v3232_v8 = vpop.f32.mrf.mxu0 }
0x17b7   :  { %v3236_v48 = vsel %vm516_vm2, %v3232_v8, -inf }
0x17b8   :  { %3237 = vmax.xlane.f32.xlu1 %v3236_v48  ;;  %v8923_v49 = vpop.f32.mrf.mxu0  ;;  %v3788_v48 = vld [vmem:[%s10556_s6] sm:$0xff] }
0x17b9   :  { %v3701_v49 = vlaneseq }
0x17c0   :  { %v9399_v57 = vpop.eup %9398 }
0x17c1   :  { %3083 = vperm.xlu0 %9366, %v9399_v57   ;;  %v10024_v57 = vshrl.u32 %v3701_v49, 7 }
0x183c   :  { %v3084_v58 = vpop.permute.xlu0 %3083 }
0x183d   :  { %v3086_v59 = vmul.f32 %v9397_v55, %v3084_v58  ;;  %v3703_v58 = vsub.s32 0, %v10024_v57 }
0x183f   :  { %8917 = vmatmul.mubr.msk.f32.vlgmr.msra.gmra.mxu1 %vm516_vm2, %v3086_v59  ;;  %v3700_v59 = vld [vmem:[%s10555_s5 + $0x20] sm:$0xff] }
0x1840   :  { %8925 = vmatpush3.msra.mxu1 %v9474_v3  ;;  %8926 = vmatprep.mubr.msk.f32.mxu1 %vm9477_vm1, %v9476_v50 }
0x1841   :  { %v3238_v60 = vpop.xlane.xlu1 %3237  ;;  %8934 = vmatprep.subr.mxu1 %v8103_v5 }
0x1842   :  { %v3239_v61 = vsub.f32 %v3232_v8, %v3238_v60  ;;  %v3789_v8 = vld [vmem:[%s10556_s6 + $0x8] sm:$0xff]  ;;  %v3704_v60 = vrot.slane %v3700_v59, %v3703_v58 }
0x1844   :  { %v3240_v62 = vmul.f32 1.442695, %v3239_v61 }
0x1846   :  { %9400 = vpow2.f32 %v3240_v62 }
0x1853   :  { %v9401_v63 = vpop.eup %9400 }
0x1854   :  { %8927 = vmatmul.mubr.msk.f32.vlgmr.msra.gmra.mxu1 %vm516_vm2, %v9401_v63 }
0x1855   :  { %8935 = vmatpush3.msra.mxu1 %v8103_v5 }
0x1856   :  { %8950 = vmatprep.subr.mxu1 %v9474_v3 }
0x18ff   :  { %v3156_v0 = vpop.f32.mrf.mxu1 }
0x1900   :  { %8936 = vmatprep.mubr.msk.f32.mxu1 %vm516_vm2, %v3156_v0 }
0x1901   :  { %v8918_v1 = vpop.f32.mrf.mxu1 }
0x1914   :  { %v3311_v2 = vpop.f32.mrf.mxu1 }
0x1915   :  { %9402 = vrcp.f32 %v3311_v2 }
0x1916   :  { %v8928_v4 = vpop.f32.mrf.mxu1 }
0x1922   :  { %v9403_v6 = vpop.eup %9402 }
0x1923   :  { %3318 = vperm.xlu1 %9367, %v9403_v6  }
0x199e   :  { %v3319_v9 = vpop.permute.xlu1 %3318 }
0x199f   :  { %v3321_v10 = vmul.f32 %v9401_v63, %v3319_v9  ;;  %v8119_v9 = vld [vmem:[%s10557_s7 + $0x5] ss:$0 sm:$0xff] }
0x19a1   :  { %8932 = vmatmul.mubr.msk.f32.vlgmr.msra.gmra.mxu0 %vm516_vm2, %v3321_v10 }
0x19a2   :  { %8940 = vmatpush3.msra.mxu0 %v9474_v3 }
0x19a3   :  { %8941 = vmatprep.subr.mxu0 %v9474_v3 }
0x19a4   :  { %8942 = vmatpush3.msra.mxu0 %v9474_v3 }
0x19a5   :  { %8943 = vmatprep.subr.mxu0 %v9474_v3 }
0x19a6   :  { %8944 = vmatpush3.msra.mxu0 %v9474_v3 }
0x19a7   :  { %8945 = vmatprep.subr.mxu0 %v9474_v3 }
0x19a8   :  { %8946 = vmatpush3.msra.mxu0 %v9474_v3 }
0x19a9   :  { %8961 = vmatprep.subr.mxu0 %v3699_v33 }
0x1a61   :  { %v3391_v11 = vpop.f32.mrf.mxu0 }
0x1a62   :  { %8937 = vmatmul.mubr.msk.f32.vlgmr.msra.gmra.mxu1 %vm516_vm2, %v3391_v11 }
0x1a63   :  { %v8933_v12 = vpop.f32.mrf.mxu0  ;;  %8951 = vmatpush3.msra.mxu1 %v9474_v3 }
0x1a64   :  { %8952 = vmatprep.subr.mxu1 %v9474_v3 }
0x1a65   :  { %8953 = vmatpush3.msra.mxu1 %v9474_v3 }
0x1a66   :  { %8954 = vmatprep.subr.mxu1 %v9474_v3 }
0x1a67   :  { %8955 = vmatpush3.msra.mxu1 %v9474_v3 }
0x1a68   :  { %8956 = vmatprep.subr.mxu1 %v9474_v3 }
0x1a69   :  { %8957 = vmatpush3.msra.mxu1 %v9474_v3 }
0x1a6a   :  { %8972 = vmatprep.subr.mxu1 %v3795_v38 }
0x1b22   :  { %v8938_v13 = vpop.f32.mrf.mxu1 }
0x1b23   :  { %v9961_v16 = vadd.f32 %v8938_v13, %v9908_v39  ;;  %v3794_v39 = vld [vmem:[%s10556_s6 + $0x30] sm:$0xff] }
0x1b24   :  { %v3469_v14 = vpop.f32.mrf.mxu1 }
0x1b25   :  { %v9958_v15 = vadd.f32 %v3469_v14, %v9911_v41  ;;  %v3792_v41 = vld [vmem:[%s10556_s6 + $0x20] sm:$0xff] }
0x1b27   :  { %8947 = vmatprep.mubr.msk.f32.mxu0 %vm41_vm0, %v9958_v15 }
0x1b28   :  { %8948 = vmatmul.mubr.msk.f32.vlgmr.msra.gmra.mxu0 %vm41_vm0, %v9961_v16 }
0x1b29   :  { %8962 = vmatpush3.msra.mxu0 %v3699_v33  ;;  %v8140_v33 = vld [vmem:[%s10552_s2 + $0x1b0] sm:$0xff] }
0x1b2a   :  { %8963 = vmatprep.subr.mxu0 %v3698_v43 }
0x1b2b   :  { %8964 = vmatpush3.msra.mxu0 %v3698_v43 }
0x1b2c   :  { %8965 = vmatprep.subr.mxu0 %v3697_v36 }
0x1b2d   :  { %8966 = vmatpush3.msra.mxu0 %v3697_v36  ;;  %v8130_v36 = vld [vmem:[%s10552_s2 + $0x180] sm:$0xff] }
0x1b2e   :  { %8967 = vmatprep.subr.mxu0 %v3696_v37 }
0x1b2f   :  { %8968 = vmatpush3.msra.mxu0 %v3696_v37  ;;  %v8138_v37 = vld [vmem:[%s10552_s2 + $0x1a0] sm:$0xff] }
0x1b30   :  { %8991 = vmatprep.subr.mxu0 %v9474_v3 }
0x1be8   :  { %v8949_v17 = vpop.f32.mrf.mxu0 }
0x1be9   :  { %v3566_v20 = vmul.f32 0.03125, %v8949_v17 }
0x1bea   :  { %v3556_v18 = vpop.f32.mrf.mxu0 }
0x1beb   :  { %v3565_v19 = vmul.f32 0.03125, %v3556_v18 }
0x1bed   :  { %3569 = vperm.xlu0 %9366, %v3565_v19  }
0x1bf1   :  { %3574 = vperm.xlu0 %9366, %v3566_v20  }
0x1c68   :  { %v3570_v21 = vpop.permute.xlu0 %3569 }
0x1c69   :  { %v3577_v22 = vsub.f32 %v9958_v15, %v3570_v21 }
0x1c6b   :  { %v3579_v23 = vmul.f32 %v3577_v22, %v3577_v22 }
0x1c6c   :  { %v3575_v24 = vpop.permute.xlu0 %3574 }
0x1c6d   :  { %v3578_v25 = vsub.f32 %v9961_v16, %v3575_v24  ;;  %8958 = vmatprep.mubr.msk.f32.mxu1 %vm41_vm0, %v3579_v23 }
0x1c6f   :  { %v3580_v26 = vmul.f32 %v3578_v25, %v3578_v25 }
0x1c71   :  { %8959 = vmatmul.mubr.msk.f32.vlgmr.msra.gmra.mxu1 %vm41_vm0, %v3580_v26 }
0x1c72   :  { %8973 = vmatpush3.msra.mxu1 %v3795_v38  ;;  %v8147_v38 = vld [vmem:[%s10552_s2 + $0x1d8] sm:$0xff] }
0x1c73   :  { %8974 = vmatprep.subr.mxu1 %v3794_v39 }
0x1c74   :  { %8975 = vmatpush3.msra.mxu1 %v3794_v39 }
0x1c75   :  { %8976 = vmatprep.subr.mxu1 %v3793_v40 }
0x1c76   :  { %8977 = vmatpush3.msra.mxu1 %v3793_v40  ;;  %v8126_v40 = vld [vmem:[%s10557_s7 + $0x6] ss:$0 sm:$0xff] }
0x1c77   :  { %8978 = vmatprep.subr.mxu1 %v3792_v41 }
0x1c78   :  { %8979 = vmatpush3.msra.mxu1 %v3792_v41 }
0x1c79   :  { %8980 = vmatprep.subr.mxu1 %v3791_v56 }
0x1c7a   :  { %8981 = vmatpush3.msra.mxu1 %v3791_v56  ;;  %v8135_v56 = vld [vmem:[%s10553_s3 + $0x4] ss:$0 sm:$0xff] }
0x1c7b   :  { %8982 = vmatprep.subr.mxu1 %v3790_v7 }
0x1c7c   :  { %8983 = vmatpush3.msra.mxu1 %v3790_v7 }
0x1c7d   :  { %8984 = vmatprep.subr.mxu1 %v3789_v8 }
0x1c7e   :  { %8985 = vmatpush3.msra.mxu1 %v3789_v8 }
0x1c7f   :  { %8986 = vmatprep.subr.mxu1 %v3788_v48 }
0x1c80   :  { %8987 = vmatpush3.msra.mxu1 %v3788_v48 }
0x1d31   :  { %v8960_v27 = vpop.f32.mrf.mxu1 }
0x1d32   :  { %v3663_v28 = vmul.f32 0.03125, %v8960_v27 }
0x1d33   :  { %v3653_v29 = vpop.f32.mrf.mxu1 }
0x1d34   :  { %v3665_v30 = vadd.f32 1e-05, %v3663_v28  ;;  %v3662_v31 = vmul.f32 0.03125, %v3653_v29  ;;  %v8133_v29 = vld [vmem:[%s10552_s2 + $0x198] sm:$0xff] }
0x1d35   :  { %9013 = vmatprep.subr.mxu1 %v8133_v29 }
0x1d36   :  { %9404 = vrsqrt.f32 %v3665_v30  ;;  %v3664_v32 = vadd.f32 1e-05, %v3662_v31  ;;  %v8141_v30 = vld [vmem:[%s10552_s2 + $0x1b8] sm:$0xff]  ;;  %v8132_v31 = vld [vmem:[%s10552_s2 + $0x190] sm:$0xff] }
0x1d38   :  { %9406 = vrsqrt.f32 %v3664_v32 }
0x1d43   :  { %v9405_v34 = vpop.eup %9404 }
0x1d44   :  { %3675 = vperm.xlu1 %9367, %v9405_v34   ;;  %v8131_v34 = vld [vmem:[%s10552_s2 + $0x188] sm:$0xff] }
0x1d45   :  { %v9407_v35 = vpop.eup %9406 }
0x1d46   :  { %3670 = vperm.xlu0 %9366, %v9407_v35   ;;  %v8139_v35 = vld [vmem:[%s10552_s2 + $0x1a8] sm:$0xff] }
0x1dbf   :  { %v3676_v46 = vpop.permute.xlu1 %3675 }
0x1dc0   :  { %v3679_v44 = vmul.f32 %v3676_v46, %v3578_v25 }
0x1dc1   :  { %v3671_v45 = vpop.permute.xlu0 %3670 }
0x1dc2   :  { %v3678_v47 = vmul.f32 %v3671_v45, %v3577_v22  ;;  %v3687_v51 = vmul.f32 %v8112_v42, %v3679_v44  ;;  %v8127_v45 = vld [vmem:[%s10557_s7 + $0x7] ss:$0 sm:$0xff] }
0x1dc4   :  { %v3686_v53 = vmul.f32 %v8112_v42, %v3678_v47  ;;  %v3695_v55 = vadd.f32 %v8113_v52, %v3687_v51 }
0x1dc6   :  { %v3694_v54 = vadd.f32 %v8113_v52, %v3686_v53  ;;  %v8146_v53 = vld [vmem:[%s10552_s2 + $0x1d0] sm:$0xff] }
0x1dc8   :  { %8969 = vmatprep.mubr.msk.f32.mxu0 %vm41_vm0, %v3694_v54  ;;  %v8145_v54 = vld [vmem:[%s10552_s2 + $0x1c8] sm:$0xff] }
0x1dc9   :  { %8970 = vmatmul.mubr.msk.f32.vlgmr.msra.gmra.mxu0 %vm41_vm0, %v3695_v55  ;;  %v8144_v55 = vld [vmem:[%s10552_s2 + $0x1c0] sm:$0xff] }
0x1dca   :  { %8992 = vmatpush3.msra.mxu0 %v9474_v3 }
0x1dcb   :  { %8993 = vmatprep.subr.mxu0 %v9474_v3 }
0x1dcc   :  { %8994 = vmatpush3.msra.mxu0 %v9474_v3 }
0x1dcd   :  { %8995 = vmatprep.subr.mxu0 %v9474_v3 }
0x1dce   :  { %8996 = vmatpush3.msra.mxu0 %v9474_v3 }
0x1dcf   :  { %8997 = vmatprep.subr.mxu0 %v9474_v3 }
0x1dd0   :  { %8998 = vmatpush3.msra.mxu0 %v9474_v3 }
0x1dd1   :  { %9002 = vmatprep.subr.mxu0 %v9474_v3 }
0x1e89   :  { %v8971_v61 = vpop.f32.mrf.mxu0 }
0x1e8a   :  { %v3783_v62 = vadd.f32 %v8971_v61, %v3704_v60 }
0x1e8b   :  { %v3777_v63 = vpop.f32.mrf.mxu0 }
0x1e8c   :  { %v3778_v0 = vadd.f32 %v3777_v63, %v3704_v60  ;;  %v3787_v2 = vmax.f32 %v3783_v62, 0.0 }
0x1e8e   :  { %v3786_v1 = vmax.f32 %v3778_v0, 0.0 }
0x1e90   :  { %8988 = vmatprep.mubr.msk.f32.mxu1 %vm3796_vm3, %v3786_v1 }
0x1e91   :  { %8989 = vmatmul.mubr.msk.f32.vlgmr.msra.gmra.mxu1 %vm3796_vm3, %v3787_v2 }
0x1e92   :  { %9014 = vmatpush3.msra.mxu1 %v8133_v29  ;;  %v8158_v29 = vld [vmem:[%s10554_s4 + $0x20] sm:$0xff] }
0x1e93   :  { %9015 = vmatprep.subr.mxu1 %v8132_v31 }
0x1e94   :  { %9016 = vmatpush3.msra.mxu1 %v8132_v31 }
0x1e95   :  { %9017 = vmatprep.subr.mxu1 %v8131_v34 }
0x1e96   :  { %9018 = vmatpush3.msra.mxu1 %v8131_v34  ;;  %v8161_v34 = vld [vmem:[%s10552_s2 + $0x1e0] sm:$0xff] }
0x1e97   :  { %9019 = vmatprep.subr.mxu1 %v8130_v36 }
0x1e98   :  { %9020 = vmatpush3.msra.mxu1 %v8130_v36  ;;  %v8176_v36 = vld [vmem:[%s10552_s2 + $0x228] sm:$0xff] }
0x1e99   :  { %9035 = vmatprep.subr.mxu1 %v8147_v38 }
0x1f51   :  { %v8990_v4 = vpop.f32.mrf.mxu1 }
0x1f52   :  { %v3879_v5 = vadd.f32 %v8990_v4, %v9961_v16 }
0x1f53   :  { %v3869_v6 = vpop.f32.mrf.mxu1 }
0x1f54   :  { %v3878_v10 = vadd.f32 %v3869_v6, %v9958_v15  ;;  %v10041_v12 = vadd.f32 %v8119_v9, %v3879_v5 }
0x1f56   :  { %v10039_v11 = vadd.f32 %v8119_v9, %v3878_v10 }
0x1f58   :  { %8999 = vmatprep.mubr.msk.f32.mxu0 %vm41_vm0, %v10039_v11 }
0x1f59   :  { %9000 = vmatmul.mubr.msk.f32.vlgmr.msra.gmra.mxu0 %vm41_vm0, %v10041_v12 }
0x1f5a   :  { %9003 = vmatpush3.msra.mxu0 %v9474_v3 }
0x1f5b   :  { %9004 = vmatprep.subr.mxu0 %v9474_v3 }
0x1f5c   :  { %9005 = vmatpush3.msra.mxu0 %v9474_v3 }
0x1f5d   :  { %9006 = vmatprep.subr.mxu0 %v9474_v3 }
0x1f5e   :  { %9007 = vmatpush3.msra.mxu0 %v9474_v3 }
0x1f5f   :  { %9008 = vmatprep.subr.mxu0 %v9474_v3 }
0x1f60   :  { %9009 = vmatpush3.msra.mxu0 %v9474_v3 }
0x1f61   :  { %9024 = vmatprep.subr.mxu0 %v8141_v30 }
0x2019   :  { %v9001_v13 = vpop.f32.mrf.mxu0 }
0x201a   :  { %v3976_v14 = vmul.f32 0.03125, %v9001_v13 }
0x201b   :  { %v3966_v15 = vpop.f32.mrf.mxu0 }
0x201c   :  { %v3975_v16 = vmul.f32 0.03125, %v3966_v15  ;;  %3984 = vperm.xlu1 %9367, %v3976_v14  }
0x201e   :  { %3979 = vperm.xlu0 %9366, %v3975_v16  }
0x2097   :  { %v3985_v17 = vpop.permute.xlu1 %3984 }
0x2098   :  { %v3988_v18 = vsub.f32 %v10041_v12, %v3985_v17 }
0x2099   :  { %v3980_v19 = vpop.permute.xlu0 %3979 }
0x209a   :  { %v3987_v20 = vsub.f32 %v10039_v11, %v3980_v19  ;;  %v3990_v22 = vmul.f32 %v3988_v18, %v3988_v18 }
0x209c   :  { %v3989_v21 = vmul.f32 %v3987_v20, %v3987_v20 }
0x209e   :  { %9010 = vmatprep.mubr.msk.f32.mxu0 %vm41_vm0, %v3989_v21 }
0x209f   :  { %9011 = vmatmul.mubr.msk.f32.vlgmr.msra.gmra.mxu0 %vm41_vm0, %v3990_v22 }
0x20a0   :  { %9025 = vmatpush3.msra.mxu0 %v8141_v30 }
0x20a1   :  { %9026 = vmatprep.subr.mxu0 %v8140_v33 }
0x20a2   :  { %9027 = vmatpush3.msra.mxu0 %v8140_v33  ;;  %v8162_v33 = vld [vmem:[%s10552_s2 + $0x1e8] sm:$0xff] }
0x20a3   :  { %9028 = vmatprep.subr.mxu0 %v8139_v35 }
0x20a4   :  { %9029 = vmatpush3.msra.mxu0 %v8139_v35  ;;  %v8177_v35 = vld [vmem:[%s10552_s2 + $0x230] sm:$0xff] }
0x20a5   :  { %9030 = vmatprep.subr.mxu0 %v8138_v37 }
0x20a6   :  { %9031 = vmatpush3.msra.mxu0 %v8138_v37  ;;  %v8175_v37 = vld [vmem:[%s10552_s2 + $0x220] sm:$0xff] }
0x20a7   :  { %9046 = vmatprep.subr.mxu0 %v9476_v50 }
0x215f   :  { %v9012_v23 = vpop.f32.mrf.mxu0 }
0x2160   :  { %v4073_v24 = vmul.f32 0.03125, %v9012_v23 }
0x2161   :  { %v4063_v25 = vpop.f32.mrf.mxu0 }
0x2162   :  { %v4075_v26 = vadd.f32 1e-05, %v4073_v24  ;;  %v4072_v27 = vmul.f32 0.03125, %v4063_v25 }
0x2164   :  { %9408 = vrsqrt.f32 %v4075_v26  ;;  %v4074_v28 = vadd.f32 1e-05, %v4072_v27  ;;  %v8164_v27 = vld [vmem:[%s10552_s2 + $0x1f8] sm:$0xff] }
0x2166   :  { %9410 = vrsqrt.f32 %v4074_v28 }
0x2171   :  { %v9409_v32 = vpop.eup %9408 }
0x2172   :  { %4085 = vperm.xlu1 %9367, %v9409_v32   ;;  %v8163_v32 = vld [vmem:[%s10552_s2 + $0x1f0] sm:$0xff] }
0x2173   :  { %v9411_v43 = vpop.eup %9410 }
0x2174   :  { %4080 = vperm.xlu0 %9366, %v9411_v43   ;;  %v8178_v43 = vld [vmem:[%s10552_s2 + $0x238] sm:$0xff] }
0x21ed   :  { %v4086_v39 = vpop.permute.xlu1 %4085 }
0x21ee   :  { %v4089_v41 = vmul.f32 %v4086_v39, %v3988_v18 }
0x21ef   :  { %v4081_v46 = vpop.permute.xlu0 %4080 }
0x21f0   :  { %v4088_v42 = vmul.f32 %v4081_v46, %v3987_v20  ;;  %v4097_v44 = vmul.f32 %v8126_v40, %v4089_v41  ;;  %v8170_v46 = vld [vmem:[%s10552_s2 + $0x208] sm:$0xff] }
0x21f2   :  { %v4096_v47 = vmul.f32 %v8126_v40, %v4088_v42  ;;  %v10094_v52 = vadd.f32 %v8127_v45, %v4097_v44  ;;  %v8171_v40 = vld [vmem:[%s10552_s2 + $0x210] sm:$0xff]  ;;  %v8169_v42 = vld [vmem:[%s10552_s2 + $0x200] sm:$0xff] }
0x21f3   :  { %v8166_v44 = vld [vmem:[%s10553_s3 + $0x5] ss:$0 sm:$0xff] }
0x21f4   :  { %v10092_v51 = vadd.f32 %v8127_v45, %v4096_v47 }
0x21f6   :  { %9021 = vmatprep.mubr.msk.f32.mxu1 %vm41_vm0, %v10092_v51  ;;  %9032 = vmatprep.mubr.msk.f32.mxu0 %vm41_vm0, %v10092_v51 }
0x21f7   :  { %9022 = vmatmul.mubr.msk.f32.vlgmr.msra.gmra.mxu1 %vm41_vm0, %v10094_v52  ;;  %9033 = vmatmul.mubr.msk.f32.vlgmr.msra.gmra.mxu0 %vm41_vm0, %v10094_v52 }
0x21f8   :  { %9036 = vmatpush3.msra.mxu1 %v8147_v38  ;;  %9043 = vmatprep.mubr.msk.f32.mxu1 %vm41_vm0, %v10092_v51  ;;  %v8172_v38 = vld [vmem:[%s10552_s2 + $0x218] sm:$0xff] }
0x21f9   :  { %9037 = vmatprep.subr.mxu1 %v8146_v53  ;;  %9048 = vmatprep.mubr.msk.f32.mxu0 %vm9477_vm1, %v9476_v50 }
0x21fa   :  { %9038 = vmatpush3.msra.mxu1 %v8146_v53 }
0x21fb   :  { %9039 = vmatprep.subr.mxu1 %v8145_v54 }
0x21fc   :  { %9040 = vmatpush3.msra.mxu1 %v8145_v54 }
0x21fd   :  { %9041 = vmatprep.subr.mxu1 %v8144_v55 }
0x21fe   :  { %9042 = vmatpush3.msra.mxu1 %v8144_v55 }
0x21ff   :  { %9044 = vmatmul.mubr.msk.f32.vlgmr.msra.gmra.mxu1 %vm41_vm0, %v10094_v52  ;;  %9051 = vmatprep.subr.mxu1 %v9476_v50 }
0x2200   :  { %9052 = vmatpush3.msra.mxu1 %v9474_v3  ;;  %9053 = vmatprep.mubr.msk.f32.mxu1 %vm9477_vm1, %v9476_v50 }
0x2201   :  { %9061 = vmatprep.subr.mxu1 %v9476_v50 }
0x22b7   :  { %v9023_v7 = vpop.f32.mrf.mxu1  ;;  %v9034_v8 = vpop.f32.mrf.mxu0 }
0x22b8   :  { %v4207_v48 = vadd.f32 %v9023_v7, %v8135_v56 }
0x22b9   :  { %v4201_v49 = vpop.f32.mrf.mxu1  ;;  %v4281_v59 = vpop.f32.mrf.mxu0 }
0x22ba   :  { %v4202_v60 = vadd.f32 %v8135_v56, %v4201_v49  ;;  %9047 = vmatpush3.xpose.msk.msra.mxu0 %vm516_vm2, %v4281_v59 }
0x22bb   :  { %9056 = vmatprep.subr.mxu0 %v9476_v50 }
0x22bd   :  { %9049 = vmatmul.mubr.msk.f32.vlgmr.msra.gmra.mxu0 %vm516_vm2, %v4202_v60 }
0x22be   :  { %9058 = vmatprep.mubr.msk.f32.mxu0 %vm9477_vm1, %v9476_v50 }
0x22bf   :  { %v9045_v61 = vpop.f32.mrf.mxu1 }
0x22c1   :  { %v4361_v62 = vpop.f32.mrf.mxu1 }
0x22c2   :  { %9057 = vmatpush3.msra.mxu0 %v4361_v62 }
0x22c3   :  { %9066 = vmatprep.subr.mxu0 %v9476_v50 }
0x237d   :  { %v4442_v63 = vpop.f32.mrf.mxu0 }
0x237e   :  { %v4446_v0 = vsel %vm516_vm2, %v4442_v63, -inf }
0x237f   :  { %4447 = vmax.xlane.f32.xlu0 %v4446_v0  ;;  %v9050_v1 = vpop.f32.mrf.mxu0 }
0x2408   :  { %v4448_v2 = vpop.xlane.xlu0 %4447 }
0x2409   :  { %v4449_v4 = vsub.f32 %v4442_v63, %v4448_v2 }
0x240b   :  { %v4450_v5 = vmul.f32 1.442695, %v4449_v4 }
0x240d   :  { %9412 = vpow2.f32 %v4450_v5 }
0x241a   :  { %v9413_v6 = vpop.eup %9412 }
0x241b   :  { %9054 = vmatmul.mubr.msk.f32.vlgmr.msra.gmra.mxu1 %vm516_vm2, %v9413_v6 }
0x241c   :  { %9062 = vmatpush3.xpose.msk.msra.mxu1 %vm516_vm2, %v9034_v8  ;;  %9063 = vmatprep.mubr.msk.f32.mxu1 %vm9477_vm1, %v9476_v50 }
0x241d   :  { %9071 = vmatprep.subr.mxu1 %v9476_v50 }
0x241f   :  { %9064 = vmatmul.mubr.msk.f32.vlgmr.msra.gmra.mxu1 %vm516_vm2, %v4207_v48 }
0x2420   :  { %9072 = vmatpush3.msra.mxu1 %v9045_v61  ;;  %9073 = vmatprep.mubr.msk.f32.mxu1 %vm9477_vm1, %v9476_v50 }
0x2421   :  { %9081 = vmatprep.subr.mxu1 %v8164_v27 }
0x24db   :  { %v4521_v9 = vpop.f32.mrf.mxu1 }
0x24dc   :  { %9414 = vrcp.f32 %v4521_v9 }
0x24dd   :  { %v9055_v10 = vpop.f32.mrf.mxu1 }
0x24df   :  { %v4677_v13 = vpop.f32.mrf.mxu1 }
0x24e0   :  { %v4681_v14 = vsel %vm516_vm2, %v4677_v13, -inf }
0x24e1   :  { %4682 = vmax.xlane.f32.xlu1 %v4681_v14  ;;  %v9065_v15 = vpop.f32.mrf.mxu1 }
0x24e9   :  { %v9415_v16 = vpop.eup %9414 }
0x24ea   :  { %4528 = vperm.xlu0 %9366, %v9415_v16  }
0x2565   :  { %v4529_v17 = vpop.permute.xlu0 %4528 }
0x2566   :  { %v4531_v18 = vmul.f32 %v9413_v6, %v4529_v17 }
0x2568   :  { %9059 = vmatmul.mubr.msk.f32.vlgmr.msra.gmra.mxu0 %vm516_vm2, %v4531_v18 }
0x2569   :  { %9067 = vmatpush3.msra.mxu0 %v9474_v3  ;;  %9068 = vmatprep.mubr.msk.f32.mxu0 %vm9477_vm1, %v9476_v50 }
0x256a   :  { %v4683_v19 = vpop.xlane.xlu1 %4682  ;;  %9076 = vmatprep.subr.mxu0 %v8158_v29 }
0x256b   :  { %v4684_v20 = vsub.f32 %v4677_v13, %v4683_v19 }
0x256d   :  { %v4685_v21 = vmul.f32 1.442695, %v4684_v20 }
0x256f   :  { %9416 = vpow2.f32 %v4685_v21 }
0x257c   :  { %v9417_v22 = vpop.eup %9416 }
0x257d   :  { %9069 = vmatmul.mubr.msk.f32.vlgmr.msra.gmra.mxu0 %vm516_vm2, %v9417_v22 }
0x257e   :  { %9077 = vmatpush3.msra.mxu0 %v8158_v29  ;;  %v8193_v29 = vld [vmem:[%s10552_s2 + $0x248] sm:$0xff] }
0x257f   :  { %9092 = vmatprep.subr.mxu0 %v8172_v38 }
0x2628   :  { %v4601_v23 = vpop.f32.mrf.mxu0 }
0x2629   :  { %9078 = vmatprep.mubr.msk.f32.mxu0 %vm516_vm2, %v4601_v23  ;;  %v8195_v23 = vld [vmem:[%s10552_s2 + $0x258] sm:$0xff] }
0x262a   :  { %v9060_v24 = vpop.f32.mrf.mxu0 }
0x263d   :  { %v4756_v25 = vpop.f32.mrf.mxu0 }
0x263e   :  { %9418 = vrcp.f32 %v4756_v25  ;;  %v8189_v25 = vld [vmem:[%s10554_s4 + $0x28] sm:$0xff] }
0x263f   :  { %v9070_v26 = vpop.f32.mrf.mxu0 }
0x264b   :  { %v9419_v28 = vpop.eup %9418 }
0x264c   :  { %4763 = vperm.xlu1 %9367, %v9419_v28   ;;  %v8194_v28 = vld [vmem:[%s10552_s2 + $0x250] sm:$0xff] }
0x26c7   :  { %v4764_v30 = vpop.permute.xlu1 %4763 }
0x26c8   :  { %v4766_v31 = vmul.f32 %v9417_v22, %v4764_v30  ;;  %v8192_v30 = vld [vmem:[%s10552_s2 + $0x240] sm:$0xff] }
0x26ca   :  { %9074 = vmatmul.mubr.msk.f32.vlgmr.msra.gmra.mxu1 %vm516_vm2, %v4766_v31  ;;  %v8209_v31 = vld [vmem:[%s10552_s2 + $0x298] sm:$0xff] }
0x26cb   :  { %9082 = vmatpush3.msra.mxu1 %v8164_v27  ;;  %9089 = vmatprep.mubr.msk.f32.mxu1 %vm41_vm0, %v10092_v51 }
0x26cc   :  { %9083 = vmatprep.subr.mxu1 %v8163_v32 }
0x26cd   :  { %9084 = vmatpush3.msra.mxu1 %v8163_v32  ;;  %v8208_v32 = vld [vmem:[%s10552_s2 + $0x290] sm:$0xff] }
0x26ce   :  { %9085 = vmatprep.subr.mxu1 %v8162_v33 }
0x26cf   :  { %9086 = vmatpush3.msra.mxu1 %v8162_v33  ;;  %v8207_v33 = vld [vmem:[%s10552_s2 + $0x288] sm:$0xff] }
0x26d0   :  { %9087 = vmatprep.subr.mxu1 %v8161_v34 }
0x26d1   :  { %9088 = vmatpush3.msra.mxu1 %v8161_v34  ;;  %v8206_v34 = vld [vmem:[%s10552_s2 + $0x280] sm:$0xff] }
0x26d2   :  { %9090 = vmatmul.mubr.msk.f32.vlgmr.msra.gmra.mxu1 %vm41_vm0, %v10094_v52  ;;  %9103 = vmatprep.subr.mxu1 %v8178_v43 }
0x26d3   :  { %9104 = vmatpush3.msra.mxu1 %v8178_v43  ;;  %9111 = vmatprep.mubr.msk.f32.mxu1 %vm41_vm0, %v10092_v51  ;;  %v8203_v43 = vld [vmem:[%s10552_s2 + $0x278] sm:$0xff] }
0x26d4   :  { %9105 = vmatprep.subr.mxu1 %v8177_v35 }
0x26d5   :  { %9106 = vmatpush3.msra.mxu1 %v8177_v35 }
0x26d6   :  { %9107 = vmatprep.subr.mxu1 %v8176_v36 }
0x26d7   :  { %9108 = vmatpush3.msra.mxu1 %v8176_v36  ;;  %v8202_v36 = vld [vmem:[%s10552_s2 + $0x270] sm:$0xff] }
0x26d8   :  { %9109 = vmatprep.subr.mxu1 %v8175_v37 }
0x26d9   :  { %9110 = vmatpush3.msra.mxu1 %v8175_v37 }
0x26da   :  { %9112 = vmatmul.mubr.msk.f32.vlgmr.msra.gmra.mxu1 %vm41_vm0, %v10094_v52  ;;  %9124 = vmatprep.subr.mxu1 %v9476_v50 }
0x26db   :  { %9126 = vmatprep.mubr.msk.f32.mxu1 %vm9477_vm1, %v9476_v50 }
0x278a   :  { %v4836_v39 = vpop.f32.mrf.mxu1 }
0x278b   :  { %9079 = vmatmul.mubr.msk.f32.vlgmr.msra.gmra.mxu0 %vm516_vm2, %v4836_v39  ;;  %v8200_v39 = vld [vmem:[%s10552_s2 + $0x260] sm:$0xff] }
0x278c   :  { %9093 = vmatpush3.msra.mxu0 %v8172_v38  ;;  %v9075_v41 = vpop.f32.mrf.mxu1  ;;  %9100 = vmatprep.mubr.msk.f32.mxu0 %vm41_vm0, %v10092_v51  ;;  %v8201_v38 = vld [vmem:[%s10552_s2 + $0x268] sm:$0xff] }
0x278d   :  { %9094 = vmatprep.subr.mxu0 %v8171_v40 }
0x278e   :  { %9095 = vmatpush3.msra.mxu0 %v8171_v40  ;;  %v8197_v40 = vld [vmem:[%s10553_s3 + $0x6] ss:$0 sm:$0xff] }
0x278f   :  { %9096 = vmatprep.subr.mxu0 %v8170_v46 }
0x2790   :  { %9097 = vmatpush3.msra.mxu0 %v8170_v46 }
0x2791   :  { %9098 = vmatprep.subr.mxu0 %v8169_v42 }
0x2792   :  { %v9091_v45 = vpop.f32.mrf.mxu1  ;;  %9099 = vmatpush3.msra.mxu0 %v8169_v42 }
0x2793   :  { %v5010_v47 = vadd.f32 %v9091_v45, %v8166_v44  ;;  %9101 = vmatmul.mubr.msk.f32.vlgmr.msra.gmra.mxu0 %vm41_vm0, %v10094_v52  ;;  %9114 = vmatprep.subr.mxu0 %v9476_v50 }
0x2794   :  { %9116 = vmatprep.mubr.msk.f32.mxu0 %vm9477_vm1, %v9476_v50  ;;  %v5004_v53 = vpop.f32.mrf.mxu1 }
0x2795   :  { %v5005_v49 = vadd.f32 %v8166_v44, %v5004_v53 }
0x279a   :  { %v9113_v54 = vpop.f32.mrf.mxu1 }
0x279c   :  { %v5164_v55 = vpop.f32.mrf.mxu1 }
0x279d   :  { %9125 = vmatpush3.msra.mxu1 %v5164_v55 }
0x279e   :  { %9134 = vmatprep.subr.mxu1 %v9476_v50 }
0x284b   :  { %v10212_v56 = vpop.f32.mrf.mxu0 }
0x284d   :  { %v10214_v7 = vpop.f32.mrf.mxu0 }
0x2853   :  { %v9102_v8 = vpop.f32.mrf.mxu0 }
0x2855   :  { %v5084_v48 = vpop.f32.mrf.mxu0 }
0x2856   :  { %9115 = vmatpush3.xpose.msk.msra.mxu0 %vm516_vm2, %v5084_v48 }
0x2857   :  { %9119 = vmatprep.subr.mxu0 %v9476_v50 }
0x2859   :  { %9117 = vmatmul.mubr.msk.f32.vlgmr.msra.gmra.mxu0 %vm516_vm2, %v5005_v49 }
0x285a   :  { %9120 = vmatpush3.msra.mxu0 %v9474_v3  ;;  %9121 = vmatprep.mubr.msk.f32.mxu0 %vm9477_vm1, %v9476_v50 }
0x285b   :  { %9129 = vmatprep.subr.mxu0 %v9476_v50 }
0x2919   :  { %v5245_v59 = vpop.f32.mrf.mxu0 }
0x291a   :  { %v5249_v60 = vsel %vm516_vm2, %v5245_v59, -inf }
0x291b   :  { %5250 = vmax.xlane.f32.xlu0 %v5249_v60  ;;  %v9118_v61 = vpop.f32.mrf.mxu0 }
0x29a4   :  { %v5251_v62 = vpop.xlane.xlu0 %5250 }
0x29a5   :  { %v5252_v63 = vsub.f32 %v5245_v59, %v5251_v62 }
0x29a7   :  { %v5253_v0 = vmul.f32 1.442695, %v5252_v63 }
0x29a9   :  { %9420 = vpow2.f32 %v5253_v0 }
0x29b6   :  { %v9421_v1 = vpop.eup %9420 }
0x29b7   :  { %9122 = vmatmul.mubr.msk.f32.vlgmr.msra.gmra.mxu0 %vm516_vm2, %v9421_v1 }
0x29b8   :  { %9130 = vmatpush3.xpose.msk.msra.mxu0 %vm516_vm2, %v9102_v8  ;;  %9131 = vmatprep.mubr.msk.f32.mxu0 %vm9477_vm1, %v9476_v50 }
0x29b9   :  { %9139 = vmatprep.subr.mxu0 %v9476_v50 }
0x29bb   :  { %9132 = vmatmul.mubr.msk.f32.vlgmr.msra.gmra.mxu0 %vm516_vm2, %v5010_v47  ;;  %v8129_v47 = vld [vmem:[%s10557_s7 + $0xa] ss:$0 sm:$0xff] }
0x29bc   :  { %9140 = vmatpush3.msra.mxu0 %v9113_v54  ;;  %9141 = vmatprep.mubr.msk.f32.mxu0 %vm9477_vm1, %v9476_v50  ;;  %v4115_v53 = vadd.f32 %v8129_v47, %v10041_v12  ;;  %v4114_v55 = vadd.f32 %v8129_v47, %v10039_v11 }
0x29bd   :  { %9149 = vmatprep.subr.mxu0 %v8195_v23 }
0x29be   :  { %v4924_v54 = vadd.f32 %v10212_v56, %v4115_v53  ;;  %v4923_v48 = vadd.f32 %v10214_v7, %v4114_v55 }
0x2a77   :  { %v5324_v2 = vpop.f32.mrf.mxu0 }
0x2a78   :  { %9422 = vrcp.f32 %v5324_v2 }
0x2a79   :  { %v9123_v4 = vpop.f32.mrf.mxu0 }
0x2a7b   :  { %v5480_v5 = vpop.f32.mrf.mxu0 }
0x2a7c   :  { %v5484_v6 = vsel %vm516_vm2, %v5480_v5, -inf }
0x2a7d   :  { %5485 = vmax.xlane.f32.xlu1 %v5484_v6  ;;  %v9133_v9 = vpop.f32.mrf.mxu0 }
0x2a85   :  { %v9423_v10 = vpop.eup %9422 }
0x2a86   :  { %5331 = vperm.xlu0 %9366, %v9423_v10  }
0x2b01   :  { %v5332_v13 = vpop.permute.xlu0 %5331 }
0x2b02   :  { %v5334_v14 = vmul.f32 %v9421_v1, %v5332_v13 }
0x2b04   :  { %9127 = vmatmul.mubr.msk.f32.vlgmr.msra.gmra.mxu1 %vm516_vm2, %v5334_v14 }
0x2b05   :  { %9135 = vmatpush3.msra.mxu1 %v9474_v3  ;;  %9136 = vmatprep.mubr.msk.f32.mxu1 %vm9477_vm1, %v9476_v50 }
0x2b06   :  { %v5486_v15 = vpop.xlane.xlu1 %5485  ;;  %9144 = vmatprep.subr.mxu1 %v8189_v25 }
0x2b07   :  { %v5487_v16 = vsub.f32 %v5480_v5, %v5486_v15 }
0x2b09   :  { %v5488_v17 = vmul.f32 1.442695, %v5487_v16 }
0x2b0b   :  { %9424 = vpow2.f32 %v5488_v17 }
0x2b18   :  { %v9425_v18 = vpop.eup %9424 }
0x2b19   :  { %9137 = vmatmul.mubr.msk.f32.vlgmr.msra.gmra.mxu1 %vm516_vm2, %v9425_v18 }
0x2b1a   :  { %9145 = vmatpush3.msra.mxu1 %v8189_v25 }
0x2b1b   :  { %9160 = vmatprep.subr.mxu1 %v8203_v43 }
0x2bc4   :  { %v5404_v19 = vpop.f32.mrf.mxu1 }
0x2bc5   :  { %9146 = vmatprep.mubr.msk.f32.mxu1 %vm516_vm2, %v5404_v19 }
0x2bc6   :  { %v9128_v20 = vpop.f32.mrf.mxu1 }
0x2bd9   :  { %v5559_v21 = vpop.f32.mrf.mxu1 }
0x2bda   :  { %9426 = vrcp.f32 %v5559_v21 }
0x2bdb   :  { %v9138_v22 = vpop.f32.mrf.mxu1 }
0x2be7   :  { %v9427_v24 = vpop.eup %9426 }
0x2be8   :  { %5566 = vperm.xlu1 %9367, %v9427_v24   ;;  %v8226_v24 = vld [vmem:[%s10552_s2 + $0x2b8] sm:$0xff] }
0x2c63   :  { %v5567_v26 = vpop.permute.xlu1 %5566 }
0x2c64   :  { %v5569_v27 = vmul.f32 %v9425_v18, %v5567_v26  ;;  %v8220_v26 = vld [vmem:[%s10554_s4 + $0x30] sm:$0xff] }
0x2c66   :  { %9142 = vmatmul.mubr.msk.f32.vlgmr.msra.gmra.mxu0 %vm516_vm2, %v5569_v27 }
0x2c67   :  { %9150 = vmatpush3.msra.mxu0 %v8195_v23  ;;  %9157 = vmatprep.mubr.msk.f32.mxu0 %vm41_vm0, %v10092_v51 }
0x2c68   :  { %9151 = vmatprep.subr.mxu0 %v8194_v28 }
0x2c69   :  { %9152 = vmatpush3.msra.mxu0 %v8194_v28 }
0x2c6a   :  { %9153 = vmatprep.subr.mxu0 %v8193_v29 }
0x2c6b   :  { %9154 = vmatpush3.msra.mxu0 %v8193_v29  ;;  %v8225_v29 = vld [vmem:[%s10552_s2 + $0x2b0] sm:$0xff] }
0x2c6c   :  { %9155 = vmatprep.subr.mxu0 %v8192_v30 }
0x2c6d   :  { %9156 = vmatpush3.msra.mxu0 %v8192_v30  ;;  %v8224_v30 = vld [vmem:[%s10552_s2 + $0x2a8] sm:$0xff] }
0x2c6e   :  { %9158 = vmatmul.mubr.msk.f32.vlgmr.msra.gmra.mxu0 %vm41_vm0, %v10094_v52  ;;  %9171 = vmatprep.subr.mxu0 %v8209_v31 }
0x2c6f   :  { %9172 = vmatpush3.msra.mxu0 %v8209_v31  ;;  %9179 = vmatprep.mubr.msk.f32.mxu0 %vm41_vm0, %v10092_v51  ;;  %v8223_v31 = vld [vmem:[%s10552_s2 + $0x2a0] sm:$0xff] }
0x2c70   :  { %9173 = vmatprep.subr.mxu0 %v8208_v32 }
0x2c71   :  { %9174 = vmatpush3.msra.mxu0 %v8208_v32  ;;  %v8240_v32 = vld [vmem:[%s10552_s2 + $0x2f8] sm:$0xff] }
0x2c72   :  { %9175 = vmatprep.subr.mxu0 %v8207_v33 }
0x2c73   :  { %9176 = vmatpush3.msra.mxu0 %v8207_v33  ;;  %v8239_v33 = vld [vmem:[%s10552_s2 + $0x2f0] sm:$0xff] }
0x2c74   :  { %9177 = vmatprep.subr.mxu0 %v8206_v34 }
0x2c75   :  { %9178 = vmatpush3.msra.mxu0 %v8206_v34  ;;  %v8238_v34 = vld [vmem:[%s10552_s2 + $0x2e8] sm:$0xff] }
0x2c76   :  { %9180 = vmatmul.mubr.msk.f32.vlgmr.msra.gmra.mxu0 %vm41_vm0, %v10094_v52  ;;  %9192 = vmatprep.subr.mxu0 %v9476_v50 }
0x2c77   :  { %9194 = vmatprep.mubr.msk.f32.mxu0 %vm9477_vm1, %v9476_v50 }
0x2d26   :  { %v5639_v35 = vpop.f32.mrf.mxu0 }
0x2d27   :  { %9147 = vmatmul.mubr.msk.f32.vlgmr.msra.gmra.mxu1 %vm516_vm2, %v5639_v35  ;;  %v8234_v35 = vld [vmem:[%s10552_s2 + $0x2d8] sm:$0xff] }
0x2d28   :  { %9161 = vmatpush3.msra.mxu1 %v8203_v43  ;;  %v9143_v37 = vpop.f32.mrf.mxu0  ;;  %9168 = vmatprep.mubr.msk.f32.mxu1 %vm41_vm0, %v10092_v51  ;;  %v8237_v43 = vld [vmem:[%s10552_s2 + $0x2e0] sm:$0xff] }
0x2d29   :  { %9162 = vmatprep.subr.mxu1 %v8202_v36  ;;  %v8233_v37 = vld [vmem:[%s10552_s2 + $0x2d0] sm:$0xff] }
0x2d2a   :  { %9163 = vmatpush3.msra.mxu1 %v8202_v36 }
0x2d2b   :  { %9164 = vmatprep.subr.mxu1 %v8201_v38 }
0x2d2c   :  { %9165 = vmatpush3.msra.mxu1 %v8201_v38 }
0x2d2d   :  { %9166 = vmatprep.subr.mxu1 %v8200_v39 }
0x2d2e   :  { %v9159_v41 = vpop.f32.mrf.mxu0  ;;  %9167 = vmatpush3.msra.mxu1 %v8200_v39  ;;  %v8232_v39 = vld [vmem:[%s10552_s2 + $0x2c8] sm:$0xff] }
0x2d2f   :  { %v5813_v46 = vadd.f32 %v9159_v41, %v8197_v40  ;;  %9169 = vmatmul.mubr.msk.f32.vlgmr.msra.gmra.mxu1 %vm41_vm0, %v10094_v52  ;;  %9182 = vmatprep.subr.mxu1 %v9476_v50  ;;  %v8228_v41 = vld [vmem:[%s10553_s3 + $0x7] ss:$0 sm:$0xff] }
0x2d30   :  { %9184 = vmatprep.mubr.msk.f32.mxu1 %vm9477_vm1, %v9476_v50  ;;  %v5807_v42 = vpop.f32.mrf.mxu0 }
0x2d31   :  { %v5808_v63 = vadd.f32 %v8197_v40, %v5807_v42  ;;  %v8231_v40 = vld [vmem:[%s10552_s2 + $0x2c0] sm:$0xff] }
0x2d36   :  { %v9181_v44 = vpop.f32.mrf.mxu0 }
0x2d38   :  { %v5967_v45 = vpop.f32.mrf.mxu0 }
0x2d39   :  { %9193 = vmatpush3.msra.mxu0 %v5967_v45 }
0x2d3a   :  { %9202 = vmatprep.subr.mxu0 %v9476_v50 }
0x2de7   :  { %v9148_v8 = vpop.f32.mrf.mxu1 }
0x2de8   :  { %v10309_v49 = vadd.f32 %v9148_v8, %v4924_v54 }
0x2de9   :  { %v5717_v59 = vpop.f32.mrf.mxu1 }
0x2dea   :  { %v10311_v60 = vadd.f32 %v5717_v59, %v4923_v48 }
0x2def   :  { %v9170_v61 = vpop.f32.mrf.mxu1 }
0x2df1   :  { %v5887_v62 = vpop.f32.mrf.mxu1 }
0x2df2   :  { %9183 = vmatpush3.xpose.msk.msra.mxu1 %vm516_vm2, %v5887_v62 }
0x2df3   :  { %9187 = vmatprep.subr.mxu1 %v9476_v50 }
0x2df5   :  { %9185 = vmatmul.mubr.msk.f32.vlgmr.msra.gmra.mxu1 %vm516_vm2, %v5808_v63 }
0x2df6   :  { %9188 = vmatpush3.msra.mxu1 %v9474_v3  ;;  %9189 = vmatprep.mubr.msk.f32.mxu1 %vm9477_vm1, %v9476_v50 }
0x2df7   :  { %9197 = vmatprep.subr.mxu1 %v9476_v50 }
0x2eb5   :  { %v6048_v11 = vpop.f32.mrf.mxu1 }
0x2eb6   :  { %v6052_v12 = vsel %vm516_vm2, %v6048_v11, -inf }
0x2eb7   :  { %6053 = vmax.xlane.f32.xlu0 %v6052_v12  ;;  %v9186_v56 = vpop.f32.mrf.mxu1 }
0x2f40   :  { %v6054_v7 = vpop.xlane.xlu0 %6053 }
0x2f41   :  { %v6055_v0 = vsub.f32 %v6048_v11, %v6054_v7 }
0x2f43   :  { %v6056_v1 = vmul.f32 1.442695, %v6055_v0 }
0x2f45   :  { %9428 = vpow2.f32 %v6056_v1 }
0x2f52   :  { %v9429_v2 = vpop.eup %9428 }
0x2f53   :  { %9190 = vmatmul.mubr.msk.f32.vlgmr.msra.gmra.mxu1 %vm516_vm2, %v9429_v2 }
0x2f54   :  { %9198 = vmatpush3.xpose.msk.msra.mxu1 %vm516_vm2, %v9170_v61  ;;  %9199 = vmatprep.mubr.msk.f32.mxu1 %vm9477_vm1, %v9476_v50 }
0x2f55   :  { %9207 = vmatprep.subr.mxu1 %v9476_v50 }
0x2f57   :  { %9200 = vmatmul.mubr.msk.f32.vlgmr.msra.gmra.mxu1 %vm516_vm2, %v5813_v46 }
0x2f58   :  { %9208 = vmatpush3.msra.mxu1 %v9181_v44  ;;  %9209 = vmatprep.mubr.msk.f32.mxu1 %vm9477_vm1, %v9476_v50 }
0x2f59   :  { %9217 = vmatprep.subr.mxu1 %v8226_v24 }
0x3013   :  { %v6127_v4 = vpop.f32.mrf.mxu1 }
0x3014   :  { %9430 = vrcp.f32 %v6127_v4 }
0x3015   :  { %v9191_v5 = vpop.f32.mrf.mxu1 }
0x3017   :  { %v6283_v6 = vpop.f32.mrf.mxu1 }
0x3018   :  { %v6287_v9 = vsel %vm516_vm2, %v6283_v6, -inf }
0x3019   :  { %6288 = vmax.xlane.f32.xlu1 %v6287_v9  ;;  %v9201_v10 = vpop.f32.mrf.mxu1 }
0x3021   :  { %v9431_v13 = vpop.eup %9430 }
0x3022   :  { %6134 = vperm.xlu0 %9366, %v9431_v13  }
0x309d   :  { %v6135_v14 = vpop.permute.xlu0 %6134 }
0x309e   :  { %v6137_v15 = vmul.f32 %v9429_v2, %v6135_v14 }
0x30a0   :  { %9195 = vmatmul.mubr.msk.f32.vlgmr.msra.gmra.mxu0 %vm516_vm2, %v6137_v15 }
0x30a1   :  { %9203 = vmatpush3.msra.mxu0 %v9474_v3  ;;  %9204 = vmatprep.mubr.msk.f32.mxu0 %vm9477_vm1, %v9476_v50 }
0x30a2   :  { %v6289_v16 = vpop.xlane.xlu1 %6288  ;;  %9212 = vmatprep.subr.mxu0 %v8220_v26 }
0x30a3   :  { %v6290_v17 = vsub.f32 %v6283_v6, %v6289_v16 }
0x30a5   :  { %v6291_v18 = vmul.f32 1.442695, %v6290_v17 }
0x30a7   :  { %9432 = vpow2.f32 %v6291_v18  ;;  %v8251_v18 = vld [vmem:[%s10554_s4 + $0x38] sm:$0xff] }
0x30b4   :  { %v9433_v19 = vpop.eup %9432 }
0x30b5   :  { %9205 = vmatmul.mubr.msk.f32.vlgmr.msra.gmra.mxu0 %vm516_vm2, %v9433_v19 }
0x30b6   :  { %9213 = vmatpush3.msra.mxu0 %v8220_v26 }
0x30b7   :  { %9228 = vmatprep.subr.mxu0 %v8234_v35 }
0x3160   :  { %v6207_v20 = vpop.f32.mrf.mxu0 }
0x3161   :  { %9214 = vmatprep.mubr.msk.f32.mxu0 %vm516_vm2, %v6207_v20 }
0x3162   :  { %v9196_v21 = vpop.f32.mrf.mxu0 }
0x3175   :  { %v6362_v22 = vpop.f32.mrf.mxu0 }
0x3176   :  { %9434 = vrcp.f32 %v6362_v22 }
0x3177   :  { %v9206_v23 = vpop.f32.mrf.mxu0 }
0x3183   :  { %v9435_v25 = vpop.eup %9434 }
0x3184   :  { %6369 = vperm.xlu1 %9367, %v9435_v25  }
0x31ff   :  { %v6370_v27 = vpop.permute.xlu1 %6369 }
0x3200   :  { %v6372_v28 = vmul.f32 %v9433_v19, %v6370_v27 }
0x3202   :  { %9210 = vmatmul.mubr.msk.f32.vlgmr.msra.gmra.mxu1 %vm516_vm2, %v6372_v28 }
0x3203   :  { %9218 = vmatpush3.msra.mxu1 %v8226_v24  ;;  %9225 = vmatprep.mubr.msk.f32.mxu1 %vm41_vm0, %v10092_v51 }
0x3204   :  { %9219 = vmatprep.subr.mxu1 %v8225_v29 }
0x3205   :  { %9220 = vmatpush3.msra.mxu1 %v8225_v29 }
0x3206   :  { %9221 = vmatprep.subr.mxu1 %v8224_v30 }
0x3207   :  { %9222 = vmatpush3.msra.mxu1 %v8224_v30 }
0x3208   :  { %9223 = vmatprep.subr.mxu1 %v8223_v31 }
0x3209   :  { %9224 = vmatpush3.msra.mxu1 %v8223_v31 }
0x320a   :  { %9226 = vmatmul.mubr.msk.f32.vlgmr.msra.gmra.mxu1 %vm41_vm0, %v10094_v52  ;;  %9239 = vmatprep.subr.mxu1 %v8240_v32 }
0x320b   :  { %9240 = vmatpush3.msra.mxu1 %v8240_v32  ;;  %9247 = vmatprep.mubr.msk.f32.mxu1 %vm41_vm0, %v10092_v51 }
0x320c   :  { %9241 = vmatprep.subr.mxu1 %v8239_v33 }
0x320d   :  { %9242 = vmatpush3.msra.mxu1 %v8239_v33 }
0x320e   :  { %9243 = vmatprep.subr.mxu1 %v8238_v34 }
0x320f   :  { %9244 = vmatpush3.msra.mxu1 %v8238_v34 }
0x3210   :  { %9245 = vmatprep.subr.mxu1 %v8237_v43 }
0x3211   :  { %9246 = vmatpush3.msra.mxu1 %v8237_v43 }
0x3212   :  { %9248 = vmatmul.mubr.msk.f32.vlgmr.msra.gmra.mxu1 %vm41_vm0, %v10094_v52  ;;  %9260 = vmatprep.subr.mxu1 %v9476_v50 }
0x3213   :  { %9262 = vmatprep.mubr.msk.f32.mxu1 %vm9477_vm1, %v9476_v50 }
0x32c2   :  { %v6442_v36 = vpop.f32.mrf.mxu1 }
0x32c3   :  { %9215 = vmatmul.mubr.msk.f32.vlgmr.msra.gmra.mxu0 %vm516_vm2, %v6442_v36 }
0x32c4   :  { %9229 = vmatpush3.msra.mxu0 %v8234_v35  ;;  %v9211_v38 = vpop.f32.mrf.mxu1  ;;  %9236 = vmatprep.mubr.msk.f32.mxu0 %vm41_vm0, %v10092_v51 }
0x32c5   :  { %9230 = vmatprep.subr.mxu0 %v8233_v37 }
0x32c6   :  { %9231 = vmatpush3.msra.mxu0 %v8233_v37 }
0x32c7   :  { %9232 = vmatprep.subr.mxu0 %v8232_v39 }
0x32c8   :  { %9233 = vmatpush3.msra.mxu0 %v8232_v39 }
0x32c9   :  { %9234 = vmatprep.subr.mxu0 %v8231_v40 }
0x32ca   :  { %v9227_v46 = vpop.f32.mrf.mxu1  ;;  %9235 = vmatpush3.msra.mxu0 %v8231_v40 }
0x32cb   :  { %v6616_v51 = vadd.f32 %v9227_v46, %v8228_v41  ;;  %9237 = vmatmul.mubr.msk.f32.vlgmr.msra.gmra.mxu0 %vm41_vm0, %v10094_v52  ;;  %9250 = vmatprep.subr.mxu0 %v9476_v50  ;;  %v8265_v46 = vld [vmem:[%s10555_s5 + $0x40] sm:$0xff] }
0x32cc   :  { %9252 = vmatprep.mubr.msk.f32.mxu0 %vm9477_vm1, %v9476_v50  ;;  %v6610_v42 = vpop.f32.mrf.mxu1 }
0x32cd   :  { %v6611_v48 = vadd.f32 %v8228_v41, %v6610_v42  ;;  %v8264_v42 = vld [vmem:[%s10555_s5 + $0x38] sm:$0xff] }
0x32d2   :  { %v9249_v44 = vpop.f32.mrf.mxu1 }
0x32d4   :  { %v6770_v45 = vpop.f32.mrf.mxu1 }
0x32d5   :  { %9261 = vmatpush3.msra.mxu1 %v6770_v45  ;;  %v8263_v45 = vld [vmem:[%s10555_s5 + $0x30] sm:$0xff] }
0x32d6   :  { %9270 = vmatprep.subr.mxu1 %v9476_v50 }
0x3383   :  { %v9216_v47 = vpop.f32.mrf.mxu0 }
0x3384   :  { %v10400_v53 = vadd.f32 %v9216_v47, %v10309_v49  ;;  %v8262_v47 = vld [vmem:[%s10555_s5 + $0x28] sm:$0xff] }
0x3385   :  { %v6520_v54 = vpop.f32.mrf.mxu0 }
0x3386   :  { %v10403_v55 = vadd.f32 %v6520_v54, %v10311_v60  ;;  %v8275_v54 = vld [vmem:[%s10556_s6 + $0x70] sm:$0xff] }
0x338b   :  { %v9238_v52 = vpop.f32.mrf.mxu0 }
0x338d   :  { %v6690_v8 = vpop.f32.mrf.mxu0 }
0x338e   :  { %9251 = vmatpush3.xpose.msk.msra.mxu0 %vm516_vm2, %v6690_v8 }
0x338f   :  { %9255 = vmatprep.subr.mxu0 %v9476_v50 }
0x3391   :  { %9253 = vmatmul.mubr.msk.f32.vlgmr.msra.gmra.mxu0 %vm516_vm2, %v6611_v48  ;;  %v8260_v48 = vld [vmem:[%s10557_s7 + $0x8] ss:$0 sm:$0xff] }
0x3392   :  { %9256 = vmatpush3.msra.mxu0 %v9474_v3  ;;  %9257 = vmatprep.mubr.msk.f32.mxu0 %vm9477_vm1, %v9476_v50 }
0x3393   :  { %9265 = vmatprep.subr.mxu0 %v9476_v50 }
0x3451   :  { %v6851_v49 = vpop.f32.mrf.mxu0 }
0x3452   :  { %v6855_v59 = vsel %vm516_vm2, %v6851_v49, -inf }
0x3453   :  { %6856 = vmax.xlane.f32.xlu0 %v6855_v59  ;;  %v9254_v60 = vpop.f32.mrf.mxu0 }
0x34dc   :  { %v6857_v61 = vpop.xlane.xlu0 %6856 }
0x34dd   :  { %v6858_v62 = vsub.f32 %v6851_v49, %v6857_v61 }
0x34df   :  { %v6859_v63 = vmul.f32 1.442695, %v6858_v62  ;;  %v8261_v62 = vld [vmem:[%s10557_s7 + $0x9] ss:$0 sm:$0xff] }
0x34e1   :  { %9436 = vpow2.f32 %v6859_v63 }
0x34ee   :  { %v9437_v11 = vpop.eup %9436 }
0x34ef   :  { %9258 = vmatmul.mubr.msk.f32.vlgmr.msra.gmra.mxu0 %vm516_vm2, %v9437_v11 }
0x34f0   :  { %9266 = vmatpush3.xpose.msk.msra.mxu0 %vm516_vm2, %v9238_v52  ;;  %9267 = vmatprep.mubr.msk.f32.mxu0 %vm9477_vm1, %v9476_v50  ;;  %v8273_v52 = vld [vmem:[%s10556_s6 + $0x60] sm:$0xff] }
0x34f1   :  { %9275 = vmatprep.subr.mxu0 %v9476_v50 }
0x34f3   :  { %9268 = vmatmul.mubr.msk.f32.vlgmr.msra.gmra.mxu0 %vm516_vm2, %v6616_v51 }
0x34f4   :  { %9276 = vmatpush3.msra.mxu0 %v9249_v44  ;;  %9277 = vmatprep.mubr.msk.f32.mxu0 %vm9477_vm1, %v9476_v50 }
0x34f5   :  { %9285 = vmatprep.subr.mxu0 %v9474_v3 }
0x35af   :  { %v6930_v12 = vpop.f32.mrf.mxu0 }
0x35b0   :  { %9438 = vrcp.f32 %v6930_v12 }
0x35b1   :  { %v9259_v56 = vpop.f32.mrf.mxu0 }
0x35b2   :  { %v8272_v56 = vld [vmem:[%s10556_s6 + $0x58] sm:$0xff] }
0x35b3   :  { %v7086_v7 = vpop.f32.mrf.mxu0 }
0x35b4   :  { %v7090_v0 = vsel %vm516_vm2, %v7086_v7, -inf }
0x35b5   :  { %7091 = vmax.xlane.f32.xlu1 %v7090_v0  ;;  %v9269_v1 = vpop.f32.mrf.mxu0  ;;  %v8270_v0 = vld [vmem:[%s10556_s6 + $0x48] sm:$0xff] }
0x35b6   :  { %v8269_v1 = vld [vmem:[%s10556_s6 + $0x40] sm:$0xff] }
0x35bd   :  { %v9439_v2 = vpop.eup %9438 }
0x35be   :  { %6937 = vperm.xlu0 %9366, %v9439_v2   ;;  %v8266_v2 = vld [vmem:[%s10555_s5 + $0x48] sm:$0xff] }
0x3639   :  { %v6938_v4 = vpop.permute.xlu0 %6937 }
0x363a   :  { %v6940_v5 = vmul.f32 %v9437_v11, %v6938_v4  ;;  %v7559_v4 = vrot.slane %v8266_v2, %v3703_v58 }
0x363c   :  { %9263 = vmatmul.mubr.msk.f32.vlgmr.msra.gmra.mxu1 %vm516_vm2, %v6940_v5 }
0x363d   :  { %9271 = vmatpush3.msra.mxu1 %v9474_v3  ;;  %9272 = vmatprep.mubr.msk.f32.mxu1 %vm9477_vm1, %v9476_v50 }
0x363e   :  { %v7092_v6 = vpop.xlane.xlu1 %7091  ;;  %9280 = vmatprep.subr.mxu1 %v8251_v18 }
0x363f   :  { %v7093_v9 = vsub.f32 %v7086_v7, %v7092_v6  ;;  %v8271_v7 = vld [vmem:[%s10556_s6 + $0x50] sm:$0xff] }
0x3641   :  { %v7094_v10 = vmul.f32 1.442695, %v7093_v9 }
0x3643   :  { %9440 = vpow2.f32 %v7094_v10 }
0x3650   :  { %v9441_v13 = vpop.eup %9440 }
0x3651   :  { %9273 = vmatmul.mubr.msk.f32.vlgmr.msra.gmra.mxu1 %vm516_vm2, %v9441_v13 }
0x3652   :  { %9281 = vmatpush3.msra.mxu1 %v8251_v18  ;;  %v8280_v18 = vld [vmem:[%s10557_s7 + $0xb] ss:$0 sm:$0xff] }
0x3653   :  { %9296 = vmatprep.subr.mxu1 %v9474_v3 }
0x36fc   :  { %v7010_v14 = vpop.f32.mrf.mxu1 }
0x36fd   :  { %9282 = vmatprep.mubr.msk.f32.mxu1 %vm516_vm2, %v7010_v14 }
0x36fe   :  { %v9264_v15 = vpop.f32.mrf.mxu1 }
0x3711   :  { %v7165_v16 = vpop.f32.mrf.mxu1 }
0x3712   :  { %9442 = vrcp.f32 %v7165_v16 }
0x3713   :  { %v9274_v17 = vpop.f32.mrf.mxu1 }
0x371f   :  { %v9443_v19 = vpop.eup %9442 }
0x3720   :  { %7172 = vperm.xlu1 %9367, %v9443_v19  }
0x379b   :  { %v7173_v50 = vpop.permute.xlu1 %7172 }
0x379c   :  { %v7175_v20 = vmul.f32 %v9441_v13, %v7173_v50 }
0x379e   :  { %9278 = vmatmul.mubr.msk.f32.vlgmr.msra.gmra.mxu0 %vm516_vm2, %v7175_v20 }
0x379f   :  { %9286 = vmatpush3.msra.mxu0 %v9474_v3 }
0x37a0   :  { %9287 = vmatprep.subr.mxu0 %v9474_v3 }
0x37a1   :  { %9288 = vmatpush3.msra.mxu0 %v9474_v3 }
0x37a2   :  { %9289 = vmatprep.subr.mxu0 %v9474_v3 }
0x37a3   :  { %9290 = vmatpush3.msra.mxu0 %v9474_v3 }
0x37a4   :  { %9291 = vmatprep.subr.mxu0 %v9474_v3 }
0x37a5   :  { %9292 = vmatpush3.msra.mxu0 %v9474_v3 }
0x37a6   :  { %9307 = vmatprep.subr.mxu0 %v8265_v46 }
0x385e   :  { %v7245_v21 = vpop.f32.mrf.mxu0 }
0x385f   :  { %9283 = vmatmul.mubr.msk.f32.vlgmr.msra.gmra.mxu1 %vm516_vm2, %v7245_v21 }
0x3860   :  { %v9279_v22 = vpop.f32.mrf.mxu0  ;;  %9297 = vmatpush3.msra.mxu1 %v9474_v3 }
0x3861   :  { %9298 = vmatprep.subr.mxu1 %v9474_v3 }
0x3862   :  { %9299 = vmatpush3.msra.mxu1 %v9474_v3 }
0x3863   :  { %9300 = vmatprep.subr.mxu1 %v9474_v3 }
0x3864   :  { %9301 = vmatpush3.msra.mxu1 %v9474_v3 }
0x3865   :  { %9302 = vmatprep.subr.mxu1 %v9474_v3 }
0x3866   :  { %9303 = vmatpush3.msra.mxu1 %v9474_v3 }
0x391f   :  { %v9284_v23 = vpop.f32.mrf.mxu1 }
0x3920   :  { %v10453_v26 = vadd.f32 %v9284_v23, %v10400_v53  ;;  %v8276_v53 = vld [vmem:[%s10556_s6 + $0x78] sm:$0xff] }
0x3921   :  { %v7323_v24 = vpop.f32.mrf.mxu1  ;;  %9318 = vmatprep.subr.mxu1 %v8276_v53 }
0x3922   :  { %v10450_v25 = vadd.f32 %v7323_v24, %v10403_v55  ;;  %v8274_v55 = vld [vmem:[%s10556_s6 + $0x68] sm:$0xff] }
0x3924   :  { %9293 = vmatprep.mubr.msk.f32.mxu0 %vm41_vm0, %v10450_v25 }
0x3925   :  { %9294 = vmatmul.mubr.msk.f32.vlgmr.msra.gmra.mxu0 %vm41_vm0, %v10453_v26 }
0x3926   :  { %9308 = vmatpush3.msra.mxu0 %v8265_v46 }
0x3927   :  { %9309 = vmatprep.subr.mxu0 %v8264_v42 }
0x3928   :  { %9310 = vmatpush3.msra.mxu0 %v8264_v42 }
0x3929   :  { %9311 = vmatprep.subr.mxu0 %v8263_v45 }
0x392a   :  { %9312 = vmatpush3.msra.mxu0 %v8263_v45 }
0x392b   :  { %9313 = vmatprep.subr.mxu0 %v8262_v47 }
0x392c   :  { %9314 = vmatpush3.msra.mxu0 %v8262_v47 }
0x392d   :  { %9337 = vmatprep.subr.mxu0 %v9474_v3 }
0x39e5   :  { %v9295_v27 = vpop.f32.mrf.mxu0 }
0x39e6   :  { %v7420_v28 = vmul.f32 0.03125, %v9295_v27 }
0x39e7   :  { %v7410_v29 = vpop.f32.mrf.mxu0 }
0x39e8   :  { %v7419_v30 = vmul.f32 0.03125, %v7410_v29  ;;  %7428 = vperm.xlu1 %9367, %v7420_v28  }
0x39ea   :  { %7423 = vperm.xlu0 %9366, %v7419_v30  }
0x3a63   :  { %v7429_v31 = vpop.permute.xlu1 %7428 }
0x3a64   :  { %v7432_v32 = vsub.f32 %v10453_v26, %v7429_v31 }
0x3a65   :  { %v7424_v33 = vpop.permute.xlu0 %7423 }
0x3a66   :  { %v7431_v34 = vsub.f32 %v10450_v25, %v7424_v33  ;;  %v7434_v35 = vmul.f32 %v7432_v32, %v7432_v32 }
0x3a68   :  { %v7433_v43 = vmul.f32 %v7431_v34, %v7431_v34 }
0x3a6a   :  { %9304 = vmatprep.mubr.msk.f32.mxu1 %vm41_vm0, %v7433_v43 }
0x3a6b   :  { %9305 = vmatmul.mubr.msk.f32.vlgmr.msra.gmra.mxu1 %vm41_vm0, %v7434_v35  ;;  %v8287_v35 = vld [vmem:[%s10557_s7 + $0xc] ss:$0 sm:$0xff] }
0x3a6c   :  { %9319 = vmatpush3.msra.mxu1 %v8276_v53 }
0x3a6d   :  { %9320 = vmatprep.subr.mxu1 %v8275_v54 }
0x3a6e   :  { %9321 = vmatpush3.msra.mxu1 %v8275_v54 }
0x3a6f   :  { %9322 = vmatprep.subr.mxu1 %v8274_v55 }
0x3a70   :  { %9323 = vmatpush3.msra.mxu1 %v8274_v55 }
0x3a71   :  { %9324 = vmatprep.subr.mxu1 %v8273_v52 }
0x3a72   :  { %9325 = vmatpush3.msra.mxu1 %v8273_v52 }
0x3a73   :  { %9326 = vmatprep.subr.mxu1 %v8272_v56 }
0x3a74   :  { %9327 = vmatpush3.msra.mxu1 %v8272_v56 }
0x3a75   :  { %9328 = vmatprep.subr.mxu1 %v8271_v7 }
0x3a76   :  { %9329 = vmatpush3.msra.mxu1 %v8271_v7 }
0x3a77   :  { %9330 = vmatprep.subr.mxu1 %v8270_v0 }
0x3a78   :  { %9331 = vmatpush3.msra.mxu1 %v8270_v0 }
0x3a79   :  { %9332 = vmatprep.subr.mxu1 %v8269_v1 }
0x3a7a   :  { %9333 = vmatpush3.msra.mxu1 %v8269_v1 }
0x3b2b   :  { %v9306_v36 = vpop.f32.mrf.mxu1 }
0x3b2c   :  { %v7517_v37 = vmul.f32 0.03125, %v9306_v36 }
0x3b2d   :  { %v7507_v38 = vpop.f32.mrf.mxu1 }
0x3b2e   :  { %v7519_v39 = vadd.f32 1e-05, %v7517_v37  ;;  %v7516_v40 = vmul.f32 0.03125, %v7507_v38  ;;  %v8288_v38 = vld [vmem:[%s10557_s7 + $0xd] ss:$0 sm:$0xff] }
0x3b30   :  { %9444 = vrsqrt.f32 %v7519_v39  ;;  %v7518_v41 = vadd.f32 1e-05, %v7516_v40 }
0x3b32   :  { %9446 = vrsqrt.f32 %v7518_v41 }
0x3b3d   :  { %v9445_v51 = vpop.eup %9444 }
0x3b3e   :  { %7529 = vperm.xlu1 %9367, %v9445_v51  }
0x3b3f   :  { %v9447_v44 = vpop.eup %9446 }
0x3b40   :  { %7524 = vperm.xlu0 %9366, %v9447_v44  }
0x3bb9   :  { %v7530_v8 = vpop.permute.xlu1 %7529 }
0x3bba   :  { %v7533_v49 = vmul.f32 %v7530_v8, %v7432_v32 }
0x3bbb   :  { %v7525_v59 = vpop.permute.xlu0 %7524 }
0x3bbc   :  { %v7532_v60 = vmul.f32 %v7525_v59, %v7431_v34  ;;  %v7541_v61 = vmul.f32 %v8260_v48, %v7533_v49 }
0x3bbe   :  { %v7540_v63 = vmul.f32 %v8260_v48, %v7532_v60  ;;  %v7549_v12 = vadd.f32 %v8261_v62, %v7541_v61 }
0x3bc0   :  { %v7548_v11 = vadd.f32 %v8261_v62, %v7540_v63 }
0x3bc2   :  { %9315 = vmatprep.mubr.msk.f32.mxu0 %vm41_vm0, %v7548_v11 }
0x3bc3   :  { %9316 = vmatmul.mubr.msk.f32.vlgmr.msra.gmra.mxu0 %vm41_vm0, %v7549_v12 }
0x3bc4   :  { %9338 = vmatpush3.msra.mxu0 %v9474_v3 }
0x3bc5   :  { %9339 = vmatprep.subr.mxu0 %v9474_v3 }
0x3bc6   :  { %9340 = vmatpush3.msra.mxu0 %v9474_v3 }
0x3bc7   :  { %9341 = vmatprep.subr.mxu0 %v9474_v3 }
0x3bc8   :  { %9342 = vmatpush3.msra.mxu0 %v9474_v3 }
0x3bc9   :  { %9343 = vmatprep.subr.mxu0 %v9474_v3 }
0x3bca   :  { %9344 = vmatpush3.msra.mxu0 %v9474_v3 }
0x3bcb   :  { %9348 = vmatprep.subr.mxu0 %v9474_v3 }
0x3c83   :  { %v9317_v5 = vpop.f32.mrf.mxu0 }
0x3c84   :  { %v7638_v6 = vadd.f32 %v9317_v5, %v7559_v4 }
0x3c85   :  { %v7632_v9 = vpop.f32.mrf.mxu0 }
0x3c86   :  { %v7633_v10 = vadd.f32 %v7632_v9, %v7559_v4  ;;  %v7642_v14 = vmax.f32 %v7638_v6, 0.0 }
0x3c88   :  { %v7641_v13 = vmax.f32 %v7633_v10, 0.0 }
0x3c8a   :  { %9334 = vmatprep.mubr.msk.f32.mxu1 %vm3796_vm3, %v7641_v13 }
0x3c8b   :  { %9335 = vmatmul.mubr.msk.f32.vlgmr.msra.gmra.mxu1 %vm3796_vm3, %v7642_v14 }
0x3d4b   :  { %v9336_v15 = vpop.f32.mrf.mxu1 }
0x3d4c   :  { %v7734_v16 = vadd.f32 %v9336_v15, %v10453_v26 }
0x3d4d   :  { %v7724_v17 = vpop.f32.mrf.mxu1 }
0x3d4e   :  { %v7733_v57 = vadd.f32 %v7724_v17, %v10450_v25  ;;  %v7744_v19 = vadd.f32 %v8280_v18, %v7734_v16 }
0x3d50   :  { %v7743_v58 = vadd.f32 %v8280_v18, %v7733_v57 }
0x3d52   :  { %9345 = vmatprep.mubr.msk.f32.mxu0 %vm41_vm0, %v7743_v58 }
0x3d53   :  { %9346 = vmatmul.mubr.msk.f32.vlgmr.msra.gmra.mxu0 %vm41_vm0, %v7744_v19 }
0x3d54   :  { %9349 = vmatpush3.msra.mxu0 %v9474_v3 }
0x3d55   :  { %9350 = vmatprep.subr.mxu0 %v9474_v3 }
0x3d56   :  { %9351 = vmatpush3.msra.mxu0 %v9474_v3 }
0x3d57   :  { %9352 = vmatprep.subr.mxu0 %v9474_v3 }
0x3d58   :  { %9353 = vmatpush3.msra.mxu0 %v9474_v3 }
0x3d59   :  { %9354 = vmatprep.subr.mxu0 %v9474_v3 }
0x3d5a   :  { %9355 = vmatpush3.msra.mxu0 %v9474_v3 }
0x3e13   :  { %v9347_v50 = vpop.f32.mrf.mxu0 }
0x3e14   :  { %v7831_v20 = vmul.f32 0.03125, %v9347_v50 }
0x3e15   :  { %v7821_v21 = vpop.f32.mrf.mxu0 }
0x3e16   :  { %v7830_v22 = vmul.f32 0.03125, %v7821_v21  ;;  %7839 = vperm.xlu1 %9367, %v7831_v20  }
0x3e18   :  { %7834 = vperm.xlu0 %9366, %v7830_v22  }
0x3e91   :  { %v7840_v23 = vpop.permute.xlu1 %7839 }
0x3e92   :  { %v7843_v24 = vsub.f32 %v7744_v19, %v7840_v23 }
0x3e93   :  { %v7835_v25 = vpop.permute.xlu0 %7834 }
0x3e94   :  { %v7842_v26 = vsub.f32 %v7743_v58, %v7835_v25  ;;  %v7845_v28 = vmul.f32 %v7843_v24, %v7843_v24 }
0x3e96   :  { %v7844_v27 = vmul.f32 %v7842_v26, %v7842_v26 }
0x3e98   :  { %9356 = vmatprep.mubr.msk.f32.mxu0 %vm41_vm0, %v7844_v27 }
0x3e99   :  { %9357 = vmatmul.mubr.msk.f32.vlgmr.msra.gmra.mxu0 %vm41_vm0, %v7845_v28 }
0x3f59   :  { %v9358_v29 = vpop.f32.mrf.mxu0 }
0x3f5a   :  { %v7928_v30 = vmul.f32 0.03125, %v9358_v29 }
0x3f5b   :  { %v7918_v31 = vpop.f32.mrf.mxu0 }
0x3f5c   :  { %v7930_v3 = vadd.f32 1e-05, %v7928_v30  ;;  %v7927_v32 = vmul.f32 0.03125, %v7918_v31 }
0x3f5e   :  { %9448 = vrsqrt.f32 %v7930_v3  ;;  %v7929_v33 = vadd.f32 1e-05, %v7927_v32 }
0x3f60   :  { %9450 = vrsqrt.f32 %v7929_v33 }
0x3f6b   :  { %v9449_v34 = vpop.eup %9448 }
0x3f6c   :  { %7940 = vperm.xlu1 %9367, %v9449_v34  }
0x3f6d   :  { %v9451_v43 = vpop.eup %9450 }
0x3f6e   :  { %7935 = vperm.xlu0 %9366, %v9451_v43  }
0x3fe7   :  { %v7941_v36 = vpop.permute.xlu1 %7940 }
0x3fe8   :  { %v7944_v37 = vmul.f32 %v7941_v36, %v7843_v24 }
0x3fe9   :  { %v7936_v39 = vpop.permute.xlu0 %7935 }
0x3fea   :  { %v7952_v40 = vmul.f32 %v8287_v35, %v7944_v37  ;;  %v7943_v41 = vmul.f32 %v7936_v39, %v7842_v26 }
0x3fec   :  { %v7960_v46 = vadd.f32 %v8288_v38, %v7952_v40  ;;  %v7951_v51 = vmul.f32 %v8287_v35, %v7943_v41 }
0x3fee   :  { %7962 = vst.msk [vmem:[#allocation2 + $0x8] sm:$0xff] %vm41_vm0, %v7960_v46  ;;  %v7959_v42 = vadd.f32 %v8288_v38, %v7951_v51 }
0x3ff0   :  { %7961 = vst.msk [vmem:[#allocation2] sm:$0xff] %vm41_vm0, %v7959_v42 }
0x3ff1   :  { %9463 = shalt.err (!%p9460_p4)
}
0x3ff2   :  { %s9479_s7 = smov 128   ;;  %s9480_s22 = smov 8  }
0x3ff3   :  { %7974 = dma.vmem_to_hbm [thread:$0]  %s7969_s20, 256, %s10558_s8, [#allocation3], %s9479_s7, %s9479_s7, %s9480_s22  }
0x3ff4   :  { %9472 = dma.done.wait [#allocation3], 256  }
0x3ff5   :  { %9473 = vsyncadd [#allocation3], 4294967040 }
0x3ff6   :  { %7978 = vsyncpa [#allocation3], 1 }

</bundles_post_ra>
